<compile_context>
chip_gen: v7x
topology: tpu7x:2x2x1
jax: 0.10.0
libtpu: 0.0.40
codegen_flags: <defaults>
</compile_context>

<pallas_src>
import functools

import jax
import jax.numpy as jnp
from jax.experimental import pallas as pl
from jax.experimental.pallas import tpu as pltpu


def _fused_kernel(T, N, H, B, C, n_heads, out_len,
                  x_ref,
                  wih1_ref, whh1_ref, b1_ref,
                  wih2_ref, whh2_ref, b2_ref,
                  gw1_ref, gb1_ref, gw2_ref, ab_ref, blk_ref,
                  mat_ref, sir_ref,
                  beta_ref, state_ref, h_ref,
                  gx_scr, seq_scr):
    f32 = jnp.float32
    H4 = 4 * H
    HB = n_heads * N                       # stacked GAT rows, order (head, batch, city)

    # Lane mask selecting the cell-candidate ('g') gate of the lane-packed
    # [i | f | g | o] gates tile (i/f/o -> sigmoid, g -> tanh).
    lane = jax.lax.broadcasted_iota(jnp.int32, (N, H4), 1)
    is_g = jnp.logical_and(lane >= 2 * H, lane < 3 * H)

    # ------------------------------------------------------------------ LSTM
    def run_lstm_layer(x_all, wih_ref, whh_ref, b_ref, write_seq):
        # Hoisted input projection for ALL timesteps with the 4 gates packed
        # along lanes: one (T*N, F_in) x (F_in, 4H) matmul + full-width store.
        gx_scr[...] = (jnp.dot(x_all, wih_ref[...], preferred_element_type=f32)
                       + b_ref[...])
        whh = whh_ref[...]                                     # (H, 4H), hoisted
        h = jnp.zeros((N, H), f32)
        c = jnp.zeros((N, H), f32)
        for t in range(T):
            gates = gx_scr[t * N:(t + 1) * N, :] + jnp.dot(
                h, whh, preferred_element_type=f32)            # one matmul / step
            sig = jax.nn.sigmoid(gates)
            tnh = jnp.tanh(gates)
            act = jnp.where(is_g, tnh, sig)                    # full 128-lane VPU/EUP
            i_t = act[:, 0 * H:1 * H]
            f_t = act[:, 1 * H:2 * H]
            g_t = act[:, 2 * H:3 * H]
            o_t = act[:, 3 * H:4 * H]
            c = f_t * c + i_t * g_t
            h = o_t * jnp.tanh(c)
            if write_seq:
                # Deeplearning applies nn.Tanh() to each layer's output sequence.
                seq_scr[t * N:(t + 1) * N, :] = jnp.tanh(h)
        return h

    run_lstm_layer(x_ref[...], wih1_ref, whh1_ref, b1_ref, True)
    h2 = run_lstm_layer(seq_scr[...], wih2_ref, whh2_ref, b2_ref, False)
    x_last = jnp.tanh(h2)                                      # (N, H), last timestep

    # ------------------------------------------------------------------- GAT
    a_p = ab_ref[0, 0]
    b_p = ab_ref[0, 1]

    wg_all = jnp.dot(x_last, gw1_ref[...], preferred_element_type=f32) + gb1_ref[...]
    g_all = jnp.dot(x_last, gw2_ref[...], preferred_element_type=f32)

    # Stack every (head, batch) node block into one (n_heads*B*C, H) operand.
    WG = jnp.concatenate([wg_all[:, hh * H:(hh + 1) * H] for hh in range(n_heads)],
                         axis=0)
    GH = jnp.concatenate([g_all[:, hh * H:(hh + 1) * H] for hh in range(n_heads)],
                         axis=0)
    # F.normalize(p=2, dim=-1, eps=1e-12) once over the whole stack.
    GR = WG / jnp.maximum(jnp.sqrt(jnp.sum(WG * WG, axis=-1, keepdims=True)), 1e-12)
    GT = GH / jnp.maximum(jnp.sqrt(jnp.sum(GH * GH, axis=-1, keepdims=True)), 1e-12)

    r_idx = jax.lax.broadcasted_iota(jnp.int32, (HB, HB), 0)
    s_idx = jax.lax.broadcasted_iota(jnp.int32, (HB, HB), 1)
    eye_f = (r_idx == s_idx).astype(f32)
    blk = blk_ref[...]                                         # 1 on-block, 0 off

    # e[(h,b), n, m] = <gt_n, gr_m> for all (head, batch) blocks in one matmul.
    e_dot = jax.lax.dot_general(GT, GR, (((1,), (1,)), ((), ())),
                                preferred_element_type=f32)    # (HB, HB)
    e_attn = e_dot * blk + a_p * eye_f                         # off-block == 0

    # attn[(h,b), i, f] = sum_j e[(h,b), j, i] * g[(h,b), j, f] in one matmul.
    attn = jnp.tanh(jax.lax.dot_general(e_attn, GH, (((0,), (0,)), ((), ())),
                                        preferred_element_type=f32))   # (HB, H)
    row_sums = jnp.sum(attn, axis=1, keepdims=True)            # (HB, 1)

    # Row-wise softmax over neighbours; off-block entries pushed to -1e30.
    e_sm = e_attn + (blk - 1.0) * f32(1e30)
    e_max = jnp.max(e_sm, axis=1, keepdims=True)
    e_exp = jnp.exp(e_sm - e_max)                              # off-block -> exact 0
    e_soft = e_exp / jnp.sum(e_exp, axis=1, keepdims=True)

    # Mean over heads -> per-batch (C, C) softmax blocks, laid out block-diagonally.
    e_mean_bd = jnp.zeros((N, N), f32)
    for hh in range(n_heads):
        off = hh * N
        e_mean_bd = e_mean_bd + e_soft[off:off + N, off:off + N]
    e_mean_bd = e_mean_bd * f32(1.0 / n_heads)

    # Per-batch attention means -> sigmoid -> beta (constant across cities/steps).
    inv_cnt = f32(1.0 / (n_heads * C * H))
    beta_list = []
    for b in range(B):
        s = f32(0.0)
        for hh in range(n_heads):
            off = hh * N + b * C
            s = s + jnp.sum(row_sums[off:off + C, :])
        beta_b = jax.nn.sigmoid(s * inv_cnt)
        beta_list.append(beta_b)
        beta_ref[b] = beta_b * jnp.ones((out_len, C), f32)

    # --------------------------------------------------- MPUGAT update + SEIR
    mat_bd = mat_ref[...] / (10000.0 * jnp.abs(b_p))           # block-diag (N, N)
    from_i = jnp.dot(e_mean_bd, mat_bd, preferred_element_type=f32)
    e_out = jax.lax.dot_general(from_i, from_i, (((1,), (1,)), ((), ())),
                                preferred_element_type=f32)    # from_i @ from_i.T
    e_sym = (e_out + e_out.T) * 0.5                            # block-diag (N, N)

    sir = sir_ref[...]                                         # (4, N) rows S,E,I,R
    S = sir[0:1, :]
    E = sir[1:2, :]
    I = sir[2:3, :]
    R = sir[3:4, :]
    n_vec = S + E + I + R                                      # (1, N)
    h_bd = e_sym / n_vec                                       # h[i, j] = e[i, j] / N[j]

    for b in range(B):
        h_ref[b] = h_bd[b * C:(b + 1) * C, b * C:(b + 1) * C]

    col = jax.lax.broadcasted_iota(jnp.int32, (1, N), 1)
    beta_vec = jnp.zeros((1, N), f32)
    for b in range(B):
        sel = jnp.logical_and(col >= b * C, col < (b + 1) * C)
        beta_vec = jnp.where(sel, beta_list[b], beta_vec)

    sigma = f32(1.0 / 6.5)
    gamma = f32(1.0 / 4.0)
    rows = []
    for _ in range(out_len):
        IH = jnp.dot(I, h_bd, preferred_element_type=f32)      # (1, N): all batches
        infected = beta_vec * IH * (S / n_vec)
        S_t = S - infected
        E_t = E + infected - sigma * E
        I_t = I + sigma * E - gamma * I
        R_t = R + gamma * I
        rows += [S_t, E_t, I_t, R_t]
        S, E, I, R = S_t, E_t, I_t, R_t
    state_ref[...] = jnp.concatenate(rows, axis=0)             # (out_len*4, N)


# -----------------------------------------------------------------------------
# Full Model forward (model == 'MPUGAT'), one fused pallas_call.
# -----------------------------------------------------------------------------
def model_forward(params, x_node, x_SIR, matrix, out_len, n_heads):
    B, T, C, F = x_node.shape
    lstm_params = params['lstm']
    assert len(lstm_params) == 2, "kernel is specialized to 2 stacked LSTM layers"
    H = lstm_params[0][1].shape[1]
    N = B * C
    HB = n_heads * N

    # Pack the 4 LSTM gates along lanes: W_ih:(F_in,4H), W_hh:(H,4H), bias:(1,4H),
    # gate order [i | f | g | o] (PyTorch layout, transposed).
    def pack(w_ih, w_hh, b_ih, b_hh):
        return w_ih.T, w_hh.T, (b_ih + b_hh).reshape(1, -1)

    wih1, whh1, b1 = pack(*lstm_params[0])
    wih2, whh2, b2 = pack(*lstm_params[1])

    # (B, T, C, F) -> time-major flattened (T*B*C, F); sequence n = b*C + c.
    x_all = jnp.transpose(x_node, (1, 0, 2, 3)).reshape(T * N, F)

    gw1 = params['gat_w1'].T                                   # (H, n_heads*H)
    gb1 = params['gat_b1'].reshape(1, -1)
    gw2 = params['gat_w2'].T
    ab = jnp.stack([params['gat_a'], params['gat_b']]).astype(jnp.float32).reshape(1, 2)

    # (head, batch)-block mask for the stacked GAT operand.
    blk_id = jnp.arange(HB) // C
    blk_mask = (blk_id[:, None] == blk_id[None, :]).astype(jnp.float32)

    # Block-diagonal contact matrix (one batch per diagonal block) + stacked SIR rows.
    mat_bd = jnp.zeros((N, N), jnp.float32)
    for b in range(B):
        mat_bd = mat_bd.at[b * C:(b + 1) * C, b * C:(b + 1) * C].set(matrix[b])
    sir_rows = jnp.transpose(x_SIR[:, -1, :, :], (2, 0, 1)).reshape(4, N)   # (4, B*C)

    kernel = functools.partial(_fused_kernel, T, N, H, B, C, n_heads, out_len)
    beta_out, state_out, h_out = pl.pallas_call(
        kernel,
        out_shape=(jax.ShapeDtypeStruct((B, out_len, C), jnp.float32),
                   jax.ShapeDtypeStruct((out_len * 4, N), jnp.float32),
                   jax.ShapeDtypeStruct((B, C, C), jnp.float32)),
        scratch_shapes=[pltpu.VMEM((T * N, 4 * H), jnp.float32),   # packed gate proj
                        pltpu.VMEM((T * N, H), jnp.float32)],      # layer-1 out seq
    )(x_all, wih1, whh1, b1, wih2, whh2, b2, gw1, gb1, gw2, ab, blk_mask,
      mat_bd, sir_rows)

    # (out_len*4, B*C) -> (B, out_len, C, 4) with last dim [S, E, I, R].
    outputs_state = jnp.transpose(state_out.reshape(out_len, 4, B, C), (2, 0, 3, 1))
    return beta_out, outputs_state, h_out


def init_params(key, num_feature, hidden_unit, layers, n_heads):
    lstm_params = []
    for l in range(layers):
        in_dim = num_feature if l == 0 else hidden_unit
        key, k1, k2, k3, k4 = jax.random.split(key, 5)
        s = 0.3
        lstm_params.append((
            s * jax.random.normal(k1, (4 * hidden_unit, in_dim), jnp.float32),
            s * jax.random.normal(k2, (4 * hidden_unit, hidden_unit), jnp.float32),
            s * jax.random.normal(k3, (4 * hidden_unit,), jnp.float32),
            s * jax.random.normal(k4, (4 * hidden_unit,), jnp.float32),
        ))
    key, k1, k2, k3 = jax.random.split(key, 4)
    params = {
        'lstm': lstm_params,
        'gat_w1': 0.1 * jax.random.normal(k1, (n_heads * hidden_unit, hidden_unit), jnp.float32),
        'gat_b1': 0.1 * jax.random.normal(k2, (n_heads * hidden_unit,), jnp.float32),
        'gat_w2': 0.1 * jax.random.normal(k3, (n_heads * hidden_unit, hidden_unit), jnp.float32),
        'gat_a': jnp.float32(1.0),
        'gat_b': jnp.float32(1.0),
    }
    return params, key


if __name__ == "__main__":
    # Hyperparameters implied by the module (num_cities=16 is hard-coded in GAT).
    num_feature, in_len, out_len, layers, hidden_unit, n_heads = 4, 8, 3, 2, 32, 2
    num_cities, batch = 16, 2

    key = jax.random.PRNGKey(0)
    params, key = init_params(key, num_feature, hidden_unit, layers, n_heads)
    key, kx, ks, km = jax.random.split(key, 4)
    x_node = jax.random.normal(kx, (batch, in_len, num_cities, num_feature), jnp.float32)
    x_SIR = jax.random.uniform(ks, (batch, in_len, num_cities, 4), jnp.float32,
                               minval=100.0, maxval=1000.0)
    matrix = jax.random.uniform(km, (batch, num_cities, num_cities), jnp.float32,
                                minval=0.0, maxval=1.0)

    fwd = jax.jit(functools.partial(model_forward, out_len=out_len, n_heads=n_heads))
    outputs_beta, outputs_state, h = fwd(params, x_node, x_SIR, matrix)
    jax.block_until_ready((outputs_beta, outputs_state, h))

    assert outputs_beta.shape == (batch, out_len, num_cities)
    assert outputs_state.shape == (batch, out_len, num_cities, 4)
    assert h.shape == (batch, num_cities, num_cities)
    print("KERNEL_OK")
</pallas_src>

<mosaic_0001>
module attributes {stable_mosaic.version = 11 : i64} {
  func.func @_fused_kernel(%arg0: memref<256x4xf32, #tpu.memory_space<vmem>>, %arg1: memref<4x128xf32, #tpu.memory_space<vmem>>, %arg2: memref<32x128xf32, #tpu.memory_space<vmem>>, %arg3: memref<1x128xf32, #tpu.memory_space<vmem>>, %arg4: memref<32x128xf32, #tpu.memory_space<vmem>>, %arg5: memref<32x128xf32, #tpu.memory_space<vmem>>, %arg6: memref<1x128xf32, #tpu.memory_space<vmem>>, %arg7: memref<32x64xf32, #tpu.memory_space<vmem>>, %arg8: memref<1x64xf32, #tpu.memory_space<vmem>>, %arg9: memref<32x64xf32, #tpu.memory_space<vmem>>, %arg10: memref<1x2xf32, #tpu.memory_space<vmem>>, %arg11: memref<64x64xf32, #tpu.memory_space<vmem>>, %arg12: memref<32x32xf32, #tpu.memory_space<vmem>>, %arg13: memref<4x32xf32, #tpu.memory_space<vmem>>, %arg14: memref<2x3x16xf32, #tpu.memory_space<vmem>>, %arg15: memref<12x32xf32, #tpu.memory_space<vmem>>, %arg16: memref<2x16x16xf32, #tpu.memory_space<vmem>>, %arg17: memref<256x128xf32, #tpu.memory_space<vmem>>, %arg18: memref<256x32xf32, #tpu.memory_space<vmem>>) attributes {dimension_semantics = [], scalar_prefetch = 0 : i64, scratch_operands = 2 : i64, tpu.core_type = #tpu.core_type<tc>} {
    %0 = tpu.iota {dimensions = array<i32: 1>} : vector<32x128xi32>
    %c64_i32 = arith.constant 64 : i32
    %1 = vector.broadcast %c64_i32 : i32 to vector<32x128xi32>
    %2 = arith.cmpi sge, %0, %1 : vector<32x128xi32>
    %c96_i32 = arith.constant 96 : i32
    %3 = vector.broadcast %c96_i32 : i32 to vector<32x128xi32>
    %4 = arith.cmpi slt, %0, %3 : vector<32x128xi32>
    %5 = arith.andi %2, %4 : vector<32x128xi1>
    %c0 = arith.constant 0 : index
    %c0_0 = arith.constant 0 : index
    %6 = vector.load %arg0[%c0, %c0_0] : memref<256x4xf32, #tpu.memory_space<vmem>>, vector<256x4xf32>
    %c0_1 = arith.constant 0 : index
    %c0_2 = arith.constant 0 : index
    %7 = vector.load %arg1[%c0_1, %c0_2] : memref<4x128xf32, #tpu.memory_space<vmem>>, vector<4x128xf32>
    %cst = arith.constant dense<0.000000e+00> : vector<256x128xf32>
    %8 = tpu.matmul %6, %7, %cst {dimension_numbers = #tpu.dot_dimension_numbers<[1], [0], [0], [1], [0, 0, 1, 1], [], []>} : vector<256x4xf32>, vector<4x128xf32>, vector<256x128xf32> -> vector<256x128xf32>
    %c0_3 = arith.constant 0 : index
    %c0_4 = arith.constant 0 : index
    %9 = vector.load %arg3[%c0_3, %c0_4] : memref<1x128xf32, #tpu.memory_space<vmem>>, vector<1x128xf32>
    %10 = vector.broadcast %9 : vector<1x128xf32> to vector<256x128xf32>
    %11 = arith.addf %8, %10 : vector<256x128xf32>
    %c0_5 = arith.constant 0 : index
    %c0_6 = arith.constant 0 : index
    %12 = vector.load %arg17[%c0_5, %c0_6] : memref<256x128xf32, #tpu.memory_space<vmem>>, vector<256x128xf32>
    tpu.vector_store %arg17[%c0_5, %c0_6], %11 {strides = array<i32>} : memref<256x128xf32, #tpu.memory_space<vmem>>, vector<256x128xf32>,
    %c0_7 = arith.constant 0 : index
    %c0_8 = arith.constant 0 : index
    %13 = vector.load %arg2[%c0_7, %c0_8] : memref<32x128xf32, #tpu.memory_space<vmem>>, vector<32x128xf32>
    %cst_9 = arith.constant 0.000000e+00 : f32
    %14 = vector.broadcast %cst_9 : f32 to vector<32x32xf32>
    %cst_10 = arith.constant 0.000000e+00 : f32
    %15 = vector.broadcast %cst_10 : f32 to vector<32x32xf32>
    %c0_11 = arith.constant 0 : index
    %c0_12 = arith.constant 0 : index
    %16 = vector.load %arg17[%c0_11, %c0_12] : memref<256x128xf32, #tpu.memory_space<vmem>>, vector<32x128xf32>
    %cst_13 = arith.constant dense<0.000000e+00> : vector<32x128xf32>
    %17 = tpu.matmul %14, %13, %cst_13 {dimension_numbers = #tpu.dot_dimension_numbers<[1], [0], [0], [1], [0, 0, 1, 1], [], []>} : vector<32x32xf32>, vector<32x128xf32>, vector<32x128xf32> -> vector<32x128xf32>
    %18 = arith.addf %16, %17 : vector<32x128xf32>
    %19 = arith.negf %18 : vector<32x128xf32>
    %20 = math.exp %19 : vector<32x128xf32>
    %cst_14 = arith.constant 1.000000e+00 : f32
    %21 = vector.broadcast %cst_14 : f32 to vector<32x128xf32>
    %22 = arith.addf %21, %20 : vector<32x128xf32>
    %23 = arith.divf %21, %22 : vector<32x128xf32>
    %24 = math.tanh %18 : vector<32x128xf32>
    %25 = arith.select %5, %24, %23 : vector<32x128xi1>, vector<32x128xf32>
    %26 = vector.extract_strided_slice %25 {offsets = [0, 0], sizes = [32, 32], strides = [1, 1]} : vector<32x128xf32> to vector<32x32xf32>
    %27 = vector.extract_strided_slice %25 {offsets = [0, 32], sizes = [32, 32], strides = [1, 1]} : vector<32x128xf32> to vector<32x32xf32>
    %28 = vector.extract_strided_slice %25 {offsets = [0, 64], sizes = [32, 32], strides = [1, 1]} : vector<32x128xf32> to vector<32x32xf32>
    %29 = vector.extract_strided_slice %25 {offsets = [0, 96], sizes = [32, 32], strides = [1, 1]} : vector<32x128xf32> to vector<32x32xf32>
    %30 = arith.mulf %27, %15 : vector<32x32xf32>
    %31 = arith.mulf %26, %28 : vector<32x32xf32>
    %32 = arith.addf %30, %31 : vector<32x32xf32>
    %33 = math.tanh %32 : vector<32x32xf32>
    %34 = arith.mulf %29, %33 : vector<32x32xf32>
    %35 = math.tanh %34 : vector<32x32xf32>
    %c0_15 = arith.constant 0 : index
    %c0_16 = arith.constant 0 : index
    %36 = vector.load %arg18[%c0_15, %c0_16] : memref<256x32xf32, #tpu.memory_space<vmem>>, vector<32x32xf32>
    tpu.vector_store %arg18[%c0_15, %c0_16], %35 {strides = array<i32>} : memref<256x32xf32, #tpu.memory_space<vmem>>, vector<32x32xf32>,
    %c32 = arith.constant 32 : index
    %c0_17 = arith.constant 0 : index
    %37 = vector.load %arg17[%c32, %c0_17] : memref<256x128xf32, #tpu.memory_space<vmem>>, vector<32x128xf32>
    %cst_18 = arith.constant dense<0.000000e+00> : vector<32x128xf32>
    %38 = tpu.matmul %34, %13, %cst_18 {dimension_numbers = #tpu.dot_dimension_numbers<[1], [0], [0], [1], [0, 0, 1, 1], [], []>} : vector<32x32xf32>, vector<32x128xf32>, vector<32x128xf32> -> vector<32x128xf32>
    %39 = arith.addf %37, %38 : vector<32x128xf32>
    %40 = arith.negf %39 : vector<32x128xf32>
    %41 = math.exp %40 : vector<32x128xf32>
    %cst_19 = arith.constant 1.000000e+00 : f32
    %42 = vector.broadcast %cst_19 : f32 to vector<32x128xf32>
    %43 = arith.addf %42, %41 : vector<32x128xf32>
    %44 = arith.divf %42, %43 : vector<32x128xf32>
    %45 = math.tanh %39 : vector<32x128xf32>
    %46 = arith.select %5, %45, %44 : vector<32x128xi1>, vector<32x128xf32>
    %47 = vector.extract_strided_slice %46 {offsets = [0, 0], sizes = [32, 32], strides = [1, 1]} : vector<32x128xf32> to vector<32x32xf32>
    %48 = vector.extract_strided_slice %46 {offsets = [0, 32], sizes = [32, 32], strides = [1, 1]} : vector<32x128xf32> to vector<32x32xf32>
    %49 = vector.extract_strided_slice %46 {offsets = [0, 64], sizes = [32, 32], strides = [1, 1]} : vector<32x128xf32> to vector<32x32xf32>
    %50 = vector.extract_strided_slice %46 {offsets = [0, 96], sizes = [32, 32], strides = [1, 1]} : vector<32x128xf32> to vector<32x32xf32>
    %51 = arith.mulf %48, %32 : vector<32x32xf32>
    %52 = arith.mulf %47, %49 : vector<32x32xf32>
    %53 = arith.addf %51, %52 : vector<32x32xf32>
    %54 = math.tanh %53 : vector<32x32xf32>
    %55 = arith.mulf %50, %54 : vector<32x32xf32>
    %56 = math.tanh %55 : vector<32x32xf32>
    %c32_20 = arith.constant 32 : index
    %c0_21 = arith.constant 0 : index
    %57 = vector.load %arg18[%c32_20, %c0_21] : memref<256x32xf32, #tpu.memory_space<vmem>>, vector<32x32xf32>
    tpu.vector_store %arg18[%c32_20, %c0_21], %56 {strides = array<i32>} : memref<256x32xf32, #tpu.memory_space<vmem>>, vector<32x32xf32>,
    %c64 = arith.constant 64 : index
    %c0_22 = arith.constant 0 : index
    %58 = vector.load %arg17[%c64, %c0_22] : memref<256x128xf32, #tpu.memory_space<vmem>>, vector<32x128xf32>
    %cst_23 = arith.constant dense<0.000000e+00> : vector<32x128xf32>
    %59 = tpu.matmul %55, %13, %cst_23 {dimension_numbers = #tpu.dot_dimension_numbers<[1], [0], [0], [1], [0, 0, 1, 1], [], []>} : vector<32x32xf32>, vector<32x128xf32>, vector<32x128xf32> -> vector<32x128xf32>
    %60 = arith.addf %58, %59 : vector<32x128xf32>
    %61 = arith.negf %60 : vector<32x128xf32>
    %62 = math.exp %61 : vector<32x128xf32>
    %cst_24 = arith.constant 1.000000e+00 : f32
    %63 = vector.broadcast %cst_24 : f32 to vector<32x128xf32>
    %64 = arith.addf %63, %62 : vector<32x128xf32>
    %65 = arith.divf %63, %64 : vector<32x128xf32>
    %66 = math.tanh %60 : vector<32x128xf32>
    %67 = arith.select %5, %66, %65 : vector<32x128xi1>, vector<32x128xf32>
    %68 = vector.extract_strided_slice %67 {offsets = [0, 0], sizes = [32, 32], strides = [1, 1]} : vector<32x128xf32> to vector<32x32xf32>
    %69 = vector.extract_strided_slice %67 {offsets = [0, 32], sizes = [32, 32], strides = [1, 1]} : vector<32x128xf32> to vector<32x32xf32>
    %70 = vector.extract_strided_slice %67 {offsets = [0, 64], sizes = [32, 32], strides = [1, 1]} : vector<32x128xf32> to vector<32x32xf32>
    %71 = vector.extract_strided_slice %67 {offsets = [0, 96], sizes = [32, 32], strides = [1, 1]} : vector<32x128xf32> to vector<32x32xf32>
    %72 = arith.mulf %69, %53 : vector<32x32xf32>
    %73 = arith.mulf %68, %70 : vector<32x32xf32>
    %74 = arith.addf %72, %73 : vector<32x32xf32>
    %75 = math.tanh %74 : vector<32x32xf32>
    %76 = arith.mulf %71, %75 : vector<32x32xf32>
    %77 = math.tanh %76 : vector<32x32xf32>
    %c64_25 = arith.constant 64 : index
    %c0_26 = arith.constant 0 : index
    %78 = vector.load %arg18[%c64_25, %c0_26] : memref<256x32xf32, #tpu.memory_space<vmem>>, vector<32x32xf32>
    tpu.vector_store %arg18[%c64_25, %c0_26], %77 {strides = array<i32>} : memref<256x32xf32, #tpu.memory_space<vmem>>, vector<32x32xf32>,
    %c96 = arith.constant 96 : index
    %c0_27 = arith.constant 0 : index
    %79 = vector.load %arg17[%c96, %c0_27] : memref<256x128xf32, #tpu.memory_space<vmem>>, vector<32x128xf32>
    %cst_28 = arith.constant dense<0.000000e+00> : vector<32x128xf32>
    %80 = tpu.matmul %76, %13, %cst_28 {dimension_numbers = #tpu.dot_dimension_numbers<[1], [0], [0], [1], [0, 0, 1, 1], [], []>} : vector<32x32xf32>, vector<32x128xf32>, vector<32x128xf32> -> vector<32x128xf32>
    %81 = arith.addf %79, %80 : vector<32x128xf32>
    %82 = arith.negf %81 : vector<32x128xf32>
    %83 = math.exp %82 : vector<32x128xf32>
    %cst_29 = arith.constant 1.000000e+00 : f32
    %84 = vector.broadcast %cst_29 : f32 to vector<32x128xf32>
    %85 = arith.addf %84, %83 : vector<32x128xf32>
    %86 = arith.divf %84, %85 : vector<32x128xf32>
    %87 = math.tanh %81 : vector<32x128xf32>
    %88 = arith.select %5, %87, %86 : vector<32x128xi1>, vector<32x128xf32>
    %89 = vector.extract_strided_slice %88 {offsets = [0, 0], sizes = [32, 32], strides = [1, 1]} : vector<32x128xf32> to vector<32x32xf32>
    %90 = vector.extract_strided_slice %88 {offsets = [0, 32], sizes = [32, 32], strides = [1, 1]} : vector<32x128xf32> to vector<32x32xf32>
    %91 = vector.extract_strided_slice %88 {offsets = [0, 64], sizes = [32, 32], strides = [1, 1]} : vector<32x128xf32> to vector<32x32xf32>
    %92 = vector.extract_strided_slice %88 {offsets = [0, 96], sizes = [32, 32], strides = [1, 1]} : vector<32x128xf32> to vector<32x32xf32>
    %93 = arith.mulf %90, %74 : vector<32x32xf32>
    %94 = arith.mulf %89, %91 : vector<32x32xf32>
    %95 = arith.addf %93, %94 : vector<32x32xf32>
    %96 = math.tanh %95 : vector<32x32xf32>
    %97 = arith.mulf %92, %96 : vector<32x32xf32>
    %98 = math.tanh %97 : vector<32x32xf32>
    %c96_30 = arith.constant 96 : index
    %c0_31 = arith.constant 0 : index
    %99 = vector.load %arg18[%c96_30, %c0_31] : memref<256x32xf32, #tpu.memory_space<vmem>>, vector<32x32xf32>
    tpu.vector_store %arg18[%c96_30, %c0_31], %98 {strides = array<i32>} : memref<256x32xf32, #tpu.memory_space<vmem>>, vector<32x32xf32>,
    %c128 = arith.constant 128 : index
    %c0_32 = arith.constant 0 : index
    %100 = vector.load %arg17[%c128, %c0_32] : memref<256x128xf32, #tpu.memory_space<vmem>>, vector<32x128xf32>
    %cst_33 = arith.constant dense<0.000000e+00> : vector<32x128xf32>
    %101 = tpu.matmul %97, %13, %cst_33 {dimension_numbers = #tpu.dot_dimension_numbers<[1], [0], [0], [1], [0, 0, 1, 1], [], []>} : vector<32x32xf32>, vector<32x128xf32>, vector<32x128xf32> -> vector<32x128xf32>
    %102 = arith.addf %100, %101 : vector<32x128xf32>
    %103 = arith.negf %102 : vector<32x128xf32>
    %104 = math.exp %103 : vector<32x128xf32>
    %cst_34 = arith.constant 1.000000e+00 : f32
    %105 = vector.broadcast %cst_34 : f32 to vector<32x128xf32>
    %106 = arith.addf %105, %104 : vector<32x128xf32>
    %107 = arith.divf %105, %106 : vector<32x128xf32>
    %108 = math.tanh %102 : vector<32x128xf32>
    %109 = arith.select %5, %108, %107 : vector<32x128xi1>, vector<32x128xf32>
    %110 = vector.extract_strided_slice %109 {offsets = [0, 0], sizes = [32, 32], strides = [1, 1]} : vector<32x128xf32> to vector<32x32xf32>
    %111 = vector.extract_strided_slice %109 {offsets = [0, 32], sizes = [32, 32], strides = [1, 1]} : vector<32x128xf32> to vector<32x32xf32>
    %112 = vector.extract_strided_slice %109 {offsets = [0, 64], sizes = [32, 32], strides = [1, 1]} : vector<32x128xf32> to vector<32x32xf32>
    %113 = vector.extract_strided_slice %109 {offsets = [0, 96], sizes = [32, 32], strides = [1, 1]} : vector<32x128xf32> to vector<32x32xf32>
    %114 = arith.mulf %111, %95 : vector<32x32xf32>
    %115 = arith.mulf %110, %112 : vector<32x32xf32>
    %116 = arith.addf %114, %115 : vector<32x32xf32>
    %117 = math.tanh %116 : vector<32x32xf32>
    %118 = arith.mulf %113, %117 : vector<32x32xf32>
    %119 = math.tanh %118 : vector<32x32xf32>
    %c128_35 = arith.constant 128 : index
    %c0_36 = arith.constant 0 : index
    %120 = vector.load %arg18[%c128_35, %c0_36] : memref<256x32xf32, #tpu.memory_space<vmem>>, vector<32x32xf32>
    tpu.vector_store %arg18[%c128_35, %c0_36], %119 {strides = array<i32>} : memref<256x32xf32, #tpu.memory_space<vmem>>, vector<32x32xf32>,
    %c160 = arith.constant 160 : index
    %c0_37 = arith.constant 0 : index
    %121 = vector.load %arg17[%c160, %c0_37] : memref<256x128xf32, #tpu.memory_space<vmem>>, vector<32x128xf32>
    %cst_38 = arith.constant dense<0.000000e+00> : vector<32x128xf32>
    %122 = tpu.matmul %118, %13, %cst_38 {dimension_numbers = #tpu.dot_dimension_numbers<[1], [0], [0], [1], [0, 0, 1, 1], [], []>} : vector<32x32xf32>, vector<32x128xf32>, vector<32x128xf32> -> vector<32x128xf32>
    %123 = arith.addf %121, %122 : vector<32x128xf32>
    %124 = arith.negf %123 : vector<32x128xf32>
    %125 = math.exp %124 : vector<32x128xf32>
    %cst_39 = arith.constant 1.000000e+00 : f32
    %126 = vector.broadcast %cst_39 : f32 to vector<32x128xf32>
    %127 = arith.addf %126, %125 : vector<32x128xf32>
    %128 = arith.divf %126, %127 : vector<32x128xf32>
    %129 = math.tanh %123 : vector<32x128xf32>
    %130 = arith.select %5, %129, %128 : vector<32x128xi1>, vector<32x128xf32>
    %131 = vector.extract_strided_slice %130 {offsets = [0, 0], sizes = [32, 32], strides = [1, 1]} : vector<32x128xf32> to vector<32x32xf32>
    %132 = vector.extract_strided_slice %130 {offsets = [0, 32], sizes = [32, 32], strides = [1, 1]} : vector<32x128xf32> to vector<32x32xf32>
    %133 = vector.extract_strided_slice %130 {offsets = [0, 64], sizes = [32, 32], strides = [1, 1]} : vector<32x128xf32> to vector<32x32xf32>
    %134 = vector.extract_strided_slice %130 {offsets = [0, 96], sizes = [32, 32], strides = [1, 1]} : vector<32x128xf32> to vector<32x32xf32>
    %135 = arith.mulf %132, %116 : vector<32x32xf32>
    %136 = arith.mulf %131, %133 : vector<32x32xf32>
    %137 = arith.addf %135, %136 : vector<32x32xf32>
    %138 = math.tanh %137 : vector<32x32xf32>
    %139 = arith.mulf %134, %138 : vector<32x32xf32>
    %140 = math.tanh %139 : vector<32x32xf32>
    %c160_40 = arith.constant 160 : index
    %c0_41 = arith.constant 0 : index
    %141 = vector.load %arg18[%c160_40, %c0_41] : memref<256x32xf32, #tpu.memory_space<vmem>>, vector<32x32xf32>
    tpu.vector_store %arg18[%c160_40, %c0_41], %140 {strides = array<i32>} : memref<256x32xf32, #tpu.memory_space<vmem>>, vector<32x32xf32>,
    %c192 = arith.constant 192 : index
    %c0_42 = arith.constant 0 : index
    %142 = vector.load %arg17[%c192, %c0_42] : memref<256x128xf32, #tpu.memory_space<vmem>>, vector<32x128xf32>
    %cst_43 = arith.constant dense<0.000000e+00> : vector<32x128xf32>
    %143 = tpu.matmul %139, %13, %cst_43 {dimension_numbers = #tpu.dot_dimension_numbers<[1], [0], [0], [1], [0, 0, 1, 1], [], []>} : vector<32x32xf32>, vector<32x128xf32>, vector<32x128xf32> -> vector<32x128xf32>
    %144 = arith.addf %142, %143 : vector<32x128xf32>
    %145 = arith.negf %144 : vector<32x128xf32>
    %146 = math.exp %145 : vector<32x128xf32>
    %cst_44 = arith.constant 1.000000e+00 : f32
    %147 = vector.broadcast %cst_44 : f32 to vector<32x128xf32>
    %148 = arith.addf %147, %146 : vector<32x128xf32>
    %149 = arith.divf %147, %148 : vector<32x128xf32>
    %150 = math.tanh %144 : vector<32x128xf32>
    %151 = arith.select %5, %150, %149 : vector<32x128xi1>, vector<32x128xf32>
    %152 = vector.extract_strided_slice %151 {offsets = [0, 0], sizes = [32, 32], strides = [1, 1]} : vector<32x128xf32> to vector<32x32xf32>
    %153 = vector.extract_strided_slice %151 {offsets = [0, 32], sizes = [32, 32], strides = [1, 1]} : vector<32x128xf32> to vector<32x32xf32>
    %154 = vector.extract_strided_slice %151 {offsets = [0, 64], sizes = [32, 32], strides = [1, 1]} : vector<32x128xf32> to vector<32x32xf32>
    %155 = vector.extract_strided_slice %151 {offsets = [0, 96], sizes = [32, 32], strides = [1, 1]} : vector<32x128xf32> to vector<32x32xf32>
    %156 = arith.mulf %153, %137 : vector<32x32xf32>
    %157 = arith.mulf %152, %154 : vector<32x32xf32>
    %158 = arith.addf %156, %157 : vector<32x32xf32>
    %159 = math.tanh %158 : vector<32x32xf32>
    %160 = arith.mulf %155, %159 : vector<32x32xf32>
    %161 = math.tanh %160 : vector<32x32xf32>
    %c192_45 = arith.constant 192 : index
    %c0_46 = arith.constant 0 : index
    %162 = vector.load %arg18[%c192_45, %c0_46] : memref<256x32xf32, #tpu.memory_space<vmem>>, vector<32x32xf32>
    tpu.vector_store %arg18[%c192_45, %c0_46], %161 {strides = array<i32>} : memref<256x32xf32, #tpu.memory_space<vmem>>, vector<32x32xf32>,
    %c224 = arith.constant 224 : index
    %c0_47 = arith.constant 0 : index
    %163 = vector.load %arg17[%c224, %c0_47] : memref<256x128xf32, #tpu.memory_space<vmem>>, vector<32x128xf32>
    %cst_48 = arith.constant dense<0.000000e+00> : vector<32x128xf32>
    %164 = tpu.matmul %160, %13, %cst_48 {dimension_numbers = #tpu.dot_dimension_numbers<[1], [0], [0], [1], [0, 0, 1, 1], [], []>} : vector<32x32xf32>, vector<32x128xf32>, vector<32x128xf32> -> vector<32x128xf32>
    %165 = arith.addf %163, %164 : vector<32x128xf32>
    %166 = arith.negf %165 : vector<32x128xf32>
    %167 = math.exp %166 : vector<32x128xf32>
    %cst_49 = arith.constant 1.000000e+00 : f32
    %168 = vector.broadcast %cst_49 : f32 to vector<32x128xf32>
    %169 = arith.addf %168, %167 : vector<32x128xf32>
    %170 = arith.divf %168, %169 : vector<32x128xf32>
    %171 = math.tanh %165 : vector<32x128xf32>
    %172 = arith.select %5, %171, %170 : vector<32x128xi1>, vector<32x128xf32>
    %173 = vector.extract_strided_slice %172 {offsets = [0, 0], sizes = [32, 32], strides = [1, 1]} : vector<32x128xf32> to vector<32x32xf32>
    %174 = vector.extract_strided_slice %172 {offsets = [0, 32], sizes = [32, 32], strides = [1, 1]} : vector<32x128xf32> to vector<32x32xf32>
    %175 = vector.extract_strided_slice %172 {offsets = [0, 64], sizes = [32, 32], strides = [1, 1]} : vector<32x128xf32> to vector<32x32xf32>
    %176 = vector.extract_strided_slice %172 {offsets = [0, 96], sizes = [32, 32], strides = [1, 1]} : vector<32x128xf32> to vector<32x32xf32>
    %177 = arith.mulf %174, %158 : vector<32x32xf32>
    %178 = arith.mulf %173, %175 : vector<32x32xf32>
    %179 = arith.addf %177, %178 : vector<32x32xf32>
    %180 = math.tanh %179 : vector<32x32xf32>
    %181 = arith.mulf %176, %180 : vector<32x32xf32>
    %182 = math.tanh %181 : vector<32x32xf32>
    %c224_50 = arith.constant 224 : index
    %c0_51 = arith.constant 0 : index
    %183 = vector.load %arg18[%c224_50, %c0_51] : memref<256x32xf32, #tpu.memory_space<vmem>>, vector<32x32xf32>
    tpu.vector_store %arg18[%c224_50, %c0_51], %182 {strides = array<i32>} : memref<256x32xf32, #tpu.memory_space<vmem>>, vector<32x32xf32>,
    %c0_52 = arith.constant 0 : index
    %c0_53 = arith.constant 0 : index
    %184 = vector.load %arg18[%c0_52, %c0_53] : memref<256x32xf32, #tpu.memory_space<vmem>>, vector<256x32xf32>
    %c0_54 = arith.constant 0 : index
    %c0_55 = arith.constant 0 : index
    %185 = vector.load %arg4[%c0_54, %c0_55] : memref<32x128xf32, #tpu.memory_space<vmem>>, vector<32x128xf32>
    %cst_56 = arith.constant dense<0.000000e+00> : vector<256x128xf32>
    %186 = tpu.matmul %184, %185, %cst_56 {dimension_numbers = #tpu.dot_dimension_numbers<[1], [0], [0], [1], [0, 0, 1, 1], [], []>} : vector<256x32xf32>, vector<32x128xf32>, vector<256x128xf32> -> vector<256x128xf32>
    %c0_57 = arith.constant 0 : index
    %c0_58 = arith.constant 0 : index
    %187 = vector.load %arg6[%c0_57, %c0_58] : memref<1x128xf32, #tpu.memory_space<vmem>>, vector<1x128xf32>
    %188 = vector.broadcast %187 : vector<1x128xf32> to vector<256x128xf32>
    %189 = arith.addf %186, %188 : vector<256x128xf32>
    %c0_59 = arith.constant 0 : index
    %c0_60 = arith.constant 0 : index
    %190 = vector.load %arg17[%c0_59, %c0_60] : memref<256x128xf32, #tpu.memory_space<vmem>>, vector<256x128xf32>
    tpu.vector_store %arg17[%c0_59, %c0_60], %189 {strides = array<i32>} : memref<256x128xf32, #tpu.memory_space<vmem>>, vector<256x128xf32>,
    %c0_61 = arith.constant 0 : index
    %c0_62 = arith.constant 0 : index
    %191 = vector.load %arg5[%c0_61, %c0_62] : memref<32x128xf32, #tpu.memory_space<vmem>>, vector<32x128xf32>
    %cst_63 = arith.constant 0.000000e+00 : f32
    %192 = vector.broadcast %cst_63 : f32 to vector<32x32xf32>
    %cst_64 = arith.constant 0.000000e+00 : f32
    %193 = vector.broadcast %cst_64 : f32 to vector<32x32xf32>
    %c0_65 = arith.constant 0 : index
    %c0_66 = arith.constant 0 : index
    %194 = vector.load %arg17[%c0_65, %c0_66] : memref<256x128xf32, #tpu.memory_space<vmem>>, vector<32x128xf32>
    %cst_67 = arith.constant dense<0.000000e+00> : vector<32x128xf32>
    %195 = tpu.matmul %192, %191, %cst_67 {dimension_numbers = #tpu.dot_dimension_numbers<[1], [0], [0], [1], [0, 0, 1, 1], [], []>} : vector<32x32xf32>, vector<32x128xf32>, vector<32x128xf32> -> vector<32x128xf32>
    %196 = arith.addf %194, %195 : vector<32x128xf32>
    %197 = arith.negf %196 : vector<32x128xf32>
    %198 = math.exp %197 : vector<32x128xf32>
    %cst_68 = arith.constant 1.000000e+00 : f32
    %199 = vector.broadcast %cst_68 : f32 to vector<32x128xf32>
    %200 = arith.addf %199, %198 : vector<32x128xf32>
    %201 = arith.divf %199, %200 : vector<32x128xf32>
    %202 = math.tanh %196 : vector<32x128xf32>
    %203 = arith.select %5, %202, %201 : vector<32x128xi1>, vector<32x128xf32>
    %204 = vector.extract_strided_slice %203 {offsets = [0, 0], sizes = [32, 32], strides = [1, 1]} : vector<32x128xf32> to vector<32x32xf32>
    %205 = vector.extract_strided_slice %203 {offsets = [0, 32], sizes = [32, 32], strides = [1, 1]} : vector<32x128xf32> to vector<32x32xf32>
    %206 = vector.extract_strided_slice %203 {offsets = [0, 64], sizes = [32, 32], strides = [1, 1]} : vector<32x128xf32> to vector<32x32xf32>
    %207 = vector.extract_strided_slice %203 {offsets = [0, 96], sizes = [32, 32], strides = [1, 1]} : vector<32x128xf32> to vector<32x32xf32>
    %208 = arith.mulf %205, %193 : vector<32x32xf32>
    %209 = arith.mulf %204, %206 : vector<32x32xf32>
    %210 = arith.addf %208, %209 : vector<32x32xf32>
    %211 = math.tanh %210 : vector<32x32xf32>
    %212 = arith.mulf %207, %211 : vector<32x32xf32>
    %c32_69 = arith.constant 32 : index
    %c0_70 = arith.constant 0 : index
    %213 = vector.load %arg17[%c32_69, %c0_70] : memref<256x128xf32, #tpu.memory_space<vmem>>, vector<32x128xf32>
    %cst_71 = arith.constant dense<0.000000e+00> : vector<32x128xf32>
    %214 = tpu.matmul %212, %191, %cst_71 {dimension_numbers = #tpu.dot_dimension_numbers<[1], [0], [0], [1], [0, 0, 1, 1], [], []>} : vector<32x32xf32>, vector<32x128xf32>, vector<32x128xf32> -> vector<32x128xf32>
    %215 = arith.addf %213, %214 : vector<32x128xf32>
    %216 = arith.negf %215 : vector<32x128xf32>
    %217 = math.exp %216 : vector<32x128xf32>
    %cst_72 = arith.constant 1.000000e+00 : f32
    %218 = vector.broadcast %cst_72 : f32 to vector<32x128xf32>
    %219 = arith.addf %218, %217 : vector<32x128xf32>
    %220 = arith.divf %218, %219 : vector<32x128xf32>
    %221 = math.tanh %215 : vector<32x128xf32>
    %222 = arith.select %5, %221, %220 : vector<32x128xi1>, vector<32x128xf32>
    %223 = vector.extract_strided_slice %222 {offsets = [0, 0], sizes = [32, 32], strides = [1, 1]} : vector<32x128xf32> to vector<32x32xf32>
    %224 = vector.extract_strided_slice %222 {offsets = [0, 32], sizes = [32, 32], strides = [1, 1]} : vector<32x128xf32> to vector<32x32xf32>
    %225 = vector.extract_strided_slice %222 {offsets = [0, 64], sizes = [32, 32], strides = [1, 1]} : vector<32x128xf32> to vector<32x32xf32>
    %226 = vector.extract_strided_slice %222 {offsets = [0, 96], sizes = [32, 32], strides = [1, 1]} : vector<32x128xf32> to vector<32x32xf32>
    %227 = arith.mulf %224, %210 : vector<32x32xf32>
    %228 = arith.mulf %223, %225 : vector<32x32xf32>
    %229 = arith.addf %227, %228 : vector<32x32xf32>
    %230 = math.tanh %229 : vector<32x32xf32>
    %231 = arith.mulf %226, %230 : vector<32x32xf32>
    %c64_73 = arith.constant 64 : index
    %c0_74 = arith.constant 0 : index
    %232 = vector.load %arg17[%c64_73, %c0_74] : memref<256x128xf32, #tpu.memory_space<vmem>>, vector<32x128xf32>
    %cst_75 = arith.constant dense<0.000000e+00> : vector<32x128xf32>
    %233 = tpu.matmul %231, %191, %cst_75 {dimension_numbers = #tpu.dot_dimension_numbers<[1], [0], [0], [1], [0, 0, 1, 1], [], []>} : vector<32x32xf32>, vector<32x128xf32>, vector<32x128xf32> -> vector<32x128xf32>
    %234 = arith.addf %232, %233 : vector<32x128xf32>
    %235 = arith.negf %234 : vector<32x128xf32>
    %236 = math.exp %235 : vector<32x128xf32>
    %cst_76 = arith.constant 1.000000e+00 : f32
    %237 = vector.broadcast %cst_76 : f32 to vector<32x128xf32>
    %238 = arith.addf %237, %236 : vector<32x128xf32>
    %239 = arith.divf %237, %238 : vector<32x128xf32>
    %240 = math.tanh %234 : vector<32x128xf32>
    %241 = arith.select %5, %240, %239 : vector<32x128xi1>, vector<32x128xf32>
    %242 = vector.extract_strided_slice %241 {offsets = [0, 0], sizes = [32, 32], strides = [1, 1]} : vector<32x128xf32> to vector<32x32xf32>
    %243 = vector.extract_strided_slice %241 {offsets = [0, 32], sizes = [32, 32], strides = [1, 1]} : vector<32x128xf32> to vector<32x32xf32>
    %244 = vector.extract_strided_slice %241 {offsets = [0, 64], sizes = [32, 32], strides = [1, 1]} : vector<32x128xf32> to vector<32x32xf32>
    %245 = vector.extract_strided_slice %241 {offsets = [0, 96], sizes = [32, 32], strides = [1, 1]} : vector<32x128xf32> to vector<32x32xf32>
    %246 = arith.mulf %243, %229 : vector<32x32xf32>
    %247 = arith.mulf %242, %244 : vector<32x32xf32>
    %248 = arith.addf %246, %247 : vector<32x32xf32>
    %249 = math.tanh %248 : vector<32x32xf32>
    %250 = arith.mulf %245, %249 : vector<32x32xf32>
    %c96_77 = arith.constant 96 : index
    %c0_78 = arith.constant 0 : index
    %251 = vector.load %arg17[%c96_77, %c0_78] : memref<256x128xf32, #tpu.memory_space<vmem>>, vector<32x128xf32>
    %cst_79 = arith.constant dense<0.000000e+00> : vector<32x128xf32>
    %252 = tpu.matmul %250, %191, %cst_79 {dimension_numbers = #tpu.dot_dimension_numbers<[1], [0], [0], [1], [0, 0, 1, 1], [], []>} : vector<32x32xf32>, vector<32x128xf32>, vector<32x128xf32> -> vector<32x128xf32>
    %253 = arith.addf %251, %252 : vector<32x128xf32>
    %254 = arith.negf %253 : vector<32x128xf32>
    %255 = math.exp %254 : vector<32x128xf32>
    %cst_80 = arith.constant 1.000000e+00 : f32
    %256 = vector.broadcast %cst_80 : f32 to vector<32x128xf32>
    %257 = arith.addf %256, %255 : vector<32x128xf32>
    %258 = arith.divf %256, %257 : vector<32x128xf32>
    %259 = math.tanh %253 : vector<32x128xf32>
    %260 = arith.select %5, %259, %258 : vector<32x128xi1>, vector<32x128xf32>
    %261 = vector.extract_strided_slice %260 {offsets = [0, 0], sizes = [32, 32], strides = [1, 1]} : vector<32x128xf32> to vector<32x32xf32>
    %262 = vector.extract_strided_slice %260 {offsets = [0, 32], sizes = [32, 32], strides = [1, 1]} : vector<32x128xf32> to vector<32x32xf32>
    %263 = vector.extract_strided_slice %260 {offsets = [0, 64], sizes = [32, 32], strides = [1, 1]} : vector<32x128xf32> to vector<32x32xf32>
    %264 = vector.extract_strided_slice %260 {offsets = [0, 96], sizes = [32, 32], strides = [1, 1]} : vector<32x128xf32> to vector<32x32xf32>
    %265 = arith.mulf %262, %248 : vector<32x32xf32>
    %266 = arith.mulf %261, %263 : vector<32x32xf32>
    %267 = arith.addf %265, %266 : vector<32x32xf32>
    %268 = math.tanh %267 : vector<32x32xf32>
    %269 = arith.mulf %264, %268 : vector<32x32xf32>
    %c128_81 = arith.constant 128 : index
    %c0_82 = arith.constant 0 : index
    %270 = vector.load %arg17[%c128_81, %c0_82] : memref<256x128xf32, #tpu.memory_space<vmem>>, vector<32x128xf32>
    %cst_83 = arith.constant dense<0.000000e+00> : vector<32x128xf32>
    %271 = tpu.matmul %269, %191, %cst_83 {dimension_numbers = #tpu.dot_dimension_numbers<[1], [0], [0], [1], [0, 0, 1, 1], [], []>} : vector<32x32xf32>, vector<32x128xf32>, vector<32x128xf32> -> vector<32x128xf32>
    %272 = arith.addf %270, %271 : vector<32x128xf32>
    %273 = arith.negf %272 : vector<32x128xf32>
    %274 = math.exp %273 : vector<32x128xf32>
    %cst_84 = arith.constant 1.000000e+00 : f32
    %275 = vector.broadcast %cst_84 : f32 to vector<32x128xf32>
    %276 = arith.addf %275, %274 : vector<32x128xf32>
    %277 = arith.divf %275, %276 : vector<32x128xf32>
    %278 = math.tanh %272 : vector<32x128xf32>
    %279 = arith.select %5, %278, %277 : vector<32x128xi1>, vector<32x128xf32>
    %280 = vector.extract_strided_slice %279 {offsets = [0, 0], sizes = [32, 32], strides = [1, 1]} : vector<32x128xf32> to vector<32x32xf32>
    %281 = vector.extract_strided_slice %279 {offsets = [0, 32], sizes = [32, 32], strides = [1, 1]} : vector<32x128xf32> to vector<32x32xf32>
    %282 = vector.extract_strided_slice %279 {offsets = [0, 64], sizes = [32, 32], strides = [1, 1]} : vector<32x128xf32> to vector<32x32xf32>
    %283 = vector.extract_strided_slice %279 {offsets = [0, 96], sizes = [32, 32], strides = [1, 1]} : vector<32x128xf32> to vector<32x32xf32>
    %284 = arith.mulf %281, %267 : vector<32x32xf32>
    %285 = arith.mulf %280, %282 : vector<32x32xf32>
    %286 = arith.addf %284, %285 : vector<32x32xf32>
    %287 = math.tanh %286 : vector<32x32xf32>
    %288 = arith.mulf %283, %287 : vector<32x32xf32>
    %c160_85 = arith.constant 160 : index
    %c0_86 = arith.constant 0 : index
    %289 = vector.load %arg17[%c160_85, %c0_86] : memref<256x128xf32, #tpu.memory_space<vmem>>, vector<32x128xf32>
    %cst_87 = arith.constant dense<0.000000e+00> : vector<32x128xf32>
    %290 = tpu.matmul %288, %191, %cst_87 {dimension_numbers = #tpu.dot_dimension_numbers<[1], [0], [0], [1], [0, 0, 1, 1], [], []>} : vector<32x32xf32>, vector<32x128xf32>, vector<32x128xf32> -> vector<32x128xf32>
    %291 = arith.addf %289, %290 : vector<32x128xf32>
    %292 = arith.negf %291 : vector<32x128xf32>
    %293 = math.exp %292 : vector<32x128xf32>
    %cst_88 = arith.constant 1.000000e+00 : f32
    %294 = vector.broadcast %cst_88 : f32 to vector<32x128xf32>
    %295 = arith.addf %294, %293 : vector<32x128xf32>
    %296 = arith.divf %294, %295 : vector<32x128xf32>
    %297 = math.tanh %291 : vector<32x128xf32>
    %298 = arith.select %5, %297, %296 : vector<32x128xi1>, vector<32x128xf32>
    %299 = vector.extract_strided_slice %298 {offsets = [0, 0], sizes = [32, 32], strides = [1, 1]} : vector<32x128xf32> to vector<32x32xf32>
    %300 = vector.extract_strided_slice %298 {offsets = [0, 32], sizes = [32, 32], strides = [1, 1]} : vector<32x128xf32> to vector<32x32xf32>
    %301 = vector.extract_strided_slice %298 {offsets = [0, 64], sizes = [32, 32], strides = [1, 1]} : vector<32x128xf32> to vector<32x32xf32>
    %302 = vector.extract_strided_slice %298 {offsets = [0, 96], sizes = [32, 32], strides = [1, 1]} : vector<32x128xf32> to vector<32x32xf32>
    %303 = arith.mulf %300, %286 : vector<32x32xf32>
    %304 = arith.mulf %299, %301 : vector<32x32xf32>
    %305 = arith.addf %303, %304 : vector<32x32xf32>
    %306 = math.tanh %305 : vector<32x32xf32>
    %307 = arith.mulf %302, %306 : vector<32x32xf32>
    %c192_89 = arith.constant 192 : index
    %c0_90 = arith.constant 0 : index
    %308 = vector.load %arg17[%c192_89, %c0_90] : memref<256x128xf32, #tpu.memory_space<vmem>>, vector<32x128xf32>
    %cst_91 = arith.constant dense<0.000000e+00> : vector<32x128xf32>
    %309 = tpu.matmul %307, %191, %cst_91 {dimension_numbers = #tpu.dot_dimension_numbers<[1], [0], [0], [1], [0, 0, 1, 1], [], []>} : vector<32x32xf32>, vector<32x128xf32>, vector<32x128xf32> -> vector<32x128xf32>
    %310 = arith.addf %308, %309 : vector<32x128xf32>
    %311 = arith.negf %310 : vector<32x128xf32>
    %312 = math.exp %311 : vector<32x128xf32>
    %cst_92 = arith.constant 1.000000e+00 : f32
    %313 = vector.broadcast %cst_92 : f32 to vector<32x128xf32>
    %314 = arith.addf %313, %312 : vector<32x128xf32>
    %315 = arith.divf %313, %314 : vector<32x128xf32>
    %316 = math.tanh %310 : vector<32x128xf32>
    %317 = arith.select %5, %316, %315 : vector<32x128xi1>, vector<32x128xf32>
    %318 = vector.extract_strided_slice %317 {offsets = [0, 0], sizes = [32, 32], strides = [1, 1]} : vector<32x128xf32> to vector<32x32xf32>
    %319 = vector.extract_strided_slice %317 {offsets = [0, 32], sizes = [32, 32], strides = [1, 1]} : vector<32x128xf32> to vector<32x32xf32>
    %320 = vector.extract_strided_slice %317 {offsets = [0, 64], sizes = [32, 32], strides = [1, 1]} : vector<32x128xf32> to vector<32x32xf32>
    %321 = vector.extract_strided_slice %317 {offsets = [0, 96], sizes = [32, 32], strides = [1, 1]} : vector<32x128xf32> to vector<32x32xf32>
    %322 = arith.mulf %319, %305 : vector<32x32xf32>
    %323 = arith.mulf %318, %320 : vector<32x32xf32>
    %324 = arith.addf %322, %323 : vector<32x32xf32>
    %325 = math.tanh %324 : vector<32x32xf32>
    %326 = arith.mulf %321, %325 : vector<32x32xf32>
    %c224_93 = arith.constant 224 : index
    %c0_94 = arith.constant 0 : index
    %327 = vector.load %arg17[%c224_93, %c0_94] : memref<256x128xf32, #tpu.memory_space<vmem>>, vector<32x128xf32>
    %cst_95 = arith.constant dense<0.000000e+00> : vector<32x128xf32>
    %328 = tpu.matmul %326, %191, %cst_95 {dimension_numbers = #tpu.dot_dimension_numbers<[1], [0], [0], [1], [0, 0, 1, 1], [], []>} : vector<32x32xf32>, vector<32x128xf32>, vector<32x128xf32> -> vector<32x128xf32>
    %329 = arith.addf %327, %328 : vector<32x128xf32>
    %330 = arith.negf %329 : vector<32x128xf32>
    %331 = math.exp %330 : vector<32x128xf32>
    %cst_96 = arith.constant 1.000000e+00 : f32
    %332 = vector.broadcast %cst_96 : f32 to vector<32x128xf32>
    %333 = arith.addf %332, %331 : vector<32x128xf32>
    %334 = arith.divf %332, %333 : vector<32x128xf32>
    %335 = math.tanh %329 : vector<32x128xf32>
    %336 = arith.select %5, %335, %334 : vector<32x128xi1>, vector<32x128xf32>
    %337 = vector.extract_strided_slice %336 {offsets = [0, 0], sizes = [32, 32], strides = [1, 1]} : vector<32x128xf32> to vector<32x32xf32>
    %338 = vector.extract_strided_slice %336 {offsets = [0, 32], sizes = [32, 32], strides = [1, 1]} : vector<32x128xf32> to vector<32x32xf32>
    %339 = vector.extract_strided_slice %336 {offsets = [0, 64], sizes = [32, 32], strides = [1, 1]} : vector<32x128xf32> to vector<32x32xf32>
    %340 = vector.extract_strided_slice %336 {offsets = [0, 96], sizes = [32, 32], strides = [1, 1]} : vector<32x128xf32> to vector<32x32xf32>
    %341 = arith.mulf %338, %324 : vector<32x32xf32>
    %342 = arith.mulf %337, %339 : vector<32x32xf32>
    %343 = arith.addf %341, %342 : vector<32x32xf32>
    %344 = math.tanh %343 : vector<32x32xf32>
    %345 = arith.mulf %340, %344 : vector<32x32xf32>
    %346 = math.tanh %345 : vector<32x32xf32>
    %c0_97 = arith.constant 0 : index
    %c0_98 = arith.constant 0 : index
    %347 = vector.load %arg10[%c0_97, %c0_98] : memref<1x2xf32, #tpu.memory_space<vmem>>, vector<1x1xf32>
    %348 = vector.extract %347[0, 0] : f32 from vector<1x1xf32>
    %c0_99 = arith.constant 0 : index
    %c1 = arith.constant 1 : index
    %349 = vector.load %arg10[%c0_99, %c1] : memref<1x2xf32, #tpu.memory_space<vmem>>, vector<1x1xf32>
    %350 = vector.extract %349[0, 0] : f32 from vector<1x1xf32>
    %c0_100 = arith.constant 0 : index
    %c0_101 = arith.constant 0 : index
    %351 = vector.load %arg7[%c0_100, %c0_101] : memref<32x64xf32, #tpu.memory_space<vmem>>, vector<32x64xf32>
    %cst_102 = arith.constant dense<0.000000e+00> : vector<32x64xf32>
    %352 = tpu.matmul %346, %351, %cst_102 {dimension_numbers = #tpu.dot_dimension_numbers<[1], [0], [0], [1], [0, 0, 1, 1], [], []>} : vector<32x32xf32>, vector<32x64xf32>, vector<32x64xf32> -> vector<32x64xf32>
    %c0_103 = arith.constant 0 : index
    %c0_104 = arith.constant 0 : index
    %353 = vector.load %arg8[%c0_103, %c0_104] : memref<1x64xf32, #tpu.memory_space<vmem>>, vector<1x64xf32>
    %354 = vector.broadcast %353 : vector<1x64xf32> to vector<32x64xf32>
    %355 = arith.addf %352, %354 : vector<32x64xf32>
    %c0_105 = arith.constant 0 : index
    %c0_106 = arith.constant 0 : index
    %356 = vector.load %arg9[%c0_105, %c0_106] : memref<32x64xf32, #tpu.memory_space<vmem>>, vector<32x64xf32>
    %cst_107 = arith.constant dense<0.000000e+00> : vector<32x64xf32>
    %357 = tpu.matmul %346, %356, %cst_107 {dimension_numbers = #tpu.dot_dimension_numbers<[1], [0], [0], [1], [0, 0, 1, 1], [], []>} : vector<32x32xf32>, vector<32x64xf32>, vector<32x64xf32> -> vector<32x64xf32>
    %358 = vector.extract_strided_slice %355 {offsets = [0, 0], sizes = [32, 32], strides = [1, 1]} : vector<32x64xf32> to vector<32x32xf32>
    %359 = vector.extract_strided_slice %355 {offsets = [0, 32], sizes = [32, 32], strides = [1, 1]} : vector<32x64xf32> to vector<32x32xf32>
    %360 = tpu.concatenate %358, %359 in 0 : vector<32x32xf32>, vector<32x32xf32> -> vector<64x32xf32>
    %361 = vector.extract_strided_slice %357 {offsets = [0, 0], sizes = [32, 32], strides = [1, 1]} : vector<32x64xf32> to vector<32x32xf32>
    %362 = vector.extract_strided_slice %357 {offsets = [0, 32], sizes = [32, 32], strides = [1, 1]} : vector<32x64xf32> to vector<32x32xf32>
    %363 = tpu.concatenate %361, %362 in 0 : vector<32x32xf32>, vector<32x32xf32> -> vector<64x32xf32>
    %364 = arith.mulf %360, %360 : vector<64x32xf32>
    %cst_108 = arith.constant dense<0.000000e+00> : vector<64xf32>
    %365 = vector.multi_reduction <add>, %364, %cst_108 [1] : vector<64x32xf32> to vector<64xf32>
    %366 = vector.shape_cast %365 : vector<64xf32> to vector<64x1xf32>
    %367 = math.sqrt %366 : vector<64x1xf32>
    %cst_109 = arith.constant 9.99999996E-13 : f32
    %368 = vector.broadcast %cst_109 : f32 to vector<64x1xf32>
    %369 = arith.maximumf %367, %368 : vector<64x1xf32>
    %370 = vector.broadcast %369 : vector<64x1xf32> to vector<64x32xf32>
    %371 = arith.divf %360, %370 : vector<64x32xf32>
    %372 = arith.mulf %363, %363 : vector<64x32xf32>
    %cst_110 = arith.constant dense<0.000000e+00> : vector<64xf32>
    %373 = vector.multi_reduction <add>, %372, %cst_110 [1] : vector<64x32xf32> to vector<64xf32>
    %374 = vector.shape_cast %373 : vector<64xf32> to vector<64x1xf32>
    %375 = math.sqrt %374 : vector<64x1xf32>
    %cst_111 = arith.constant 9.99999996E-13 : f32
    %376 = vector.broadcast %cst_111 : f32 to vector<64x1xf32>
    %377 = arith.maximumf %375, %376 : vector<64x1xf32>
    %378 = vector.broadcast %377 : vector<64x1xf32> to vector<64x32xf32>
    %379 = arith.divf %363, %378 : vector<64x32xf32>
    %380 = tpu.iota {dimensions = array<i32: 0>} : vector<64x64xi32>
    %381 = tpu.iota {dimensions = array<i32: 1>} : vector<64x64xi32>
    %382 = arith.cmpi eq, %380, %381 : vector<64x64xi32>
    %383 = arith.extui %382 : vector<64x64xi1> to vector<64x64xi32>
    %384 = arith.sitofp %383 : vector<64x64xi32> to vector<64x64xf32>
    %c0_112 = arith.constant 0 : index
    %c0_113 = arith.constant 0 : index
    %385 = vector.load %arg11[%c0_112, %c0_113] : memref<64x64xf32, #tpu.memory_space<vmem>>, vector<64x64xf32>
    %cst_114 = arith.constant dense<0.000000e+00> : vector<64x64xf32>
    %386 = tpu.matmul %379, %371, %cst_114 {dimension_numbers = #tpu.dot_dimension_numbers<[1], [1], [0], [0], [0, 0, 1, 0], [], []>} : vector<64x32xf32>, vector<64x32xf32>, vector<64x64xf32> -> vector<64x64xf32>
    %387 = arith.mulf %386, %385 : vector<64x64xf32>
    %388 = vector.broadcast %348 : f32 to vector<64x64xf32>
    %389 = arith.mulf %388, %384 : vector<64x64xf32>
    %390 = arith.addf %387, %389 : vector<64x64xf32>
    %cst_115 = arith.constant dense<0.000000e+00> : vector<64x32xf32>
    %391 = tpu.matmul %390, %363, %cst_115 {dimension_numbers = #tpu.dot_dimension_numbers<[0], [0], [1], [1], [0, 1, 1, 1], [], []>} : vector<64x64xf32>, vector<64x32xf32>, vector<64x32xf32> -> vector<64x32xf32>
    %392 = math.tanh %391 : vector<64x32xf32>
    %cst_116 = arith.constant dense<0.000000e+00> : vector<64xf32>
    %393 = vector.multi_reduction <add>, %392, %cst_116 [1] : vector<64x32xf32> to vector<64xf32>
    %394 = vector.shape_cast %393 : vector<64xf32> to vector<64x1xf32>
    %cst_117 = arith.constant 1.000000e+00 : f32
    %395 = vector.broadcast %cst_117 : f32 to vector<64x64xf32>
    %396 = arith.subf %385, %395 : vector<64x64xf32>
    %cst_118 = arith.constant 1.000000e+30 : f32
    %397 = vector.broadcast %cst_118 : f32 to vector<64x64xf32>
    %398 = arith.mulf %396, %397 : vector<64x64xf32>
    %399 = arith.addf %390, %398 : vector<64x64xf32>
    %cst_119 = arith.constant dense<0xFF800000> : vector<64xf32>
    %400 = vector.multi_reduction <maximumf>, %399, %cst_119 [1] : vector<64x64xf32> to vector<64xf32>
    %401 = vector.shape_cast %400 : vector<64xf32> to vector<64x1xf32>
    %402 = vector.broadcast %401 : vector<64x1xf32> to vector<64x64xf32>
    %403 = arith.subf %399, %402 : vector<64x64xf32>
    %404 = math.exp %403 : vector<64x64xf32>
    %cst_120 = arith.constant dense<0.000000e+00> : vector<64xf32>
    %405 = vector.multi_reduction <add>, %404, %cst_120 [1] : vector<64x64xf32> to vector<64xf32>
    %406 = vector.shape_cast %405 : vector<64xf32> to vector<64x1xf32>
    %407 = vector.broadcast %406 : vector<64x1xf32> to vector<64x64xf32>
    %408 = arith.divf %404, %407 : vector<64x64xf32>
    %cst_121 = arith.constant 0.000000e+00 : f32
    %409 = vector.broadcast %cst_121 : f32 to vector<32x32xf32>
    %410 = vector.extract_strided_slice %408 {offsets = [0, 0], sizes = [32, 32], strides = [1, 1]} : vector<64x64xf32> to vector<32x32xf32>
    %411 = arith.addf %409, %410 : vector<32x32xf32>
    %412 = vector.extract_strided_slice %408 {offsets = [32, 32], sizes = [32, 32], strides = [1, 1]} : vector<64x64xf32> to vector<32x32xf32>
    %413 = arith.addf %411, %412 : vector<32x32xf32>
    %cst_122 = arith.constant 5.000000e-01 : f32
    %414 = vector.broadcast %cst_122 : f32 to vector<32x32xf32>
    %415 = arith.mulf %413, %414 : vector<32x32xf32>
    %416 = vector.extract_strided_slice %394 {offsets = [0, 0], sizes = [16, 1], strides = [1, 1]} : vector<64x1xf32> to vector<16x1xf32>
    %417 = vector.shape_cast %416 : vector<16x1xf32> to vector<1x16x1xf32>
    %cst_123 = arith.constant dense<0.000000e+00> : vector<1xf32>
    %418 = vector.multi_reduction <add>, %417, %cst_123 [1, 2] : vector<1x16x1xf32> to vector<1xf32>
    %419 = vector.shape_cast %418 : vector<1xf32> to vector<1x1x1xf32>
    %420 = vector.extract %419[0, 0, 0] : f32 from vector<1x1x1xf32>
    %cst_124 = arith.constant 0.000000e+00 : f32
    %421 = arith.addf %cst_124, %420 : f32
    %422 = vector.extract_strided_slice %394 {offsets = [32, 0], sizes = [16, 1], strides = [1, 1]} : vector<64x1xf32> to vector<16x1xf32>
    %423 = vector.shape_cast %422 : vector<16x1xf32> to vector<1x16x1xf32>
    %cst_125 = arith.constant dense<0.000000e+00> : vector<1xf32>
    %424 = vector.multi_reduction <add>, %423, %cst_125 [1, 2] : vector<1x16x1xf32> to vector<1xf32>
    %425 = vector.shape_cast %424 : vector<1xf32> to vector<1x1x1xf32>
    %426 = vector.extract %425[0, 0, 0] : f32 from vector<1x1x1xf32>
    %427 = arith.addf %421, %426 : f32
    %cst_126 = arith.constant 9.765625E-4 : f32
    %428 = arith.mulf %427, %cst_126 : f32
    %429 = arith.negf %428 : f32
    %430 = math.exp %429 : f32
    %cst_127 = arith.constant 1.000000e+00 : f32
    %431 = arith.addf %cst_127, %430 : f32
    %432 = arith.divf %cst_127, %431 : f32
    %cst_128 = arith.constant 1.000000e+00 : f32
    %433 = vector.broadcast %cst_128 : f32 to vector<3x16xf32>
    %434 = vector.broadcast %432 : f32 to vector<3x16xf32>
    %435 = arith.mulf %434, %433 : vector<3x16xf32>
    %c0_129 = arith.constant 0 : index
    %c0_130 = arith.constant 0 : index
    %c0_131 = arith.constant 0 : index
    %436 = vector.load %arg14[%c0_129, %c0_130, %c0_131] : memref<2x3x16xf32, #tpu.memory_space<vmem>>, vector<1x3x16xf32>
    %437 = vector.shape_cast %436 : vector<1x3x16xf32> to vector<3x16xf32>
    %438 = vector.shape_cast %435 : vector<3x16xf32> to vector<1x3x16xf32>
    tpu.vector_store %arg14[%c0_129, %c0_130, %c0_131], %438 {strides = array<i32>} : memref<2x3x16xf32, #tpu.memory_space<vmem>>, vector<1x3x16xf32>,
    %439 = vector.extract_strided_slice %394 {offsets = [16, 0], sizes = [16, 1], strides = [1, 1]} : vector<64x1xf32> to vector<16x1xf32>
    %440 = vector.shape_cast %439 : vector<16x1xf32> to vector<1x16x1xf32>
    %cst_132 = arith.constant dense<0.000000e+00> : vector<1xf32>
    %441 = vector.multi_reduction <add>, %440, %cst_132 [1, 2] : vector<1x16x1xf32> to vector<1xf32>
    %442 = vector.shape_cast %441 : vector<1xf32> to vector<1x1x1xf32>
    %443 = vector.extract %442[0, 0, 0] : f32 from vector<1x1x1xf32>
    %cst_133 = arith.constant 0.000000e+00 : f32
    %444 = arith.addf %cst_133, %443 : f32
    %445 = vector.extract_strided_slice %394 {offsets = [48, 0], sizes = [16, 1], strides = [1, 1]} : vector<64x1xf32> to vector<16x1xf32>
    %446 = vector.shape_cast %445 : vector<16x1xf32> to vector<1x16x1xf32>
    %cst_134 = arith.constant dense<0.000000e+00> : vector<1xf32>
    %447 = vector.multi_reduction <add>, %446, %cst_134 [1, 2] : vector<1x16x1xf32> to vector<1xf32>
    %448 = vector.shape_cast %447 : vector<1xf32> to vector<1x1x1xf32>
    %449 = vector.extract %448[0, 0, 0] : f32 from vector<1x1x1xf32>
    %450 = arith.addf %444, %449 : f32
    %cst_135 = arith.constant 9.765625E-4 : f32
    %451 = arith.mulf %450, %cst_135 : f32
    %452 = arith.negf %451 : f32
    %453 = math.exp %452 : f32
    %cst_136 = arith.constant 1.000000e+00 : f32
    %454 = arith.addf %cst_136, %453 : f32
    %455 = arith.divf %cst_136, %454 : f32
    %cst_137 = arith.constant 1.000000e+00 : f32
    %456 = vector.broadcast %cst_137 : f32 to vector<3x16xf32>
    %457 = vector.broadcast %455 : f32 to vector<3x16xf32>
    %458 = arith.mulf %457, %456 : vector<3x16xf32>
    %c1_138 = arith.constant 1 : index
    %c0_139 = arith.constant 0 : index
    %c0_140 = arith.constant 0 : index
    %459 = vector.load %arg14[%c1_138, %c0_139, %c0_140] : memref<2x3x16xf32, #tpu.memory_space<vmem>>, vector<1x3x16xf32>
    %460 = vector.shape_cast %459 : vector<1x3x16xf32> to vector<3x16xf32>
    %461 = vector.shape_cast %458 : vector<3x16xf32> to vector<1x3x16xf32>
    tpu.vector_store %arg14[%c1_138, %c0_139, %c0_140], %461 {strides = array<i32>} : memref<2x3x16xf32, #tpu.memory_space<vmem>>, vector<1x3x16xf32>,
    %c0_141 = arith.constant 0 : index
    %c0_142 = arith.constant 0 : index
    %462 = vector.load %arg12[%c0_141, %c0_142] : memref<32x32xf32, #tpu.memory_space<vmem>>, vector<32x32xf32>
    %463 = math.absf %350 : f32
    %cst_143 = arith.constant 1.000000e+04 : f32
    %464 = arith.mulf %cst_143, %463 : f32
    %465 = vector.broadcast %464 : f32 to vector<32x32xf32>
    %466 = arith.divf %462, %465 : vector<32x32xf32>
    %cst_144 = arith.constant dense<0.000000e+00> : vector<32x32xf32>
    %467 = tpu.matmul %415, %466, %cst_144 {dimension_numbers = #tpu.dot_dimension_numbers<[1], [0], [0], [1], [0, 0, 1, 1], [], []>} : vector<32x32xf32>, vector<32x32xf32>, vector<32x32xf32> -> vector<32x32xf32>
    %cst_145 = arith.constant dense<0.000000e+00> : vector<32x32xf32>
    %468 = tpu.matmul %467, %467, %cst_145 {dimension_numbers = #tpu.dot_dimension_numbers<[1], [1], [0], [0], [0, 0, 1, 0], [], []>} : vector<32x32xf32>, vector<32x32xf32>, vector<32x32xf32> -> vector<32x32xf32>
    %469 = tpu.transpose %468, [1, 0] : vector<32x32xf32> -> vector<32x32xf32>
    %470 = arith.addf %468, %469 : vector<32x32xf32>
    %cst_146 = arith.constant 5.000000e-01 : f32
    %471 = vector.broadcast %cst_146 : f32 to vector<32x32xf32>
    %472 = arith.mulf %470, %471 : vector<32x32xf32>
    %c0_147 = arith.constant 0 : index
    %c0_148 = arith.constant 0 : index
    %473 = vector.load %arg13[%c0_147, %c0_148] : memref<4x32xf32, #tpu.memory_space<vmem>>, vector<4x32xf32>
    %474 = vector.extract_strided_slice %473 {offsets = [0, 0], sizes = [1, 32], strides = [1, 1]} : vector<4x32xf32> to vector<1x32xf32>
    %475 = vector.extract_strided_slice %473 {offsets = [1, 0], sizes = [1, 32], strides = [1, 1]} : vector<4x32xf32> to vector<1x32xf32>
    %476 = vector.extract_strided_slice %473 {offsets = [2, 0], sizes = [1, 32], strides = [1, 1]} : vector<4x32xf32> to vector<1x32xf32>
    %477 = vector.extract_strided_slice %473 {offsets = [3, 0], sizes = [1, 32], strides = [1, 1]} : vector<4x32xf32> to vector<1x32xf32>
    %478 = arith.addf %474, %475 : vector<1x32xf32>
    %479 = arith.addf %478, %476 : vector<1x32xf32>
    %480 = arith.addf %479, %477 : vector<1x32xf32>
    %481 = vector.broadcast %480 : vector<1x32xf32> to vector<32x32xf32>
    %482 = arith.divf %472, %481 : vector<32x32xf32>
    %483 = vector.extract_strided_slice %482 {offsets = [0, 0], sizes = [16, 16], strides = [1, 1]} : vector<32x32xf32> to vector<16x16xf32>
    %c0_149 = arith.constant 0 : index
    %c0_150 = arith.constant 0 : index
    %c0_151 = arith.constant 0 : index
    %484 = vector.load %arg16[%c0_149, %c0_150, %c0_151] : memref<2x16x16xf32, #tpu.memory_space<vmem>>, vector<1x16x16xf32>
    %485 = vector.shape_cast %484 : vector<1x16x16xf32> to vector<16x16xf32>
    %486 = vector.shape_cast %483 : vector<16x16xf32> to vector<1x16x16xf32>
    tpu.vector_store %arg16[%c0_149, %c0_150, %c0_151], %486 {strides = array<i32>} : memref<2x16x16xf32, #tpu.memory_space<vmem>>, vector<1x16x16xf32>,
    %487 = vector.extract_strided_slice %482 {offsets = [16, 16], sizes = [16, 16], strides = [1, 1]} : vector<32x32xf32> to vector<16x16xf32>
    %c1_152 = arith.constant 1 : index
    %c0_153 = arith.constant 0 : index
    %c0_154 = arith.constant 0 : index
    %488 = vector.load %arg16[%c1_152, %c0_153, %c0_154] : memref<2x16x16xf32, #tpu.memory_space<vmem>>, vector<1x16x16xf32>
    %489 = vector.shape_cast %488 : vector<1x16x16xf32> to vector<16x16xf32>
    %490 = vector.shape_cast %487 : vector<16x16xf32> to vector<1x16x16xf32>
    tpu.vector_store %arg16[%c1_152, %c0_153, %c0_154], %490 {strides = array<i32>} : memref<2x16x16xf32, #tpu.memory_space<vmem>>, vector<1x16x16xf32>,
    %491 = tpu.iota {dimensions = array<i32: 1>} : vector<1x32xi32>
    %cst_155 = arith.constant 0.000000e+00 : f32
    %492 = vector.broadcast %cst_155 : f32 to vector<1x32xf32>
    %c0_i32 = arith.constant 0 : i32
    %493 = vector.broadcast %c0_i32 : i32 to vector<1x32xi32>
    %494 = arith.cmpi sge, %491, %493 : vector<1x32xi32>
    %c16_i32 = arith.constant 16 : i32
    %495 = vector.broadcast %c16_i32 : i32 to vector<1x32xi32>
    %496 = arith.cmpi slt, %491, %495 : vector<1x32xi32>
    %497 = arith.andi %494, %496 : vector<1x32xi1>
    %498 = vector.broadcast %432 : f32 to vector<1x32xf32>
    %499 = arith.select %497, %498, %492 : vector<1x32xi1>, vector<1x32xf32>
    %c16_i32_156 = arith.constant 16 : i32
    %500 = vector.broadcast %c16_i32_156 : i32 to vector<1x32xi32>
    %501 = arith.cmpi sge, %491, %500 : vector<1x32xi32>
    %c32_i32 = arith.constant 32 : i32
    %502 = vector.broadcast %c32_i32 : i32 to vector<1x32xi32>
    %503 = arith.cmpi slt, %491, %502 : vector<1x32xi32>
    %504 = arith.andi %501, %503 : vector<1x32xi1>
    %505 = vector.broadcast %455 : f32 to vector<1x32xf32>
    %506 = arith.select %504, %505, %499 : vector<1x32xi1>, vector<1x32xf32>
    %cst_157 = arith.constant dense<0.000000e+00> : vector<1x32xf32>
    %507 = tpu.matmul %476, %482, %cst_157 {dimension_numbers = #tpu.dot_dimension_numbers<[1], [0], [0], [1], [0, 0, 1, 1], [], []>} : vector<1x32xf32>, vector<32x32xf32>, vector<1x32xf32> -> vector<1x32xf32>
    %508 = arith.mulf %506, %507 : vector<1x32xf32>
    %509 = arith.divf %474, %480 : vector<1x32xf32>
    %510 = arith.mulf %508, %509 : vector<1x32xf32>
    %511 = arith.subf %474, %510 : vector<1x32xf32>
    %512 = arith.addf %475, %510 : vector<1x32xf32>
    %cst_158 = arith.constant 0.15384616 : f32
    %513 = vector.broadcast %cst_158 : f32 to vector<1x32xf32>
    %514 = arith.mulf %513, %475 : vector<1x32xf32>
    %515 = arith.subf %512, %514 : vector<1x32xf32>
    %cst_159 = arith.constant 0.15384616 : f32
    %516 = vector.broadcast %cst_159 : f32 to vector<1x32xf32>
    %517 = arith.mulf %516, %475 : vector<1x32xf32>
    %518 = arith.addf %476, %517 : vector<1x32xf32>
    %cst_160 = arith.constant 2.500000e-01 : f32
    %519 = vector.broadcast %cst_160 : f32 to vector<1x32xf32>
    %520 = arith.mulf %519, %476 : vector<1x32xf32>
    %521 = arith.subf %518, %520 : vector<1x32xf32>
    %cst_161 = arith.constant 2.500000e-01 : f32
    %522 = vector.broadcast %cst_161 : f32 to vector<1x32xf32>
    %523 = arith.mulf %522, %476 : vector<1x32xf32>
    %524 = arith.addf %477, %523 : vector<1x32xf32>
    %cst_162 = arith.constant dense<0.000000e+00> : vector<1x32xf32>
    %525 = tpu.matmul %521, %482, %cst_162 {dimension_numbers = #tpu.dot_dimension_numbers<[1], [0], [0], [1], [0, 0, 1, 1], [], []>} : vector<1x32xf32>, vector<32x32xf32>, vector<1x32xf32> -> vector<1x32xf32>
    %526 = arith.mulf %506, %525 : vector<1x32xf32>
    %527 = arith.divf %511, %480 : vector<1x32xf32>
    %528 = arith.mulf %526, %527 : vector<1x32xf32>
    %529 = arith.subf %511, %528 : vector<1x32xf32>
    %530 = arith.addf %515, %528 : vector<1x32xf32>
    %cst_163 = arith.constant 0.15384616 : f32
    %531 = vector.broadcast %cst_163 : f32 to vector<1x32xf32>
    %532 = arith.mulf %531, %515 : vector<1x32xf32>
    %533 = arith.subf %530, %532 : vector<1x32xf32>
    %cst_164 = arith.constant 0.15384616 : f32
    %534 = vector.broadcast %cst_164 : f32 to vector<1x32xf32>
    %535 = arith.mulf %534, %515 : vector<1x32xf32>
    %536 = arith.addf %521, %535 : vector<1x32xf32>
    %cst_165 = arith.constant 2.500000e-01 : f32
    %537 = vector.broadcast %cst_165 : f32 to vector<1x32xf32>
    %538 = arith.mulf %537, %521 : vector<1x32xf32>
    %539 = arith.subf %536, %538 : vector<1x32xf32>
    %cst_166 = arith.constant 2.500000e-01 : f32
    %540 = vector.broadcast %cst_166 : f32 to vector<1x32xf32>
    %541 = arith.mulf %540, %521 : vector<1x32xf32>
    %542 = arith.addf %524, %541 : vector<1x32xf32>
    %cst_167 = arith.constant dense<0.000000e+00> : vector<1x32xf32>
    %543 = tpu.matmul %539, %482, %cst_167 {dimension_numbers = #tpu.dot_dimension_numbers<[1], [0], [0], [1], [0, 0, 1, 1], [], []>} : vector<1x32xf32>, vector<32x32xf32>, vector<1x32xf32> -> vector<1x32xf32>
    %544 = arith.mulf %506, %543 : vector<1x32xf32>
    %545 = arith.divf %529, %480 : vector<1x32xf32>
    %546 = arith.mulf %544, %545 : vector<1x32xf32>
    %547 = arith.subf %529, %546 : vector<1x32xf32>
    %548 = arith.addf %533, %546 : vector<1x32xf32>
    %cst_168 = arith.constant 0.15384616 : f32
    %549 = vector.broadcast %cst_168 : f32 to vector<1x32xf32>
    %550 = arith.mulf %549, %533 : vector<1x32xf32>
    %551 = arith.subf %548, %550 : vector<1x32xf32>
    %cst_169 = arith.constant 0.15384616 : f32
    %552 = vector.broadcast %cst_169 : f32 to vector<1x32xf32>
    %553 = arith.mulf %552, %533 : vector<1x32xf32>
    %554 = arith.addf %539, %553 : vector<1x32xf32>
    %cst_170 = arith.constant 2.500000e-01 : f32
    %555 = vector.broadcast %cst_170 : f32 to vector<1x32xf32>
    %556 = arith.mulf %555, %539 : vector<1x32xf32>
    %557 = arith.subf %554, %556 : vector<1x32xf32>
    %cst_171 = arith.constant 2.500000e-01 : f32
    %558 = vector.broadcast %cst_171 : f32 to vector<1x32xf32>
    %559 = arith.mulf %558, %539 : vector<1x32xf32>
    %560 = arith.addf %542, %559 : vector<1x32xf32>
    %561 = tpu.concatenate %511, %515, %521, %524, %529, %533, %539, %542, %547, %551, %557, %560 in 0 : vector<1x32xf32>, vector<1x32xf32>, vector<1x32xf32>, vector<1x32xf32>, vector<1x32xf32>, vector<1x32xf32>, vector<1x32xf32>, vector<1x32xf32>, vector<1x32xf32>, vector<1x32xf32>, vector<1x32xf32>, vector<1x32xf32> -> vector<12x32xf32>
    %c0_172 = arith.constant 0 : index
    %c0_173 = arith.constant 0 : index
    %562 = vector.load %arg15[%c0_172, %c0_173] : memref<12x32xf32, #tpu.memory_space<vmem>>, vector<12x32xf32>
    tpu.vector_store %arg15[%c0_172, %c0_173], %561 {strides = array<i32>} : memref<12x32xf32, #tpu.memory_space<vmem>>, vector<12x32xf32>,
    return
  }
}

</mosaic_0001>

<bundles_post_ra>
// kernel: model_forward.1
= control target key start
LH: loop header
LB: loop body
LE: loop exit
PB: predicated region body
PF: predicated region fallthrough
CT: control target
= control target key end

     0   :  { %s10184_s0 = inlined_call_operand.vmem [shape: f32[256,4], index: 0, kind: input, shape index: {}]   ;;  %s10185_s1 = inlined_call_operand.vmem [shape: f32[4,128], index: 1, kind: input, shape index: {}]   ;;  %s10186_s2 = inlined_call_operand.vmem [shape: f32[32,128], index: 2, kind: input, shape index: {}]   ;;  %s10187_s3 = inlined_call_operand.vmem [shape: f32[1,128], index: 3, kind: input, shape index: {}]   ;;  %s10188_s4 = inlined_call_operand.vmem [shape: f32[32,128], index: 4, kind: input, shape index: {}]   ;;  %s10189_s5 = inlined_call_operand.vmem [shape: f32[32,128], index: 5, kind: input, shape index: {}]   ;;  %s10190_s6 = inlined_call_operand.vmem [shape: f32[1,128], index: 6, kind: input, shape index: {}]   ;;  %s10191_s7 = inlined_call_operand.vmem [shape: f32[32,64], index: 7, kind: input, shape index: {}]   ;;  %s10192_s8 = inlined_call_operand.vmem [shape: f32[1,64], index: 8, kind: input, shape index: {}]   ;;  %s10193_s9 = inlined_call_operand.vmem [shape: f32[32,64], index: 9, kind: input, shape index: {}]   ;;  %s10194_s10 = inlined_call_operand.vmem [shape: f32[1,2], index: 10, kind: input, shape index: {}]   ;;  %s10195_s11 = inlined_call_operand.vmem [shape: f32[64,64], index: 11, kind: input, shape index: {}]   ;;  %s10196_s12 = inlined_call_operand.vmem [shape: f32[32,32], index: 12, kind: input, shape index: {}]   ;;  %s10197_s13 = inlined_call_operand.vmem [shape: f32[4,32], index: 13, kind: input, shape index: {}]   ;;  %s10198_s14 = inlined_call_operand.vmem [shape: f32[2,3,16], index: 14, kind: output, shape index: {0}]   ;;  %s10199_s15 = inlined_call_operand.vmem [shape: f32[12,32], index: 15, kind: output, shape index: {1}]   ;;  %s10200_s16 = inlined_call_operand.hbm [shape: f32[2,16,16], index: 16, kind: output, shape index: {2}]  }
   0x1   :  { %10202 = sst [smem:[#allocation7_spill]] %s10184_s0 }
   0x2   :  { %v88_v0 = vld [vmem:[%s10185_s1] sm:$0xf]  ;;  %vm193_vm0 = vcmask 1043456   ;;  %s10203_s25 = sld [smem:[#allocation7_spill]]  ;;  %vm96_vm1 = vcmask 31744   ;;  %v455_v4 = vld [vmem:[%s10186_s2 + $0x8] sm:$0xff] }
   0x3   :  { %6677 = vmatprep.subr.msk.mxu0 %vm193_vm0, %v88_v0  ;;  %v454_v3 = vld [vmem:[%s10186_s2] sm:$0xff]  ;;  %v456_v9 = vld [vmem:[%s10186_s2 + $0x10] sm:$0xff]  ;;  %v457_v10 = vld [vmem:[%s10186_s2 + $0x18] sm:$0xff] }
   0x4   :  { %6678 = vmatpush3.msk.msra.mxu0 %vm193_vm0, %v88_v0  ;;  %v8394_v6 = vpack.c.bf16 %v455_v4, %v454_v3  ;;  %v8417_v12 = vpack.c.bf16 %v457_v10, %v456_v9 }
   0x6   :  { %7153 = vmatprep.subr.bf16.mxu0 %v8394_v6 }
   0x8   :  { %v56_v1 = vld [vmem:[%s10203_s25] sm:$0xff]  ;;  %v57_v2 = vld [vmem:[%s10203_s25 + $0x8] sm:$0xff]  ;;  %v58_v5 = vld [vmem:[%s10203_s25 + $0x10] sm:$0xff] }
   0x9   :  { %6679 = vmatprep.mubr.msk.f32.mxu0 %vm96_vm1, %v56_v1  ;;  %v59_v7 = vld [vmem:[%s10203_s25 + $0x18] sm:$0xff]  ;;  %v60_v8 = vld [vmem:[%s10203_s25 + $0x20] sm:$0xff]  ;;  %v61_v11 = vld [vmem:[%s10203_s25 + $0x28] sm:$0xff] }
   0xa   :  { %6680 = vmatmul.mubr.msk.f32.vlgmr.msra.gmra.mrb[0].mxu0 %vm96_vm1, %v57_v2  ;;  %v62_v13 = vld [vmem:[%s10203_s25 + $0x30] sm:$0xff]  ;;  %v63_v14 = vld [vmem:[%s10203_s25 + $0x38] sm:$0xff] }
   0xb   :  { %6682 = vmatprep.mubr.msk.f32.mxu0 %vm96_vm1, %v58_v5  ;;  %7155 = vmatpush3.bf16.msra.mxu0 %v8394_v6 }
   0xc   :  { %7157 = vmatprep.subr.bf16.mxu0 %v8417_v12 }
   0xe   :  { %6683 = vmatmul.mubr.msk.f32.gmra.mrb[2].mxu0 %vm96_vm1, %v59_v7 }
   0xf   :  { %6685 = vmatprep.mubr.msk.f32.mxu0 %vm96_vm1, %v60_v8  ;;  %7159 = vmatpush3.bf16.msra.mxu0 %v8417_v12 }
  0x12   :  { %6686 = vmatmul.mubr.msk.f32.gmra.mrb[4].mxu0 %vm96_vm1, %v61_v11 }
  0x13   :  { %6688 = vmatprep.mubr.msk.f32.mxu0 %vm96_vm1, %v62_v13 }
  0x14   :  { %22 = vsyncpa [#allocation5], 0  ;;  %v64_v15 = vld [vmem:[%s10203_s25 + $0x40] sm:$0xff]  ;;  %7161 = vmatprep.subr.bf16.mxu0 %v8394_v6  ;;  %v65_v16 = vld [vmem:[%s10203_s25 + $0x48] sm:$0xff]  ;;  %v8277_v39 = vmov 0.0   ;;  %v51_v55 = vlaneseq  ;;  %s8278_s17 = smov 64  }
  0x15   :  { %v66_v17 = vld [vmem:[%s10203_s25 + $0x50] sm:$0xff]  ;;  %v67_v18 = vld [vmem:[%s10203_s25 + $0x58] sm:$0xff]  ;;  %v68_v19 = vld [vmem:[%s10203_s25 + $0x60] sm:$0xff]  ;;  %s8279_s18 = smov 32   ;;  %vm462_vm5 = vcmask 261120   ;;  %s8284_s30 = smov 112  }
  0x16   :  { %6689 = vmatmul.mubr.msk.f32.gmra.mrb[6].mxu0 %vm96_vm1, %v63_v14  ;;  %v69_v20 = vld [vmem:[%s10203_s25 + $0x68] sm:$0xff]  ;;  %v70_v21 = vld [vmem:[%s10203_s25 + $0x70] sm:$0xff]  ;;  %v71_v22 = vld [vmem:[%s10203_s25 + $0x78] sm:$0xff]  ;;  %v8545_v60 = vand.u32 127, %v51_v55 }
  0x17   :  { %6691 = vmatprep.mubr.msk.f32.mxu0 %vm96_vm1, %v64_v15  ;;  %v72_v23 = vld [vmem:[%s10203_s25 + $0x80] sm:$0xff]  ;;  %v73_v24 = vld [vmem:[%s10203_s25 + $0x88] sm:$0xff]  ;;  %v74_v25 = vld [vmem:[%s10203_s25 + $0x90] sm:$0xff] }
  0x18   :  { %v75_v26 = vld [vmem:[%s10203_s25 + $0x98] sm:$0xff]  ;;  %v76_v27 = vld [vmem:[%s10203_s25 + $0xa0] sm:$0xff]  ;;  %v77_v28 = vld [vmem:[%s10203_s25 + $0xa8] sm:$0xff]  ;;  %vm53_vm2 = vcmp.ge.s32.totalorder %v8545_v60, 64  ;;  %vm54_vm3 = vcmp.lt.s32.totalorder %v8545_v60, 96 }
  0x19   :  { %v78_v29 = vld [vmem:[%s10203_s25 + $0xb0] sm:$0xff]  ;;  %v79_v30 = vld [vmem:[%s10203_s25 + $0xb8] sm:$0xff]  ;;  %v80_v31 = vld [vmem:[%s10203_s25 + $0xc0] sm:$0xff] }
  0x1a   :  { %6692 = vmatmul.mubr.msk.f32.gmra.mrb[8].mxu0 %vm96_vm1, %v65_v16  ;;  %v81_v32 = vld [vmem:[%s10203_s25 + $0xc8] sm:$0xff]  ;;  %v82_v33 = vld [vmem:[%s10203_s25 + $0xd0] sm:$0xff]  ;;  %v83_v34 = vld [vmem:[%s10203_s25 + $0xd8] sm:$0xff] }
  0x1b   :  { %6694 = vmatprep.mubr.msk.f32.mxu0 %vm96_vm1, %v66_v17  ;;  %v84_v35 = vld [vmem:[%s10203_s25 + $0xe0] sm:$0xff]  ;;  %v85_v36 = vld [vmem:[%s10203_s25 + $0xe8] sm:$0xff]  ;;  %v86_v37 = vld [vmem:[%s10203_s25 + $0xf0] sm:$0xff] }
  0x1c   :  { %v87_v38 = vld [vmem:[%s10203_s25 + $0xf8] sm:$0xff]  ;;  %v8538_v40 = vld [vmem:[%s10187_s3] ss:$0 sm:$0xff]  ;;  %vm8549_vm4 = vmand %vm53_vm2, %vm54_vm3 }
  0x1d   :  { %vm9780_vm14 = vmpackc.low %vm462_vm5, %vm462_vm5 }
  0x1e   :  { %6695 = vmatmul.mubr.msk.f32.gmra.mrb[10].mxu0 %vm96_vm1, %v67_v18 }
  0x1f   :  { %6697 = vmatprep.mubr.msk.f32.mxu0 %vm96_vm1, %v68_v19 }
  0x22   :  { %6698 = vmatmul.mubr.msk.f32.gmra.mrb[12].mxu0 %vm96_vm1, %v69_v20 }
  0x23   :  { %6700 = vmatprep.mubr.msk.f32.mxu0 %vm96_vm1, %v70_v21 }
  0x26   :  { %6701 = vmatmul.mubr.msk.f32.gmra.mrb[14].mxu0 %vm96_vm1, %v71_v22 }
  0x27   :  { %6703 = vmatprep.mubr.msk.f32.mxu0 %vm96_vm1, %v72_v23 }
  0x2a   :  { %6704 = vmatmul.mubr.msk.f32.gmra.mrb[16].mxu0 %vm96_vm1, %v73_v24 }
  0x2b   :  { %6706 = vmatprep.mubr.msk.f32.mxu0 %vm96_vm1, %v74_v25 }
  0x2e   :  { %6707 = vmatmul.mubr.msk.f32.gmra.mrb[18].mxu0 %vm96_vm1, %v75_v26 }
  0x2f   :  { %6709 = vmatprep.mubr.msk.f32.mxu0 %vm96_vm1, %v76_v27 }
  0x32   :  { %6710 = vmatmul.mubr.msk.f32.gmra.mrb[20].mxu0 %vm96_vm1, %v77_v28 }
  0x33   :  { %6712 = vmatprep.mubr.msk.f32.mxu0 %vm96_vm1, %v78_v29 }
  0x36   :  { %6713 = vmatmul.mubr.msk.f32.gmra.mrb[22].mxu0 %vm96_vm1, %v79_v30 }
  0x37   :  { %6715 = vmatprep.mubr.msk.f32.mxu0 %vm96_vm1, %v80_v31 }
  0x3a   :  { %6716 = vmatmul.mubr.msk.f32.gmra.mrb[24].mxu0 %vm96_vm1, %v81_v32 }
  0x3b   :  { %6718 = vmatprep.mubr.msk.f32.mxu0 %vm96_vm1, %v82_v33 }
  0x3e   :  { %6719 = vmatmul.mubr.msk.f32.gmra.mrb[26].mxu0 %vm96_vm1, %v83_v34 }
  0x3f   :  { %6721 = vmatprep.mubr.msk.f32.mxu0 %vm96_vm1, %v84_v35 }
  0x42   :  { %6722 = vmatmul.mubr.msk.f32.gmra.mrb[28].mxu0 %vm96_vm1, %v85_v36 }
  0x43   :  { %6724 = vmatprep.mubr.msk.f32.mxu0 %vm96_vm1, %v86_v37 }
  0x46   :  { %6725 = vmatmul.mubr.msk.f32.gmra.mrb[30].mxu0 %vm96_vm1, %v87_v38 }
  0x47   :  { %6735 = vmatprep.mubr.f32.mxu0 %v8277_v39 }
  0x4a   :  { %6736 = vmatmul.mubr.f32.vlgmr.msra.gmra.mrb[0].mxu0 %v8277_v39 }
  0x4b   :  { %6738 = vmatprep.mubr.f32.mxu0 %v8277_v39  ;;  %7163 = vmatpush3.bf16.msra.mxu0 %v8394_v6 }
  0x4c   :  { %7165 = vmatprep.subr.bf16.mxu0 %v8417_v12 }
  0x4e   :  { %6739 = vmatmul.mubr.f32.gmra.mrb[2].mxu0 %v8277_v39 }
  0x4f   :  { %7167 = vmatpush3.bf16.msra.mxu0 %v8417_v12 }
  0x50   :  { %7169 = vmatprep.subr.bf16.mxu0 %v8394_v6 }
 0x11d   :  { %v6737_v41 = vpop.f32.mrb[0].mxu0 }
 0x11e   :  { %v7382_v42 = vadd.f32 %v6737_v41, %v8538_v40  ;;  %v532_v43 = vpop.f32.mrb[1].mxu0 }
 0x11f   :  { %v7383_v44 = vadd.f32 %v8538_v40, %v532_v43 }
 0x120   :  { %v6184_v45 = vmul.f32 -1.442695, %v7382_v42 }
 0x121   :  { %v6183_v46 = vmul.f32 -1.442695, %v7383_v44  ;;  %v6740_v47 = vpop.f32.mrb[2].mxu0 }
 0x122   :  { %7541 = vpow2.f32 %v6184_v45  ;;  %v7384_v48 = vadd.f32 %v6740_v47, %v8538_v40  ;;  %v542_v49 = vpop.f32.mrb[3].mxu0 }
 0x123   :  { %7543 = vpow2.f32 %v6183_v46  ;;  %v7385_v50 = vadd.f32 %v8538_v40, %v542_v49 }
 0x124   :  { %v6186_v51 = vmul.f32 -1.442695, %v7384_v48 }
 0x125   :  { %v6185_v52 = vmul.f32 -1.442695, %v7385_v50 }
 0x126   :  { %7545 = vpow2.f32 %v6186_v51 }
 0x127   :  { %7547 = vpow2.f32 %v6185_v52 }
 0x128   :  { %7549 = vtanh.f32 %v7383_v44 }
 0x12c   :  { %v7542_v53 = vpop.eup %7541 }
 0x12d   :  { %v7544_v54 = vpop.eup %7543  ;;  %v568_v56 = vadd.f32 1.0, %v7542_v53 }
 0x12e   :  { %v567_v57 = vadd.f32 1.0, %v7544_v54 }
 0x130   :  { %v7546_v58 = vpop.eup %7545  ;;  %7551 = vrcp.f32 %v567_v57 }
 0x131   :  { %v7548_v59 = vpop.eup %7547  ;;  %7553 = vtanh.f32 %v7382_v42  ;;  %v570_v61 = vadd.f32 1.0, %v7546_v58 }
 0x132   :  { %7555 = vrcp.f32 %v568_v56  ;;  %v569_v62 = vadd.f32 1.0, %v7548_v59  ;;  %v7550_v0 = vpop.eup %7549 }
 0x133   :  { %7557 = vtanh.f32 %v7385_v50 }
 0x134   :  { %7559 = vrcp.f32 %v569_v62 }
 0x135   :  { %7561 = vrcp.f32 %v570_v61 }
 0x136   :  { %7563 = vtanh.f32 %v7384_v48 }
 0x13a   :  { %v7552_v1 = vpop.eup %7551 }
 0x13b   :  { %v7554_v2 = vpop.eup %7553  ;;  %v583_v3 = vsel %vm8549_vm4, %v7550_v0, %v7552_v1 }
 0x13c   :  { %v7556_v4 = vpop.eup %7555  ;;  %595 = vrot.lane.b32.xlu0 %v583_v3, %s8278_s17  ;;  %v587_v22 = vmul.f32 0.0, %v583_v3 }
 0x13d   :  { %v7558_v5 = vpop.eup %7557  ;;  %v584_v9 = vsel %vm8549_vm4, %v7554_v2, %v7556_v4 }
 0x13e   :  { %v7560_v7 = vpop.eup %7559  ;;  %v588_v25 = vmul.f32 0.0, %v584_v9 }
 0x13f   :  { %v585_v8 = vsel %vm8549_vm4, %v7558_v5, %v7560_v7  ;;  %v7562_v10 = vpop.eup %7561 }
 0x140   :  { %599 = vrot.lane.b32.xlu1 %v585_v8, %s8278_s17  ;;  %597 = vrot.lane.b32.xlu0 %v584_v9, %s8278_s17  ;;  %v7564_v11 = vpop.eup %7563  ;;  %v589_v26 = vmul.f32 0.0, %v585_v8 }
 0x141   :  { %v586_v13 = vsel %vm8549_vm4, %v7564_v11, %v7562_v10 }
 0x142   :  { %v590_v31 = vmul.f32 0.0, %v586_v13 }
 0x144   :  { %601 = vrot.lane.b32.xlu1 %v586_v13, %s8278_s17 }
 0x1ae   :  { %v596_v14 = vpop.permute.xlu0 %595 }
 0x1af   :  { %v607_v15 = vmul.f32 %v596_v14, %v583_v3 }
 0x1b1   :  { %615 = vrot.lane.b32.xlu0 %v607_v15, %s8279_s18 }
 0x1b2   :  { %v600_v16 = vpop.permute.xlu1 %599  ;;  %v598_v17 = vpop.permute.xlu0 %597 }
 0x1b3   :  { %v609_v18 = vmul.f32 %v600_v16, %v585_v8  ;;  %v608_v19 = vmul.f32 %v598_v17, %v584_v9 }
 0x1b5   :  { %619 = vrot.lane.b32.xlu0 %v609_v18, %s8279_s18  ;;  %617 = vrot.lane.b32.xlu1 %v608_v19, %s8279_s18 }
 0x1b6   :  { %v602_v20 = vpop.permute.xlu1 %601 }
 0x1b7   :  { %v610_v21 = vmul.f32 %v602_v20, %v586_v13 }
 0x1b9   :  { %621 = vrot.lane.b32.xlu1 %v610_v21, %s8279_s18 }
 0x223   :  { %v616_v23 = vpop.permute.xlu0 %615 }
 0x224   :  { %v8569_v24 = vadd.f32 %v616_v23, %v587_v22 }
 0x226   :  { %7565 = vtanh.f32 %v8569_v24 }
 0x227   :  { %v618_v27 = vpop.permute.xlu1 %617  ;;  %v620_v28 = vpop.permute.xlu0 %619 }
 0x228   :  { %v8572_v29 = vadd.f32 %v618_v27, %v588_v25  ;;  %v8574_v30 = vadd.f32 %v620_v28, %v589_v26 }
 0x22a   :  { %7567 = vtanh.f32 %v8572_v29 }
 0x22b   :  { %7569 = vtanh.f32 %v8574_v30  ;;  %v622_v32 = vpop.permute.xlu1 %621 }
 0x22c   :  { %v8578_v33 = vadd.f32 %v622_v32, %v590_v31 }
 0x22e   :  { %7571 = vtanh.f32 %v8578_v33 }
 0x230   :  { %v7566_v34 = vpop.eup %7565 }
 0x231   :  { %639 = vrot.lane.b32.xlu0 %v7566_v34, %s8278_s17 }
 0x234   :  { %v7568_v35 = vpop.eup %7567 }
 0x235   :  { %v7570_v36 = vpop.eup %7569  ;;  %641 = vrot.lane.b32.xlu1 %v7568_v35, %s8278_s17 }
 0x236   :  { %643 = vrot.lane.b32.xlu0 %v7570_v36, %s8278_s17 }
 0x238   :  { %v7572_v37 = vpop.eup %7571 }
 0x239   :  { %645 = vrot.lane.b32.xlu1 %v7572_v37, %s8278_s17 }
 0x2a3   :  { %v640_v38 = vpop.permute.xlu0 %639 }
 0x2a4   :  { %v8585_v41 = vmul.f32 %v640_v38, %v583_v3 }
 0x2a6   :  { %687 = vrot.lane.b32.xlu0 %v8585_v41, %s8279_s18 }
 0x2a7   :  { %v642_v42 = vpop.permute.xlu1 %641 }
 0x2a8   :  { %v8589_v43 = vmul.f32 %v642_v42, %v584_v9  ;;  %v644_v44 = vpop.permute.xlu0 %643 }
 0x2a9   :  { %v8591_v45 = vmul.f32 %v644_v44, %v585_v8 }
 0x2aa   :  { %689 = vrot.lane.b32.xlu1 %v8589_v43, %s8279_s18 }
 0x2ab   :  { %691 = vrot.lane.b32.xlu0 %v8591_v45, %s8279_s18  ;;  %v646_v46 = vpop.permute.xlu1 %645 }
 0x2ac   :  { %v8597_v47 = vmul.f32 %v646_v46, %v586_v13 }
 0x2ae   :  { %693 = vrot.lane.b32.xlu1 %v8597_v47, %s8279_s18 }
 0x318   :  { %v688_v48 = vpop.permute.xlu0 %687 }
 0x319   :  { %6749 = vmatprep.mubr.msk.f32.mxu0 %vm462_vm5, %v688_v48 }
 0x31c   :  { %v690_v49 = vpop.permute.xlu1 %689 }
 0x31d   :  { %v692_v50 = vpop.permute.xlu0 %691  ;;  %6750 = vmatmul.mubr.msk.f32.vlgmr.msra.gmra.mrb[4].mxu0 %vm462_vm5, %v690_v49 }
 0x31e   :  { %6752 = vmatprep.mubr.msk.f32.mxu0 %vm462_vm5, %v692_v50  ;;  %7171 = vmatpush3.bf16.msra.mxu0 %v8394_v6 }
 0x31f   :  { %7173 = vmatprep.subr.bf16.mxu0 %v8417_v12 }
 0x320   :  { %v694_v51 = vpop.permute.xlu1 %693 }
 0x321   :  { %6753 = vmatmul.mubr.msk.f32.gmra.mrb[6].mxu0 %vm462_vm5, %v694_v51 }
 0x322   :  { %7175 = vmatpush3.bf16.msra.mxu0 %v8417_v12 }
 0x323   :  { %7177 = vmatprep.subr.bf16.mxu0 %v8394_v6 }
 0x3f0   :  { %v6751_v52 = vpop.f32.mrb[4].mxu0 }
 0x3f1   :  { %v7386_v53 = vadd.f32 %v6751_v52, %v8538_v40  ;;  %v769_v54 = vpop.f32.mrb[5].mxu0 }
 0x3f2   :  { %v7387_v56 = vadd.f32 %v8538_v40, %v769_v54 }
 0x3f3   :  { %v6192_v57 = vmul.f32 -1.442695, %v7386_v53 }
 0x3f4   :  { %v6191_v58 = vmul.f32 -1.442695, %v7387_v56  ;;  %v6754_v59 = vpop.f32.mrb[6].mxu0 }
 0x3f5   :  { %7573 = vpow2.f32 %v6192_v57  ;;  %v7388_v61 = vadd.f32 %v6754_v59, %v8538_v40  ;;  %v779_v62 = vpop.f32.mrb[7].mxu0 }
 0x3f6   :  { %7575 = vpow2.f32 %v6191_v58  ;;  %v7389_v0 = vadd.f32 %v8538_v40, %v779_v62 }
 0x3f7   :  { %v6194_v1 = vmul.f32 -1.442695, %v7388_v61 }
 0x3f8   :  { %v6193_v2 = vmul.f32 -1.442695, %v7389_v0 }
 0x3f9   :  { %7577 = vpow2.f32 %v6194_v1 }
 0x3fa   :  { %7579 = vpow2.f32 %v6193_v2 }
 0x3fb   :  { %7581 = vtanh.f32 %v7386_v53 }
 0x3fc   :  { %7583 = vtanh.f32 %v7387_v56 }
 0x3ff   :  { %v7574_v3 = vpop.eup %7573 }
 0x400   :  { %v7576_v4 = vpop.eup %7575  ;;  %v805_v5 = vadd.f32 1.0, %v7574_v3 }
 0x401   :  { %v804_v7 = vadd.f32 1.0, %v7576_v4 }
 0x402   :  { %7585 = vrcp.f32 %v805_v5 }
 0x403   :  { %v7578_v8 = vpop.eup %7577  ;;  %7587 = vrcp.f32 %v804_v7 }
 0x404   :  { %v7580_v9 = vpop.eup %7579  ;;  %v807_v10 = vadd.f32 1.0, %v7578_v8  ;;  %7589 = vtanh.f32 %v7388_v61 }
 0x405   :  { %v806_v11 = vadd.f32 1.0, %v7580_v9  ;;  %7591 = vtanh.f32 %v7389_v0  ;;  %v7582_v13 = vpop.eup %7581 }
 0x406   :  { %7593 = vrcp.f32 %v807_v10  ;;  %v7584_v14 = vpop.eup %7583 }
 0x407   :  { %7595 = vrcp.f32 %v806_v11 }
 0x40c   :  { %v7586_v15 = vpop.eup %7585 }
 0x40d   :  { %v7588_v16 = vpop.eup %7587  ;;  %v821_v17 = vsel %vm8549_vm4, %v7582_v13, %v7586_v15 }
 0x40e   :  { %v7590_v18 = vpop.eup %7589  ;;  %834 = vrot.lane.b32.xlu1 %v821_v17, %s8278_s17  ;;  %v820_v19 = vsel %vm8549_vm4, %v7584_v14, %v7588_v16  ;;  %v825_v37 = vmul.f32 %v821_v17, %v8572_v29 }
 0x40f   :  { %v7592_v20 = vpop.eup %7591  ;;  %832 = vrot.lane.b32.xlu0 %v820_v19, %s8278_s17  ;;  %v824_v42 = vmul.f32 %v820_v19, %v8569_v24 }
 0x410   :  { %v7594_v21 = vpop.eup %7593 }
 0x411   :  { %v7596_v22 = vpop.eup %7595  ;;  %v823_v23 = vsel %vm8549_vm4, %v7590_v18, %v7594_v21 }
 0x412   :  { %838 = vrot.lane.b32.xlu1 %v823_v23, %s8278_s17  ;;  %v822_v25 = vsel %vm8549_vm4, %v7592_v20, %v7596_v22  ;;  %v827_v49 = vmul.f32 %v823_v23, %v8578_v33 }
 0x413   :  { %836 = vrot.lane.b32.xlu0 %v822_v25, %s8278_s17  ;;  %v826_v51 = vmul.f32 %v822_v25, %v8574_v30 }
 0x480   :  { %v835_v26 = vpop.permute.xlu1 %834 }
 0x481   :  { %v845_v27 = vmul.f32 %v835_v26, %v821_v17  ;;  %v833_v28 = vpop.permute.xlu0 %832 }
 0x482   :  { %v844_v31 = vmul.f32 %v833_v28, %v820_v19 }
 0x483   :  { %854 = vrot.lane.b32.xlu1 %v845_v27, %s8279_s18 }
 0x484   :  { %v839_v32 = vpop.permute.xlu1 %838  ;;  %852 = vrot.lane.b32.xlu0 %v844_v31, %s8279_s18 }
 0x485   :  { %v847_v34 = vmul.f32 %v839_v32, %v823_v23  ;;  %v837_v35 = vpop.permute.xlu0 %836 }
 0x486   :  { %v846_v36 = vmul.f32 %v837_v35, %v822_v25 }
 0x487   :  { %858 = vrot.lane.b32.xlu1 %v847_v34, %s8279_s18 }
 0x488   :  { %856 = vrot.lane.b32.xlu0 %v846_v36, %s8279_s18 }
 0x4f5   :  { %v855_v38 = vpop.permute.xlu1 %854 }
 0x4f6   :  { %v8631_v44 = vadd.f32 %v855_v38, %v825_v37  ;;  %v853_v46 = vpop.permute.xlu0 %852 }
 0x4f7   :  { %v8633_v48 = vadd.f32 %v853_v46, %v824_v42 }
 0x4f8   :  { %7597 = vtanh.f32 %v8631_v44 }
 0x4f9   :  { %7599 = vtanh.f32 %v8633_v48  ;;  %v859_v50 = vpop.permute.xlu1 %858 }
 0x4fa   :  { %v8639_v52 = vadd.f32 %v859_v50, %v827_v49  ;;  %v857_v29 = vpop.permute.xlu0 %856 }
 0x4fb   :  { %v8641_v53 = vadd.f32 %v857_v29, %v826_v51 }
 0x4fc   :  { %7601 = vtanh.f32 %v8639_v52 }
 0x4fd   :  { %7603 = vtanh.f32 %v8641_v53 }
 0x502   :  { %v7598_v24 = vpop.eup %7597 }
 0x503   :  { %v7600_v54 = vpop.eup %7599  ;;  %878 = vrot.lane.b32.xlu1 %v7598_v24, %s8278_s17 }
 0x504   :  { %876 = vrot.lane.b32.xlu0 %v7600_v54, %s8278_s17 }
 0x506   :  { %v7602_v33 = vpop.eup %7601 }
 0x507   :  { %v7604_v56 = vpop.eup %7603  ;;  %882 = vrot.lane.b32.xlu1 %v7602_v33, %s8278_s17 }
 0x508   :  { %880 = vrot.lane.b32.xlu0 %v7604_v56, %s8278_s17 }
 0x575   :  { %v879_v30 = vpop.permute.xlu1 %878 }
 0x576   :  { %v8649_v57 = vmul.f32 %v879_v30, %v821_v17  ;;  %v877_v58 = vpop.permute.xlu0 %876 }
 0x577   :  { %v8651_v59 = vmul.f32 %v877_v58, %v820_v19 }
 0x578   :  { %926 = vrot.lane.b32.xlu1 %v8649_v57, %s8279_s18 }
 0x579   :  { %v883_v61 = vpop.permute.xlu1 %882  ;;  %924 = vrot.lane.b32.xlu0 %v8651_v59, %s8279_s18 }
 0x57a   :  { %v8657_v62 = vmul.f32 %v883_v61, %v823_v23  ;;  %v881_v0 = vpop.permute.xlu0 %880 }
 0x57b   :  { %v8659_v1 = vmul.f32 %v881_v0, %v822_v25 }
 0x57c   :  { %930 = vrot.lane.b32.xlu1 %v8657_v62, %s8279_s18 }
 0x57d   :  { %928 = vrot.lane.b32.xlu0 %v8659_v1, %s8279_s18 }
 0x5ea   :  { %v927_v2 = vpop.permute.xlu1 %926 }
 0x5eb   :  { %v925_v3 = vpop.permute.xlu0 %924 }
 0x5ec   :  { %6763 = vmatprep.mubr.msk.f32.mxu0 %vm462_vm5, %v925_v3 }
 0x5ed   :  { %6764 = vmatmul.mubr.msk.f32.vlgmr.msra.gmra.mrb[8].mxu0 %vm462_vm5, %v927_v2 }
 0x5ee   :  { %7179 = vmatpush3.bf16.msra.mxu0 %v8394_v6  ;;  %v931_v5 = vpop.permute.xlu1 %930 }
 0x5ef   :  { %v929_v4 = vpop.permute.xlu0 %928  ;;  %7181 = vmatprep.subr.bf16.mxu0 %v8417_v12 }
 0x5f0   :  { %6766 = vmatprep.mubr.msk.f32.mxu0 %vm462_vm5, %v929_v4 }
 0x5f1   :  { %6767 = vmatmul.mubr.msk.f32.gmra.mrb[10].mxu0 %vm462_vm5, %v931_v5 }
 0x5f2   :  { %7183 = vmatpush3.bf16.msra.mxu0 %v8417_v12 }
 0x5f3   :  { %7185 = vmatprep.subr.bf16.mxu0 %v8394_v6 }
 0x6c0   :  { %v6765_v7 = vpop.f32.mrb[8].mxu0 }
 0x6c1   :  { %v7390_v8 = vadd.f32 %v6765_v7, %v8538_v40  ;;  %v1006_v9 = vpop.f32.mrb[9].mxu0 }
 0x6c2   :  { %v7391_v10 = vadd.f32 %v8538_v40, %v1006_v9 }
 0x6c3   :  { %v6200_v11 = vmul.f32 -1.442695, %v7390_v8 }
 0x6c4   :  { %v6199_v13 = vmul.f32 -1.442695, %v7391_v10  ;;  %v6768_v14 = vpop.f32.mrb[10].mxu0 }
 0x6c5   :  { %7605 = vpow2.f32 %v6200_v11  ;;  %v7392_v15 = vadd.f32 %v6768_v14, %v8538_v40  ;;  %v1016_v16 = vpop.f32.mrb[11].mxu0 }
 0x6c6   :  { %7607 = vpow2.f32 %v6199_v13  ;;  %v7393_v17 = vadd.f32 %v8538_v40, %v1016_v16 }
 0x6c7   :  { %v6202_v18 = vmul.f32 -1.442695, %v7392_v15 }
 0x6c8   :  { %v6201_v19 = vmul.f32 -1.442695, %v7393_v17 }
 0x6c9   :  { %7609 = vpow2.f32 %v6202_v18 }
 0x6ca   :  { %7611 = vpow2.f32 %v6201_v19 }
 0x6cb   :  { %7613 = vtanh.f32 %v7390_v8 }
 0x6cc   :  { %7615 = vtanh.f32 %v7391_v10 }
 0x6cf   :  { %v7606_v20 = vpop.eup %7605 }
 0x6d0   :  { %v7608_v21 = vpop.eup %7607  ;;  %v1042_v22 = vadd.f32 1.0, %v7606_v20 }
 0x6d1   :  { %v1041_v23 = vadd.f32 1.0, %v7608_v21 }
 0x6d2   :  { %7617 = vrcp.f32 %v1042_v22 }
 0x6d3   :  { %v7610_v25 = vpop.eup %7609  ;;  %7619 = vrcp.f32 %v1041_v23 }
 0x6d4   :  { %v7612_v26 = vpop.eup %7611  ;;  %v1044_v27 = vadd.f32 1.0, %v7610_v25  ;;  %7621 = vtanh.f32 %v7392_v15 }
 0x6d5   :  { %v1043_v28 = vadd.f32 1.0, %v7612_v26  ;;  %7623 = vtanh.f32 %v7393_v17  ;;  %v7614_v31 = vpop.eup %7613 }
 0x6d6   :  { %7625 = vrcp.f32 %v1044_v27  ;;  %v7616_v32 = vpop.eup %7615 }
 0x6d7   :  { %7627 = vrcp.f32 %v1043_v28 }
 0x6dc   :  { %v7618_v34 = vpop.eup %7617 }
 0x6dd   :  { %v7620_v35 = vpop.eup %7619  ;;  %v1058_v36 = vsel %vm8549_vm4, %v7614_v31, %v7618_v34 }
 0x6de   :  { %v7622_v37 = vpop.eup %7621  ;;  %1071 = vrot.lane.b32.xlu1 %v1058_v36, %s8278_s17  ;;  %v1057_v38 = vsel %vm8549_vm4, %v7616_v32, %v7620_v35  ;;  %v1062_v0 = vmul.f32 %v1058_v36, %v8631_v44 }
 0x6df   :  { %v7624_v42 = vpop.eup %7623  ;;  %1069 = vrot.lane.b32.xlu0 %v1057_v38, %s8278_s17  ;;  %v1061_v3 = vmul.f32 %v1057_v38, %v8633_v48 }
 0x6e0   :  { %v7626_v46 = vpop.eup %7625 }
 0x6e1   :  { %v7628_v49 = vpop.eup %7627  ;;  %v1060_v50 = vsel %vm8549_vm4, %v7622_v37, %v7626_v46 }
 0x6e2   :  { %1075 = vrot.lane.b32.xlu1 %v1060_v50, %s8278_s17  ;;  %v1059_v51 = vsel %vm8549_vm4, %v7624_v42, %v7628_v49  ;;  %v1064_v8 = vmul.f32 %v1060_v50, %v8639_v52 }
 0x6e3   :  { %1073 = vrot.lane.b32.xlu0 %v1059_v51, %s8278_s17  ;;  %v1063_v10 = vmul.f32 %v1059_v51, %v8641_v53 }
 0x750   :  { %v1072_v29 = vpop.permute.xlu1 %1071 }
 0x751   :  { %v1082_v24 = vmul.f32 %v1072_v29, %v1058_v36  ;;  %v1070_v54 = vpop.permute.xlu0 %1069 }
 0x752   :  { %v1081_v33 = vmul.f32 %v1070_v54, %v1057_v38 }
 0x753   :  { %1091 = vrot.lane.b32.xlu1 %v1082_v24, %s8279_s18 }
 0x754   :  { %v1076_v56 = vpop.permute.xlu1 %1075  ;;  %1089 = vrot.lane.b32.xlu0 %v1081_v33, %s8279_s18 }
 0x755   :  { %v1084_v30 = vmul.f32 %v1076_v56, %v1060_v50  ;;  %v1074_v58 = vpop.permute.xlu0 %1073 }
 0x756   :  { %v1083_v61 = vmul.f32 %v1074_v58, %v1059_v51 }
 0x757   :  { %1095 = vrot.lane.b32.xlu1 %v1084_v30, %s8279_s18 }
 0x758   :  { %1093 = vrot.lane.b32.xlu0 %v1083_v61, %s8279_s18 }
 0x7c5   :  { %v1092_v2 = vpop.permute.xlu1 %1091 }
 0x7c6   :  { %v8695_v4 = vadd.f32 %v1092_v2, %v1062_v0  ;;  %v1090_v5 = vpop.permute.xlu0 %1089 }
 0x7c7   :  { %v8697_v7 = vadd.f32 %v1090_v5, %v1061_v3 }
 0x7c8   :  { %7629 = vtanh.f32 %v8695_v4 }
 0x7c9   :  { %7631 = vtanh.f32 %v8697_v7  ;;  %v1096_v9 = vpop.permute.xlu1 %1095 }
 0x7ca   :  { %v8703_v11 = vadd.f32 %v1096_v9, %v1064_v8  ;;  %v1094_v44 = vpop.permute.xlu0 %1093 }
 0x7cb   :  { %v8705_v13 = vadd.f32 %v1094_v44, %v1063_v10 }
 0x7cc   :  { %7633 = vtanh.f32 %v8703_v11 }
 0x7cd   :  { %7635 = vtanh.f32 %v8705_v13 }
 0x7d2   :  { %v7630_v48 = vpop.eup %7629 }
 0x7d3   :  { %v7632_v14 = vpop.eup %7631  ;;  %1115 = vrot.lane.b32.xlu1 %v7630_v48, %s8278_s17 }
 0x7d4   :  { %1113 = vrot.lane.b32.xlu0 %v7632_v14, %s8278_s17 }
 0x7d6   :  { %v7634_v52 = vpop.eup %7633 }
 0x7d7   :  { %v7636_v15 = vpop.eup %7635  ;;  %1119 = vrot.lane.b32.xlu1 %v7634_v52, %s8278_s17 }
 0x7d8   :  { %1117 = vrot.lane.b32.xlu0 %v7636_v15, %s8278_s17 }
 0x845   :  { %v1116_v53 = vpop.permute.xlu1 %1115 }
 0x846   :  { %v8713_v16 = vmul.f32 %v1116_v53, %v1058_v36  ;;  %v1114_v17 = vpop.permute.xlu0 %1113 }
 0x847   :  { %v8715_v18 = vmul.f32 %v1114_v17, %v1057_v38 }
 0x848   :  { %1163 = vrot.lane.b32.xlu1 %v8713_v16, %s8279_s18 }
 0x849   :  { %v1120_v19 = vpop.permute.xlu1 %1119  ;;  %1161 = vrot.lane.b32.xlu0 %v8715_v18, %s8279_s18 }
 0x84a   :  { %v8721_v20 = vmul.f32 %v1120_v19, %v1060_v50  ;;  %v1118_v21 = vpop.permute.xlu0 %1117 }
 0x84b   :  { %v8723_v22 = vmul.f32 %v1118_v21, %v1059_v51 }
 0x84c   :  { %1167 = vrot.lane.b32.xlu1 %v8721_v20, %s8279_s18 }
 0x84d   :  { %1165 = vrot.lane.b32.xlu0 %v8723_v22, %s8279_s18 }
 0x8ba   :  { %v1164_v23 = vpop.permute.xlu1 %1163 }
 0x8bb   :  { %v1162_v25 = vpop.permute.xlu0 %1161 }
 0x8bc   :  { %6777 = vmatprep.mubr.msk.f32.mxu0 %vm462_vm5, %v1162_v25 }
 0x8bd   :  { %6778 = vmatmul.mubr.msk.f32.vlgmr.msra.gmra.mrb[12].mxu0 %vm462_vm5, %v1164_v23 }
 0x8be   :  { %7187 = vmatpush3.bf16.msra.mxu0 %v8394_v6  ;;  %v1168_v27 = vpop.permute.xlu1 %1167 }
 0x8bf   :  { %v1166_v26 = vpop.permute.xlu0 %1165  ;;  %7189 = vmatprep.subr.bf16.mxu0 %v8417_v12 }
 0x8c0   :  { %6780 = vmatprep.mubr.msk.f32.mxu0 %vm462_vm5, %v1166_v26 }
 0x8c1   :  { %6781 = vmatmul.mubr.msk.f32.gmra.mrb[14].mxu0 %vm462_vm5, %v1168_v27 }
 0x8c2   :  { %7191 = vmatpush3.bf16.msra.mxu0 %v8417_v12 }
 0x8c3   :  { %7193 = vmatprep.subr.bf16.mxu0 %v8394_v6 }
 0x990   :  { %v6779_v28 = vpop.f32.mrb[12].mxu0 }
 0x991   :  { %v7394_v31 = vadd.f32 %v6779_v28, %v8538_v40  ;;  %v1243_v32 = vpop.f32.mrb[13].mxu0 }
 0x992   :  { %v7395_v34 = vadd.f32 %v8538_v40, %v1243_v32 }
 0x993   :  { %v6208_v35 = vmul.f32 -1.442695, %v7394_v31 }
 0x994   :  { %v6207_v36 = vmul.f32 -1.442695, %v7395_v34  ;;  %v6782_v37 = vpop.f32.mrb[14].mxu0 }
 0x995   :  { %7637 = vpow2.f32 %v6208_v35  ;;  %v7396_v38 = vadd.f32 %v6782_v37, %v8538_v40  ;;  %v1253_v42 = vpop.f32.mrb[15].mxu0 }
 0x996   :  { %7639 = vpow2.f32 %v6207_v36  ;;  %v7397_v46 = vadd.f32 %v8538_v40, %v1253_v42 }
 0x997   :  { %v6210_v49 = vmul.f32 -1.442695, %v7396_v38 }
 0x998   :  { %v6209_v50 = vmul.f32 -1.442695, %v7397_v46 }
 0x999   :  { %7641 = vpow2.f32 %v6210_v49 }
 0x99a   :  { %7643 = vpow2.f32 %v6209_v50 }
 0x99b   :  { %7645 = vtanh.f32 %v7394_v31 }
 0x99c   :  { %7647 = vtanh.f32 %v7395_v34 }
 0x99f   :  { %v7638_v51 = vpop.eup %7637 }
 0x9a0   :  { %v7640_v29 = vpop.eup %7639  ;;  %v1279_v24 = vadd.f32 1.0, %v7638_v51 }
 0x9a1   :  { %v1278_v54 = vadd.f32 1.0, %v7640_v29 }
 0x9a2   :  { %7649 = vrcp.f32 %v1279_v24 }
 0x9a3   :  { %v7642_v33 = vpop.eup %7641  ;;  %7651 = vrcp.f32 %v1278_v54 }
 0x9a4   :  { %v7644_v56 = vpop.eup %7643  ;;  %v1281_v30 = vadd.f32 1.0, %v7642_v33  ;;  %7653 = vtanh.f32 %v7396_v38 }
 0x9a5   :  { %v1280_v58 = vadd.f32 1.0, %v7644_v56  ;;  %7655 = vtanh.f32 %v7397_v46  ;;  %v7646_v61 = vpop.eup %7645 }
 0x9a6   :  { %7657 = vrcp.f32 %v1281_v30  ;;  %v7648_v0 = vpop.eup %7647 }
 0x9a7   :  { %7659 = vrcp.f32 %v1280_v58 }
 0x9ac   :  { %v7650_v2 = vpop.eup %7649 }
 0x9ad   :  { %v7652_v3 = vpop.eup %7651  ;;  %v1295_v5 = vsel %vm8549_vm4, %v7646_v61, %v7650_v2 }
 0x9ae   :  { %v7654_v8 = vpop.eup %7653  ;;  %1308 = vrot.lane.b32.xlu1 %v1295_v5, %s8278_s17  ;;  %v1294_v9 = vsel %vm8549_vm4, %v7648_v0, %v7652_v3  ;;  %v1299_v27 = vmul.f32 %v1295_v5, %v8695_v4 }
 0x9af   :  { %v7656_v10 = vpop.eup %7655  ;;  %1306 = vrot.lane.b32.xlu0 %v1294_v9, %s8278_s17  ;;  %v1298_v31 = vmul.f32 %v1294_v9, %v8697_v7 }
 0x9b0   :  { %v7658_v44 = vpop.eup %7657 }
 0x9b1   :  { %v7660_v48 = vpop.eup %7659  ;;  %v1297_v14 = vsel %vm8549_vm4, %v7654_v8, %v7658_v44 }
 0x9b2   :  { %1312 = vrot.lane.b32.xlu1 %v1297_v14, %s8278_s17  ;;  %v1296_v52 = vsel %vm8549_vm4, %v7656_v10, %v7660_v48  ;;  %v1301_v36 = vmul.f32 %v1297_v14, %v8703_v11 }
 0x9b3   :  { %1310 = vrot.lane.b32.xlu0 %v1296_v52, %s8278_s17  ;;  %v1300_v38 = vmul.f32 %v1296_v52, %v8705_v13 }
 0xa20   :  { %v1309_v15 = vpop.permute.xlu1 %1308 }
 0xa21   :  { %v1319_v53 = vmul.f32 %v1309_v15, %v1295_v5  ;;  %v1307_v17 = vpop.permute.xlu0 %1306 }
 0xa22   :  { %v1318_v19 = vmul.f32 %v1307_v17, %v1294_v9 }
 0xa23   :  { %1328 = vrot.lane.b32.xlu1 %v1319_v53, %s8279_s18 }
 0xa24   :  { %v1313_v21 = vpop.permute.xlu1 %1312  ;;  %1326 = vrot.lane.b32.xlu0 %v1318_v19, %s8279_s18 }
 0xa25   :  { %v1321_v23 = vmul.f32 %v1313_v21, %v1297_v14  ;;  %v1311_v25 = vpop.permute.xlu0 %1310 }
 0xa26   :  { %v1320_v26 = vmul.f32 %v1311_v25, %v1296_v52 }
 0xa27   :  { %1332 = vrot.lane.b32.xlu1 %v1321_v23, %s8279_s18 }
 0xa28   :  { %1330 = vrot.lane.b32.xlu0 %v1320_v26, %s8279_s18 }
 0xa95   :  { %v1329_v28 = vpop.permute.xlu1 %1328 }
 0xa96   :  { %v8759_v32 = vadd.f32 %v1329_v28, %v1299_v27  ;;  %v1327_v34 = vpop.permute.xlu0 %1326 }
 0xa97   :  { %v8761_v35 = vadd.f32 %v1327_v34, %v1298_v31 }
 0xa98   :  { %7661 = vtanh.f32 %v8759_v32 }
 0xa99   :  { %7663 = vtanh.f32 %v8761_v35  ;;  %v1333_v37 = vpop.permute.xlu1 %1332 }
 0xa9a   :  { %v8767_v42 = vadd.f32 %v1333_v37, %v1301_v36  ;;  %v1331_v4 = vpop.permute.xlu0 %1330 }
 0xa9b   :  { %v8769_v46 = vadd.f32 %v1331_v4, %v1300_v38 }
 0xa9c   :  { %7665 = vtanh.f32 %v8767_v42 }
 0xa9d   :  { %7667 = vtanh.f32 %v8769_v46 }
 0xaa2   :  { %v7662_v7 = vpop.eup %7661 }
 0xaa3   :  { %v7664_v49 = vpop.eup %7663  ;;  %1352 = vrot.lane.b32.xlu1 %v7662_v7, %s8278_s17 }
 0xaa4   :  { %1350 = vrot.lane.b32.xlu0 %v7664_v49, %s8278_s17 }
 0xaa6   :  { %v7666_v11 = vpop.eup %7665 }
 0xaa7   :  { %v7668_v50 = vpop.eup %7667  ;;  %1356 = vrot.lane.b32.xlu1 %v7666_v11, %s8278_s17 }
 0xaa8   :  { %1354 = vrot.lane.b32.xlu0 %v7668_v50, %s8278_s17 }
 0xb15   :  { %v1353_v13 = vpop.permute.xlu1 %1352 }
 0xb16   :  { %v8777_v51 = vmul.f32 %v1353_v13, %v1295_v5  ;;  %v1351_v29 = vpop.permute.xlu0 %1350 }
 0xb17   :  { %v8779_v24 = vmul.f32 %v1351_v29, %v1294_v9 }
 0xb18   :  { %1400 = vrot.lane.b32.xlu1 %v8777_v51, %s8279_s18 }
 0xb19   :  { %v1357_v54 = vpop.permute.xlu1 %1356  ;;  %1398 = vrot.lane.b32.xlu0 %v8779_v24, %s8279_s18 }
 0xb1a   :  { %v8785_v33 = vmul.f32 %v1357_v54, %v1297_v14  ;;  %v1355_v56 = vpop.permute.xlu0 %1354 }
 0xb1b   :  { %v8787_v30 = vmul.f32 %v1355_v56, %v1296_v52 }
 0xb1c   :  { %1404 = vrot.lane.b32.xlu1 %v8785_v33, %s8279_s18 }
 0xb1d   :  { %1402 = vrot.lane.b32.xlu0 %v8787_v30, %s8279_s18 }
 0xb8a   :  { %v1401_v58 = vpop.permute.xlu1 %1400 }
 0xb8b   :  { %v1399_v61 = vpop.permute.xlu0 %1398 }
 0xb8c   :  { %6791 = vmatprep.mubr.msk.f32.mxu0 %vm462_vm5, %v1399_v61 }
 0xb8d   :  { %6792 = vmatmul.mubr.msk.f32.vlgmr.msra.gmra.mrb[16].mxu0 %vm462_vm5, %v1401_v58 }
 0xb8e   :  { %7195 = vmatpush3.bf16.msra.mxu0 %v8394_v6  ;;  %v1405_v2 = vpop.permute.xlu1 %1404 }
 0xb8f   :  { %v1403_v0 = vpop.permute.xlu0 %1402  ;;  %7197 = vmatprep.subr.bf16.mxu0 %v8417_v12 }
 0xb90   :  { %6794 = vmatprep.mubr.msk.f32.mxu0 %vm462_vm5, %v1403_v0 }
 0xb91   :  { %6795 = vmatmul.mubr.msk.f32.gmra.mrb[18].mxu0 %vm462_vm5, %v1405_v2 }
 0xb92   :  { %7199 = vmatpush3.bf16.msra.mxu0 %v8417_v12 }
 0xb93   :  { %7201 = vmatprep.subr.bf16.mxu0 %v8394_v6 }
 0xc60   :  { %v6793_v3 = vpop.f32.mrb[16].mxu0 }
 0xc61   :  { %v7398_v5 = vadd.f32 %v6793_v3, %v8538_v40  ;;  %v1480_v8 = vpop.f32.mrb[17].mxu0 }
 0xc62   :  { %v7399_v9 = vadd.f32 %v8538_v40, %v1480_v8 }
 0xc63   :  { %v6216_v10 = vmul.f32 -1.442695, %v7398_v5 }
 0xc64   :  { %v6215_v44 = vmul.f32 -1.442695, %v7399_v9  ;;  %v6796_v48 = vpop.f32.mrb[18].mxu0 }
 0xc65   :  { %7669 = vpow2.f32 %v6216_v10  ;;  %v7400_v14 = vadd.f32 %v6796_v48, %v8538_v40  ;;  %v1490_v52 = vpop.f32.mrb[19].mxu0 }
 0xc66   :  { %7671 = vpow2.f32 %v6215_v44  ;;  %v7401_v15 = vadd.f32 %v8538_v40, %v1490_v52 }
 0xc67   :  { %v6218_v53 = vmul.f32 -1.442695, %v7400_v14 }
 0xc68   :  { %v6217_v17 = vmul.f32 -1.442695, %v7401_v15 }
 0xc69   :  { %7673 = vpow2.f32 %v6218_v53 }
 0xc6a   :  { %7675 = vpow2.f32 %v6217_v17 }
 0xc6b   :  { %7677 = vtanh.f32 %v7398_v5 }
 0xc6c   :  { %7679 = vtanh.f32 %v7399_v9 }
 0xc6f   :  { %v7670_v19 = vpop.eup %7669 }
 0xc70   :  { %v7672_v21 = vpop.eup %7671  ;;  %v1516_v23 = vadd.f32 1.0, %v7670_v19 }
 0xc71   :  { %v1515_v25 = vadd.f32 1.0, %v7672_v21 }
 0xc72   :  { %7681 = vrcp.f32 %v1516_v23 }
 0xc73   :  { %v7674_v26 = vpop.eup %7673  ;;  %7683 = vrcp.f32 %v1515_v25 }
 0xc74   :  { %v7676_v27 = vpop.eup %7675  ;;  %v1518_v28 = vadd.f32 1.0, %v7674_v26  ;;  %7685 = vtanh.f32 %v7400_v14 }
 0xc75   :  { %v1517_v31 = vadd.f32 1.0, %v7676_v27  ;;  %7687 = vtanh.f32 %v7401_v15  ;;  %v7678_v40 = vpop.eup %7677 }
 0xc76   :  { %7689 = vrcp.f32 %v1518_v28  ;;  %v7680_v34 = vpop.eup %7679 }
 0xc77   :  { %7691 = vrcp.f32 %v1517_v31 }
 0xc7c   :  { %v7682_v36 = vpop.eup %7681 }
 0xc7d   :  { %v7684_v37 = vpop.eup %7683  ;;  %v1532_v38 = vsel %vm8549_vm4, %v7678_v40, %v7682_v36 }
 0xc7e   :  { %v7686_v4 = vpop.eup %7685  ;;  %1545 = vrot.lane.b32.xlu1 %v1532_v38, %s8278_s17  ;;  %v1531_v7 = vsel %vm8549_vm4, %v7680_v34, %v7684_v37  ;;  %v1536_v8 = vmul.f32 %v1532_v38, %v8759_v32 }
 0xc7f   :  { %v7688_v49 = vpop.eup %7687  ;;  %1543 = vrot.lane.b32.xlu0 %v1531_v7, %s8278_s17  ;;  %v1535_v10 = vmul.f32 %v1531_v7, %v8761_v35 }
 0xc80   :  { %v7690_v11 = vpop.eup %7689 }
 0xc81   :  { %v7692_v50 = vpop.eup %7691  ;;  %v1534_v13 = vsel %vm8549_vm4, %v7686_v4, %v7690_v11 }
 0xc82   :  { %1549 = vrot.lane.b32.xlu1 %v1534_v13, %s8278_s17  ;;  %v1533_v29 = vsel %vm8549_vm4, %v7688_v49, %v7692_v50  ;;  %v1538_v52 = vmul.f32 %v1534_v13, %v8767_v42  ;;  %v8868_v49 = vld [vmem:[%s10187_s3] ss:$0 sm:$0xff] }
 0xc83   :  { %1547 = vrot.lane.b32.xlu0 %v1533_v29, %s8278_s17  ;;  %v1537_v53 = vmul.f32 %v1533_v29, %v8769_v46 }
 0xcf0   :  { %v1546_v54 = vpop.permute.xlu1 %1545 }
 0xcf1   :  { %v1556_v56 = vmul.f32 %v1546_v54, %v1532_v38  ;;  %v1544_v58 = vpop.permute.xlu0 %1543 }
 0xcf2   :  { %v1555_v61 = vmul.f32 %v1544_v58, %v1531_v7 }
 0xcf3   :  { %1565 = vrot.lane.b32.xlu1 %v1556_v56, %s8279_s18 }
 0xcf4   :  { %v1550_v0 = vpop.permute.xlu1 %1549  ;;  %1563 = vrot.lane.b32.xlu0 %v1555_v61, %s8279_s18 }
 0xcf5   :  { %v1558_v2 = vmul.f32 %v1550_v0, %v1534_v13  ;;  %v1548_v3 = vpop.permute.xlu0 %1547 }
 0xcf6   :  { %v1557_v5 = vmul.f32 %v1548_v3, %v1533_v29 }
 0xcf7   :  { %1569 = vrot.lane.b32.xlu1 %v1558_v2, %s8279_s18 }
 0xcf8   :  { %1567 = vrot.lane.b32.xlu0 %v1557_v5, %s8279_s18 }
 0xd65   :  { %v1566_v9 = vpop.permute.xlu1 %1565 }
 0xd66   :  { %v8823_v44 = vadd.f32 %v1566_v9, %v1536_v8  ;;  %v1564_v48 = vpop.permute.xlu0 %1563 }
 0xd67   :  { %v8825_v14 = vadd.f32 %v1564_v48, %v1535_v10 }
 0xd68   :  { %7693 = vtanh.f32 %v8823_v44 }
 0xd69   :  { %7695 = vtanh.f32 %v8825_v14  ;;  %v1570_v15 = vpop.permute.xlu1 %1569 }
 0xd6a   :  { %v8831_v17 = vadd.f32 %v1570_v15, %v1538_v52  ;;  %v1568_v32 = vpop.permute.xlu0 %1567 }
 0xd6b   :  { %v8833_v19 = vadd.f32 %v1568_v32, %v1537_v53 }
 0xd6c   :  { %7697 = vtanh.f32 %v8831_v17 }
 0xd6d   :  { %7699 = vtanh.f32 %v8833_v19 }
 0xd72   :  { %v7694_v35 = vpop.eup %7693 }
 0xd73   :  { %v7696_v21 = vpop.eup %7695  ;;  %1589 = vrot.lane.b32.xlu1 %v7694_v35, %s8278_s17 }
 0xd74   :  { %1587 = vrot.lane.b32.xlu0 %v7696_v21, %s8278_s17 }
 0xd76   :  { %v7698_v42 = vpop.eup %7697 }
 0xd77   :  { %v7700_v23 = vpop.eup %7699  ;;  %1593 = vrot.lane.b32.xlu1 %v7698_v42, %s8278_s17 }
 0xd78   :  { %1591 = vrot.lane.b32.xlu0 %v7700_v23, %s8278_s17 }
 0xde5   :  { %v1590_v46 = vpop.permute.xlu1 %1589 }
 0xde6   :  { %v8841_v25 = vmul.f32 %v1590_v46, %v1532_v38  ;;  %v1588_v26 = vpop.permute.xlu0 %1587 }
 0xde7   :  { %v8843_v27 = vmul.f32 %v1588_v26, %v1531_v7 }
 0xde8   :  { %1637 = vrot.lane.b32.xlu1 %v8841_v25, %s8279_s18 }
 0xde9   :  { %v1594_v28 = vpop.permute.xlu1 %1593  ;;  %1635 = vrot.lane.b32.xlu0 %v8843_v27, %s8279_s18 }
 0xdea   :  { %v8849_v31 = vmul.f32 %v1594_v28, %v1534_v13  ;;  %v1592_v40 = vpop.permute.xlu0 %1591 }
 0xdeb   :  { %v8851_v34 = vmul.f32 %v1592_v40, %v1533_v29 }
 0xdec   :  { %1641 = vrot.lane.b32.xlu1 %v8849_v31, %s8279_s18 }
 0xded   :  { %1639 = vrot.lane.b32.xlu0 %v8851_v34, %s8279_s18 }
 0xe5a   :  { %v1638_v36 = vpop.permute.xlu1 %1637 }
 0xe5b   :  { %v1636_v37 = vpop.permute.xlu0 %1635 }
 0xe5c   :  { %6805 = vmatprep.mubr.msk.f32.mxu0 %vm462_vm5, %v1636_v37 }
 0xe5d   :  { %6806 = vmatmul.mubr.msk.f32.vlgmr.msra.gmra.mrb[20].mxu0 %vm462_vm5, %v1638_v36 }
 0xe5e   :  { %7203 = vmatpush3.bf16.msra.mxu0 %v8394_v6  ;;  %v1642_v4 = vpop.permute.xlu1 %1641 }
 0xe5f   :  { %v1640_v38 = vpop.permute.xlu0 %1639  ;;  %7205 = vmatprep.subr.bf16.mxu0 %v8417_v12 }
 0xe60   :  { %6808 = vmatprep.mubr.msk.f32.mxu0 %vm462_vm5, %v1640_v38 }
 0xe61   :  { %6809 = vmatmul.mubr.msk.f32.gmra.mrb[22].mxu0 %vm462_vm5, %v1642_v4 }
 0xe62   :  { %7207 = vmatpush3.bf16.msra.mxu0 %v8417_v12 }
 0xe63   :  { %7209 = vmatprep.subr.bf16.mxu0 %v8394_v6 }
 0xf30   :  { %v6807_v7 = vpop.f32.mrb[20].mxu0 }
 0xf31   :  { %v7402_v11 = vadd.f32 %v8868_v49, %v6807_v7  ;;  %v1717_v50 = vpop.f32.mrb[21].mxu0 }
 0xf32   :  { %v7403_v13 = vadd.f32 %v8868_v49, %v1717_v50 }
 0xf33   :  { %v6224_v29 = vmul.f32 -1.442695, %v7402_v11 }
 0xf34   :  { %v6223_v54 = vmul.f32 -1.442695, %v7403_v13  ;;  %v6810_v56 = vpop.f32.mrb[22].mxu0 }
 0xf35   :  { %7701 = vpow2.f32 %v6224_v29  ;;  %v7404_v58 = vadd.f32 %v8868_v49, %v6810_v56  ;;  %v1727_v61 = vpop.f32.mrb[23].mxu0 }
 0xf36   :  { %7703 = vpow2.f32 %v6223_v54  ;;  %v7405_v0 = vadd.f32 %v8868_v49, %v1727_v61 }
 0xf37   :  { %v6226_v2 = vmul.f32 -1.442695, %v7404_v58 }
 0xf38   :  { %v6225_v3 = vmul.f32 -1.442695, %v7405_v0 }
 0xf39   :  { %7705 = vpow2.f32 %v6226_v2 }
 0xf3a   :  { %7707 = vpow2.f32 %v6225_v3 }
 0xf3b   :  { %7709 = vtanh.f32 %v7402_v11 }
 0xf3c   :  { %7711 = vtanh.f32 %v7403_v13 }
 0xf3f   :  { %v7702_v5 = vpop.eup %7701 }
 0xf40   :  { %v7704_v8 = vpop.eup %7703  ;;  %v1753_v9 = vadd.f32 1.0, %v7702_v5 }
 0xf41   :  { %v1752_v10 = vadd.f32 1.0, %v7704_v8 }
 0xf42   :  { %7713 = vrcp.f32 %v1753_v9 }
 0xf43   :  { %v7706_v48 = vpop.eup %7705  ;;  %7715 = vrcp.f32 %v1752_v10 }
 0xf44   :  { %v7708_v52 = vpop.eup %7707  ;;  %v1755_v15 = vadd.f32 1.0, %v7706_v48  ;;  %7717 = vtanh.f32 %v7404_v58 }
 0xf45   :  { %v1754_v53 = vadd.f32 1.0, %v7708_v52  ;;  %7719 = vtanh.f32 %v7405_v0  ;;  %v7710_v32 = vpop.eup %7709 }
 0xf46   :  { %7721 = vrcp.f32 %v1755_v15  ;;  %v7712_v35 = vpop.eup %7711 }
 0xf47   :  { %7723 = vrcp.f32 %v1754_v53 }
 0xf4c   :  { %v7714_v21 = vpop.eup %7713 }
 0xf4d   :  { %v7716_v42 = vpop.eup %7715  ;;  %v1769_v23 = vsel %vm8549_vm4, %v7710_v32, %v7714_v21 }
 0xf4e   :  { %v7718_v46 = vpop.eup %7717  ;;  %1782 = vrot.lane.b32.xlu1 %v1769_v23, %s8278_s17  ;;  %v1768_v26 = vsel %vm8549_vm4, %v7712_v35, %v7716_v42  ;;  %v1773_v58 = vmul.f32 %v1769_v23, %v8823_v44 }
 0xf4f   :  { %v7720_v28 = vpop.eup %7719  ;;  %1780 = vrot.lane.b32.xlu0 %v1768_v26, %s8278_s17  ;;  %v1772_v0 = vmul.f32 %v1768_v26, %v8825_v14 }
 0xf50   :  { %v7722_v40 = vpop.eup %7721 }
 0xf51   :  { %v7724_v36 = vpop.eup %7723  ;;  %v1771_v37 = vsel %vm8549_vm4, %v7718_v46, %v7722_v40 }
 0xf52   :  { %1786 = vrot.lane.b32.xlu1 %v1771_v37, %s8278_s17  ;;  %v1770_v38 = vsel %vm8549_vm4, %v7720_v28, %v7724_v36  ;;  %v1775_v8 = vmul.f32 %v1771_v37, %v8831_v17 }
 0xf53   :  { %1784 = vrot.lane.b32.xlu0 %v1770_v38, %s8278_s17  ;;  %v1774_v10 = vmul.f32 %v1770_v38, %v8833_v19 }
 0xfc0   :  { %v1783_v4 = vpop.permute.xlu1 %1782 }
 0xfc1   :  { %v1793_v7 = vmul.f32 %v1783_v4, %v1769_v23  ;;  %v1781_v11 = vpop.permute.xlu0 %1780 }
 0xfc2   :  { %v1792_v50 = vmul.f32 %v1781_v11, %v1768_v26 }
 0xfc3   :  { %1802 = vrot.lane.b32.xlu1 %v1793_v7, %s8279_s18 }
 0xfc4   :  { %v1787_v13 = vpop.permute.xlu1 %1786  ;;  %1800 = vrot.lane.b32.xlu0 %v1792_v50, %s8279_s18 }
 0xfc5   :  { %v1795_v29 = vmul.f32 %v1787_v13, %v1771_v37  ;;  %v1785_v54 = vpop.permute.xlu0 %1784 }
 0xfc6   :  { %v1794_v56 = vmul.f32 %v1785_v54, %v1770_v38 }
 0xfc7   :  { %1806 = vrot.lane.b32.xlu1 %v1795_v29, %s8279_s18 }
 0xfc8   :  { %1804 = vrot.lane.b32.xlu0 %v1794_v56, %s8279_s18 }
0x1035   :  { %v1803_v61 = vpop.permute.xlu1 %1802 }
0x1036   :  { %v8892_v2 = vadd.f32 %v1803_v61, %v1773_v58  ;;  %v1801_v3 = vpop.permute.xlu0 %1800 }
0x1037   :  { %v8894_v5 = vadd.f32 %v1801_v3, %v1772_v0 }
0x1038   :  { %7725 = vtanh.f32 %v8892_v2 }
0x1039   :  { %7727 = vtanh.f32 %v8894_v5  ;;  %v1807_v9 = vpop.permute.xlu1 %1806 }
0x103a   :  { %v8900_v48 = vadd.f32 %v1807_v9, %v1775_v8  ;;  %v1805_v44 = vpop.permute.xlu0 %1804 }
0x103b   :  { %v8902_v52 = vadd.f32 %v1805_v44, %v1774_v10 }
0x103c   :  { %7729 = vtanh.f32 %v8900_v48 }
0x103d   :  { %7731 = vtanh.f32 %v8902_v52 }
0x1042   :  { %v7726_v14 = vpop.eup %7725 }
0x1043   :  { %v7728_v15 = vpop.eup %7727  ;;  %1826 = vrot.lane.b32.xlu1 %v7726_v14, %s8278_s17 }
0x1044   :  { %1824 = vrot.lane.b32.xlu0 %v7728_v15, %s8278_s17 }
0x1046   :  { %v7730_v17 = vpop.eup %7729 }
0x1047   :  { %v7732_v53 = vpop.eup %7731  ;;  %1830 = vrot.lane.b32.xlu1 %v7730_v17, %s8278_s17 }
0x1048   :  { %1828 = vrot.lane.b32.xlu0 %v7732_v53, %s8278_s17 }
0x10b5   :  { %v1827_v19 = vpop.permute.xlu1 %1826 }
0x10b6   :  { %v8910_v32 = vmul.f32 %v1827_v19, %v1769_v23  ;;  %v1825_v35 = vpop.permute.xlu0 %1824 }
0x10b7   :  { %v8912_v21 = vmul.f32 %v1825_v35, %v1768_v26 }
0x10b8   :  { %1874 = vrot.lane.b32.xlu1 %v8910_v32, %s8279_s18 }
0x10b9   :  { %v1831_v42 = vpop.permute.xlu1 %1830  ;;  %1872 = vrot.lane.b32.xlu0 %v8912_v21, %s8279_s18 }
0x10ba   :  { %v8918_v46 = vmul.f32 %v1831_v42, %v1771_v37  ;;  %v1829_v28 = vpop.permute.xlu0 %1828 }
0x10bb   :  { %v8920_v40 = vmul.f32 %v1829_v28, %v1770_v38 }
0x10bc   :  { %1878 = vrot.lane.b32.xlu1 %v8918_v46, %s8279_s18 }
0x10bd   :  { %1876 = vrot.lane.b32.xlu0 %v8920_v40, %s8279_s18 }
0x112a   :  { %v1875_v23 = vpop.permute.xlu1 %1874 }
0x112b   :  { %v1873_v26 = vpop.permute.xlu0 %1872 }
0x112c   :  { %6819 = vmatprep.mubr.msk.f32.mxu0 %vm462_vm5, %v1873_v26 }
0x112d   :  { %6820 = vmatmul.mubr.msk.f32.vlgmr.msra.gmra.mrb[24].mxu0 %vm462_vm5, %v1875_v23 }
0x112e   :  { %7211 = vmatpush3.bf16.msra.mxu0 %v8394_v6  ;;  %v1879_v37 = vpop.permute.xlu1 %1878 }
0x112f   :  { %v1877_v36 = vpop.permute.xlu0 %1876  ;;  %7213 = vmatprep.subr.bf16.mxu0 %v8417_v12 }
0x1130   :  { %6822 = vmatprep.mubr.msk.f32.mxu0 %vm462_vm5, %v1877_v36 }
0x1131   :  { %6823 = vmatmul.mubr.msk.f32.gmra.mrb[26].mxu0 %vm462_vm5, %v1879_v37 }
0x1132   :  { %7215 = vmatpush3.bf16.msra.mxu0 %v8417_v12 }
0x1200   :  { %v6821_v38 = vpop.f32.mrb[24].mxu0 }
0x1201   :  { %v7406_v4 = vadd.f32 %v8868_v49, %v6821_v38  ;;  %v1954_v7 = vpop.f32.mrb[25].mxu0 }
0x1202   :  { %v7407_v11 = vadd.f32 %v8868_v49, %v1954_v7 }
0x1203   :  { %v6232_v50 = vmul.f32 -1.442695, %v7406_v4 }
0x1204   :  { %v6231_v13 = vmul.f32 -1.442695, %v7407_v11  ;;  %v6824_v29 = vpop.f32.mrb[26].mxu0 }
0x1205   :  { %7733 = vpow2.f32 %v6232_v50  ;;  %v7408_v6 = vadd.f32 %v8868_v49, %v6824_v29  ;;  %v1964_v54 = vpop.f32.mrb[27].mxu0 }
0x1206   :  { %7735 = vpow2.f32 %v6231_v13  ;;  %v7409_v56 = vadd.f32 %v8868_v49, %v1964_v54 }
0x1207   :  { %v6234_v58 = vmul.f32 -1.442695, %v7408_v6 }
0x1208   :  { %v6233_v61 = vmul.f32 -1.442695, %v7409_v56 }
0x1209   :  { %7737 = vpow2.f32 %v6234_v58 }
0x120a   :  { %7739 = vpow2.f32 %v6233_v61 }
0x120b   :  { %7741 = vtanh.f32 %v7406_v4 }
0x120c   :  { %7743 = vtanh.f32 %v7407_v11 }
0x120f   :  { %v7734_v12 = vpop.eup %7733 }
0x1210   :  { %v7736_v0 = vpop.eup %7735  ;;  %v1990_v3 = vadd.f32 1.0, %v7734_v12 }
0x1211   :  { %v1989_v8 = vadd.f32 1.0, %v7736_v0 }
0x1212   :  { %7745 = vrcp.f32 %v1990_v3 }
0x1213   :  { %v7738_v9 = vpop.eup %7737  ;;  %7747 = vrcp.f32 %v1989_v8 }
0x1214   :  { %v7740_v10 = vpop.eup %7739  ;;  %v1992_v44 = vadd.f32 1.0, %v7738_v9  ;;  %7749 = vtanh.f32 %v7408_v6 }
0x1215   :  { %v1991_v14 = vadd.f32 1.0, %v7740_v10  ;;  %7751 = vtanh.f32 %v7409_v56  ;;  %v7742_v15 = vpop.eup %7741 }
0x1216   :  { %7753 = vrcp.f32 %v1992_v44  ;;  %v7744_v17 = vpop.eup %7743 }
0x1217   :  { %7755 = vrcp.f32 %v1991_v14 }
0x121c   :  { %v7746_v53 = vpop.eup %7745 }
0x121d   :  { %v7748_v19 = vpop.eup %7747  ;;  %v2006_v35 = vsel %vm8549_vm4, %v7742_v15, %v7746_v53 }
0x121e   :  { %v7750_v42 = vpop.eup %7749  ;;  %2019 = vrot.lane.b32.xlu1 %v2006_v35, %s8278_s17  ;;  %v2005_v28 = vsel %vm8549_vm4, %v7744_v17, %v7748_v19  ;;  %v2010_v56 = vmul.f32 %v2006_v35, %v8892_v2 }
0x121f   :  { %v7752_v23 = vpop.eup %7751  ;;  %2017 = vrot.lane.b32.xlu0 %v2005_v28, %s8278_s17  ;;  %v2009_v61 = vmul.f32 %v2005_v28, %v8894_v5 }
0x1220   :  { %v7754_v26 = vpop.eup %7753 }
0x1221   :  { %v7756_v36 = vpop.eup %7755  ;;  %v2008_v37 = vsel %vm8549_vm4, %v7750_v42, %v7754_v26 }
0x1222   :  { %2023 = vrot.lane.b32.xlu1 %v2008_v37, %s8278_s17  ;;  %v2007_v38 = vsel %vm8549_vm4, %v7752_v23, %v7756_v36  ;;  %v2012_v8 = vmul.f32 %v2008_v37, %v8900_v48 }
0x1223   :  { %2021 = vrot.lane.b32.xlu0 %v2007_v38, %s8278_s17  ;;  %v2011_v10 = vmul.f32 %v2007_v38, %v8902_v52 }
0x1290   :  { %v2020_v4 = vpop.permute.xlu1 %2019 }
0x1291   :  { %v2030_v7 = vmul.f32 %v2020_v4, %v2006_v35  ;;  %v2018_v11 = vpop.permute.xlu0 %2017 }
0x1292   :  { %v2029_v50 = vmul.f32 %v2018_v11, %v2005_v28 }
0x1293   :  { %2039 = vrot.lane.b32.xlu1 %v2030_v7, %s8279_s18 }
0x1294   :  { %v2024_v13 = vpop.permute.xlu1 %2023  ;;  %2037 = vrot.lane.b32.xlu0 %v2029_v50, %s8279_s18 }
0x1295   :  { %v2032_v29 = vmul.f32 %v2024_v13, %v2008_v37  ;;  %v2022_v6 = vpop.permute.xlu0 %2021 }
0x1296   :  { %v2031_v54 = vmul.f32 %v2022_v6, %v2007_v38 }
0x1297   :  { %2043 = vrot.lane.b32.xlu1 %v2032_v29, %s8279_s18 }
0x1298   :  { %2041 = vrot.lane.b32.xlu0 %v2031_v54, %s8279_s18 }
0x1305   :  { %v2040_v58 = vpop.permute.xlu1 %2039 }
0x1306   :  { %v8955_v12 = vadd.f32 %v2040_v58, %v2010_v56  ;;  %v2038_v0 = vpop.permute.xlu0 %2037 }
0x1307   :  { %v8957_v3 = vadd.f32 %v2038_v0, %v2009_v61 }
0x1308   :  { %7757 = vtanh.f32 %v8955_v12 }
0x1309   :  { %7759 = vtanh.f32 %v8957_v3  ;;  %v2044_v9 = vpop.permute.xlu1 %2043 }
0x130a   :  { %v8963_v44 = vadd.f32 %v2044_v9, %v2012_v8  ;;  %v2042_v2 = vpop.permute.xlu0 %2041 }
0x130b   :  { %v8965_v14 = vadd.f32 %v2042_v2, %v2011_v10 }
0x130c   :  { %7761 = vtanh.f32 %v8963_v44 }
0x130d   :  { %7763 = vtanh.f32 %v8965_v14 }
0x1312   :  { %v7758_v5 = vpop.eup %7757 }
0x1313   :  { %v7760_v15 = vpop.eup %7759  ;;  %2063 = vrot.lane.b32.xlu1 %v7758_v5, %s8278_s17 }
0x1314   :  { %2061 = vrot.lane.b32.xlu0 %v7760_v15, %s8278_s17 }
0x1316   :  { %v7762_v48 = vpop.eup %7761 }
0x1317   :  { %v7764_v17 = vpop.eup %7763  ;;  %2067 = vrot.lane.b32.xlu1 %v7762_v48, %s8278_s17 }
0x1318   :  { %2065 = vrot.lane.b32.xlu0 %v7764_v17, %s8278_s17 }
0x1385   :  { %v2064_v52 = vpop.permute.xlu1 %2063 }
0x1386   :  { %v8973_v53 = vmul.f32 %v2064_v52, %v2006_v35  ;;  %v2062_v19 = vpop.permute.xlu0 %2061 }
0x1387   :  { %v8975_v42 = vmul.f32 %v2062_v19, %v2005_v28 }
0x1388   :  { %2111 = vrot.lane.b32.xlu1 %v8973_v53, %s8279_s18 }
0x1389   :  { %v2068_v23 = vpop.permute.xlu1 %2067  ;;  %2109 = vrot.lane.b32.xlu0 %v8975_v42, %s8279_s18 }
0x138a   :  { %v8981_v26 = vmul.f32 %v2068_v23, %v2008_v37  ;;  %v2066_v36 = vpop.permute.xlu0 %2065 }
0x138b   :  { %v8983_v4 = vmul.f32 %v2066_v36, %v2007_v38 }
0x138c   :  { %2115 = vrot.lane.b32.xlu1 %v8981_v26, %s8279_s18 }
0x138d   :  { %2113 = vrot.lane.b32.xlu0 %v8983_v4, %s8279_s18 }
0x13fa   :  { %v2112_v35 = vpop.permute.xlu1 %2111 }
0x13fb   :  { %v2110_v28 = vpop.permute.xlu0 %2109 }
0x13fc   :  { %6833 = vmatprep.mubr.msk.f32.mxu0 %vm462_vm5, %v2110_v28 }
0x13fd   :  { %6834 = vmatmul.mubr.msk.f32.vlgmr.msra.gmra.mrb[28].mxu0 %vm462_vm5, %v2112_v35 }
0x13fe   :  { %v2116_v11 = vpop.permute.xlu1 %2115 }
0x13ff   :  { %v2114_v7 = vpop.permute.xlu0 %2113 }
0x1400   :  { %6836 = vmatprep.mubr.msk.f32.mxu0 %vm462_vm5, %v2114_v7 }
0x1401   :  { %6837 = vmatmul.mubr.msk.f32.gmra.mrb[30].mxu0 %vm462_vm5, %v2116_v11 }
0x14d0   :  { %v6835_v37 = vpop.f32.mrb[28].mxu0 }
0x14d1   :  { %v7410_v38 = vadd.f32 %v8868_v49, %v6835_v37  ;;  %v2191_v50 = vpop.f32.mrb[29].mxu0 }
0x14d2   :  { %v7411_v13 = vadd.f32 %v8868_v49, %v2191_v50 }
0x14d3   :  { %v6240_v29 = vmul.f32 -1.442695, %v7410_v38 }
0x14d4   :  { %v6239_v6 = vmul.f32 -1.442695, %v7411_v13  ;;  %v6838_v54 = vpop.f32.mrb[30].mxu0 }
0x14d5   :  { %7765 = vpow2.f32 %v6240_v29  ;;  %v7412_v56 = vadd.f32 %v8868_v49, %v6838_v54  ;;  %v2201_v58 = vpop.f32.mrb[31].mxu0 }
0x14d6   :  { %7767 = vpow2.f32 %v6239_v6  ;;  %v7413_v61 = vadd.f32 %v8868_v49, %v2201_v58 }
0x14d7   :  { %v6242_v0 = vmul.f32 -1.442695, %v7412_v56 }
0x14d8   :  { %v6241_v8 = vmul.f32 -1.442695, %v7413_v61 }
0x14d9   :  { %7769 = vpow2.f32 %v6242_v0 }
0x14da   :  { %7771 = vpow2.f32 %v6241_v8 }
0x14db   :  { %7773 = vtanh.f32 %v7410_v38 }
0x14dc   :  { %7775 = vtanh.f32 %v7411_v13 }
0x14df   :  { %v7766_v9 = vpop.eup %7765 }
0x14e0   :  { %v7768_v10 = vpop.eup %7767  ;;  %v2227_v2 = vadd.f32 1.0, %v7766_v9 }
0x14e1   :  { %v2226_v5 = vadd.f32 1.0, %v7768_v10 }
0x14e2   :  { %7777 = vrcp.f32 %v2227_v2 }
0x14e3   :  { %v7770_v15 = vpop.eup %7769  ;;  %7779 = vrcp.f32 %v2226_v5 }
0x14e4   :  { %v7772_v48 = vpop.eup %7771  ;;  %v2229_v17 = vadd.f32 1.0, %v7770_v15  ;;  %7781 = vtanh.f32 %v7412_v56 }
0x14e5   :  { %v2228_v52 = vadd.f32 1.0, %v7772_v48  ;;  %7783 = vtanh.f32 %v7413_v61  ;;  %v7774_v49 = vpop.eup %7773 }
0x14e6   :  { %7785 = vrcp.f32 %v2229_v17  ;;  %v7776_v19 = vpop.eup %7775 }
0x14e7   :  { %7787 = vrcp.f32 %v2228_v52 }
0x14ec   :  { %v7778_v23 = vpop.eup %7777 }
0x14ed   :  { %v7780_v36 = vpop.eup %7779  ;;  %v8999_v35 = vsel %vm8549_vm4, %v7774_v49, %v7778_v23 }
0x14ee   :  { %v7782_v28 = vpop.eup %7781  ;;  %2256 = vrot.lane.b32.xlu1 %v8999_v35, %s8278_s17  ;;  %v9005_v7 = vsel %vm8549_vm4, %v7776_v19, %v7780_v36  ;;  %v2247_v9 = vmul.f32 %v8999_v35, %v8955_v12  ;;  %v2370_v12 = vld [vmem:[%s10188_s4] sm:$0xff] }
0x14ef   :  { %v7784_v11 = vpop.eup %7783  ;;  %2254 = vrot.lane.b32.xlu0 %v9005_v7, %s8278_s17  ;;  %v2246_v2 = vmul.f32 %v9005_v7, %v8957_v3  ;;  %v2371_v3 = vld [vmem:[%s10188_s4 + $0x8] sm:$0xff] }
0x14f0   :  { %v7786_v37 = vpop.eup %7785 }
0x14f1   :  { %v7788_v38 = vpop.eup %7787  ;;  %v9011_v50 = vsel %vm8549_vm4, %v7782_v28, %v7786_v37  ;;  %v7216_v28 = vpack.c.bf16 %v2371_v3, %v2370_v12 }
0x14f2   :  { %2260 = vrot.lane.b32.xlu1 %v9011_v50, %s8278_s17  ;;  %v9017_v13 = vsel %vm8549_vm4, %v7784_v11, %v7788_v38  ;;  %v2249_v17 = vmul.f32 %v9011_v50, %v8963_v44  ;;  %v2373_v11 = vld [vmem:[%s10188_s4 + $0x18] sm:$0xff] }
0x14f3   :  { %2258 = vrot.lane.b32.xlu0 %v9017_v13, %s8278_s17  ;;  %v2248_v49 = vmul.f32 %v9017_v13, %v8965_v14  ;;  %7217 = vmatprep.subr.bf16.mxu1 %v7216_v28  ;;  %v2372_v14 = vld [vmem:[%s10188_s4 + $0x10] sm:$0xff] }
0x14f4   :  { %7219 = vmatpush3.bf16.msra.mxu1 %v7216_v28  ;;  %v7220_v38 = vpack.c.bf16 %v2373_v11, %v2372_v14 }
0x14f6   :  { %7221 = vmatprep.subr.bf16.mxu1 %v7220_v38 }
0x14f8   :  { %7223 = vmatpush3.bf16.msra.mxu1 %v7220_v38 }
0x1560   :  { %v2257_v29 = vpop.permute.xlu1 %2256 }
0x1561   :  { %v2267_v6 = vmul.f32 %v2257_v29, %v8999_v35  ;;  %v2255_v54 = vpop.permute.xlu0 %2254 }
0x1562   :  { %v2266_v56 = vmul.f32 %v2255_v54, %v9005_v7 }
0x1563   :  { %2276 = vrot.lane.b32.xlu1 %v2267_v6, %s8279_s18 }
0x1564   :  { %v2261_v58 = vpop.permute.xlu1 %2260  ;;  %2274 = vrot.lane.b32.xlu0 %v2266_v56, %s8279_s18 }
0x1565   :  { %v2269_v61 = vmul.f32 %v2261_v58, %v9011_v50  ;;  %v2259_v0 = vpop.permute.xlu0 %2258 }
0x1566   :  { %v2268_v8 = vmul.f32 %v2259_v0, %v9017_v13 }
0x1567   :  { %2280 = vrot.lane.b32.xlu1 %v2269_v61, %s8279_s18 }
0x1568   :  { %2278 = vrot.lane.b32.xlu0 %v2268_v8, %s8279_s18 }
0x15d5   :  { %v2277_v10 = vpop.permute.xlu1 %2276 }
0x15d6   :  { %v2287_v5 = vadd.f32 %v2277_v10, %v2247_v9  ;;  %v2275_v15 = vpop.permute.xlu0 %2274 }
0x15d7   :  { %v2286_v48 = vadd.f32 %v2275_v15, %v2246_v2 }
0x15d8   :  { %7789 = vtanh.f32 %v2287_v5 }
0x15d9   :  { %7791 = vtanh.f32 %v2286_v48  ;;  %v2281_v52 = vpop.permute.xlu1 %2280 }
0x15da   :  { %v2289_v19 = vadd.f32 %v2281_v52, %v2249_v17  ;;  %v2279_v23 = vpop.permute.xlu0 %2278 }
0x15db   :  { %v2288_v36 = vadd.f32 %v2279_v23, %v2248_v49 }
0x15dc   :  { %7793 = vtanh.f32 %v2289_v19 }
0x15dd   :  { %7795 = vtanh.f32 %v2288_v36 }
0x15de   :  { %7797 = vtanh.f32 %v8589_v43 }
0x15df   :  { %7799 = vtanh.f32 %v8585_v41 }
0x15e0   :  { %7801 = vtanh.f32 %v8597_v47 }
0x15e1   :  { %7803 = vtanh.f32 %v8591_v45 }
0x15e2   :  { %v7790_v44 = vpop.eup %7789  ;;  %7805 = vtanh.f32 %v8649_v57 }
0x15e3   :  { %v7792_v37 = vpop.eup %7791  ;;  %2300 = vrot.lane.b32.xlu1 %v7790_v44, %s8278_s17  ;;  %7807 = vtanh.f32 %v8651_v59 }
0x15e4   :  { %2298 = vrot.lane.b32.xlu0 %v7792_v37, %s8278_s17  ;;  %7809 = vtanh.f32 %v8657_v62 }
0x15e5   :  { %7811 = vtanh.f32 %v8659_v1 }
0x15e6   :  { %v7794_v41 = vpop.eup %7793  ;;  %7813 = vtanh.f32 %v8713_v16 }
0x15e7   :  { %v7796_v43 = vpop.eup %7795  ;;  %2304 = vrot.lane.b32.xlu1 %v7794_v41, %s8278_s17  ;;  %7815 = vtanh.f32 %v8715_v18 }
0x15e8   :  { %2302 = vrot.lane.b32.xlu0 %v7796_v43, %s8278_s17  ;;  %v7798_v29 = vpop.eup %7797  ;;  %7817 = vtanh.f32 %v8721_v20 }
0x15e9   :  { %v7800_v6 = vpop.eup %7799  ;;  %7819 = vtanh.f32 %v8723_v22 }
0x15ea   :  { %v7802_v45 = vpop.eup %7801  ;;  %7821 = vtanh.f32 %v8777_v51 }
0x15eb   :  { %665 = vrot.lane.b32.xlu1 %v7798_v29, %s8279_s18  ;;  %v7804_v47 = vpop.eup %7803  ;;  %7823 = vtanh.f32 %v8779_v24 }
0x15ec   :  { %663 = vrot.lane.b32.xlu0 %v7800_v6, %s8279_s18  ;;  %v7806_v57 = vpop.eup %7805  ;;  %7825 = vtanh.f32 %v8785_v33 }
0x15ed   :  { %v7808_v59 = vpop.eup %7807  ;;  %7827 = vtanh.f32 %v8787_v30 }
0x15ee   :  { %v7810_v62 = vpop.eup %7809  ;;  %7829 = vtanh.f32 %v8841_v25 }
0x15ef   :  { %669 = vrot.lane.b32.xlu1 %v7802_v45, %s8279_s18  ;;  %v7812_v1 = vpop.eup %7811  ;;  %7831 = vtanh.f32 %v8843_v27 }
0x15f0   :  { %667 = vrot.lane.b32.xlu0 %v7804_v47, %s8279_s18  ;;  %v7814_v16 = vpop.eup %7813  ;;  %7833 = vtanh.f32 %v8849_v31 }
0x15f1   :  { %v7816_v18 = vpop.eup %7815  ;;  %7835 = vtanh.f32 %v8851_v34 }
0x15f2   :  { %v7818_v20 = vpop.eup %7817  ;;  %7837 = vtanh.f32 %v8910_v32 }
0x15f3   :  { %902 = vrot.lane.b32.xlu1 %v7806_v57, %s8279_s18  ;;  %v7820_v22 = vpop.eup %7819  ;;  %7839 = vtanh.f32 %v8912_v21 }
0x15f4   :  { %900 = vrot.lane.b32.xlu0 %v7808_v59, %s8279_s18  ;;  %v7822_v51 = vpop.eup %7821  ;;  %7841 = vtanh.f32 %v8918_v46 }
0x15f5   :  { %v7824_v24 = vpop.eup %7823  ;;  %7843 = vtanh.f32 %v8920_v40 }
0x15f6   :  { %v7826_v33 = vpop.eup %7825  ;;  %7845 = vtanh.f32 %v8973_v53 }
0x15f7   :  { %906 = vrot.lane.b32.xlu1 %v7810_v62, %s8279_s18  ;;  %v7828_v30 = vpop.eup %7827  ;;  %7847 = vtanh.f32 %v8975_v42  ;;  %v2734_v42 = vld [vmem:[%s10189_s5] sm:$0xff] }
0x15f8   :  { %904 = vrot.lane.b32.xlu0 %v7812_v1, %s8279_s18  ;;  %v7830_v25 = vpop.eup %7829  ;;  %7849 = vtanh.f32 %v8981_v26  ;;  %v2735_v26 = vld [vmem:[%s10189_s5 + $0x8] sm:$0xff] }
0x15f9   :  { %v7832_v27 = vpop.eup %7831  ;;  %7851 = vtanh.f32 %v8983_v4  ;;  %v9113_v4 = vpack.c.bf16 %v2735_v26, %v2734_v42 }
0x15fa   :  { %v7834_v31 = vpop.eup %7833 }
0x15fb   :  { %1139 = vrot.lane.b32.xlu1 %v7814_v16, %s8279_s18  ;;  %v7836_v34 = vpop.eup %7835  ;;  %7225 = vmatprep.subr.bf16.mxu1 %v9113_v4 }
0x15fc   :  { %1137 = vrot.lane.b32.xlu0 %v7816_v18, %s8279_s18  ;;  %v7838_v32 = vpop.eup %7837 }
0x15fd   :  { %v7840_v21 = vpop.eup %7839 }
0x15fe   :  { %v7842_v46 = vpop.eup %7841 }
0x15ff   :  { %1143 = vrot.lane.b32.xlu1 %v7818_v20, %s8279_s18  ;;  %v7844_v40 = vpop.eup %7843 }
0x1600   :  { %1141 = vrot.lane.b32.xlu0 %v7820_v22, %s8279_s18  ;;  %v7846_v53 = vpop.eup %7845 }
0x1601   :  { %v7848_v54 = vpop.eup %7847 }
0x1602   :  { %v7850_v56 = vpop.eup %7849 }
0x1603   :  { %1376 = vrot.lane.b32.xlu1 %v7822_v51, %s8279_s18  ;;  %v7852_v58 = vpop.eup %7851 }
0x1604   :  { %1374 = vrot.lane.b32.xlu0 %v7824_v24, %s8279_s18 }
0x1607   :  { %1380 = vrot.lane.b32.xlu1 %v7826_v33, %s8279_s18 }
0x1608   :  { %1378 = vrot.lane.b32.xlu0 %v7828_v30, %s8279_s18 }
0x160b   :  { %1613 = vrot.lane.b32.xlu1 %v7830_v25, %s8279_s18 }
0x160c   :  { %1611 = vrot.lane.b32.xlu0 %v7832_v27, %s8279_s18 }
0x160f   :  { %1617 = vrot.lane.b32.xlu1 %v7834_v31, %s8279_s18 }
0x1610   :  { %1615 = vrot.lane.b32.xlu0 %v7836_v34, %s8279_s18 }
0x1613   :  { %1850 = vrot.lane.b32.xlu1 %v7838_v32, %s8279_s18 }
0x1614   :  { %1848 = vrot.lane.b32.xlu0 %v7840_v21, %s8279_s18 }
0x1617   :  { %1854 = vrot.lane.b32.xlu1 %v7842_v46, %s8279_s18 }
0x1618   :  { %1852 = vrot.lane.b32.xlu0 %v7844_v40, %s8279_s18 }
0x161b   :  { %2087 = vrot.lane.b32.xlu1 %v7846_v53, %s8279_s18 }
0x161c   :  { %2085 = vrot.lane.b32.xlu0 %v7848_v54, %s8279_s18 }
0x161f   :  { %2091 = vrot.lane.b32.xlu1 %v7850_v56, %s8279_s18 }
0x1620   :  { %2089 = vrot.lane.b32.xlu0 %v7852_v58, %s8279_s18 }
0x1655   :  { %v2301_v61 = vpop.permute.xlu1 %2300 }
0x1656   :  { %v2311_v0 = vmul.f32 %v2301_v61, %v8999_v35  ;;  %v2299_v8 = vpop.permute.xlu0 %2298 }
0x1657   :  { %v2310_v9 = vmul.f32 %v2299_v8, %v9005_v7 }
0x1658   :  { %7853 = vtanh.f32 %v2311_v0 }
0x1659   :  { %7855 = vtanh.f32 %v2310_v9  ;;  %v2305_v10 = vpop.permute.xlu1 %2304 }
0x165a   :  { %v2313_v2 = vmul.f32 %v2305_v10, %v9011_v50  ;;  %v2303_v5 = vpop.permute.xlu0 %2302  ;;  %v2736_v50 = vld [vmem:[%s10189_s5 + $0x10] sm:$0xff] }
0x165b   :  { %v2312_v15 = vmul.f32 %v2303_v5, %v9017_v13  ;;  %v2737_v13 = vld [vmem:[%s10189_s5 + $0x18] sm:$0xff] }
0x165c   :  { %7857 = vtanh.f32 %v2313_v2  ;;  %v9135_v3 = vpack.c.bf16 %v2737_v13, %v2736_v50 }
0x165d   :  { %7859 = vtanh.f32 %v2312_v15  ;;  %v666_v48 = vpop.permute.xlu1 %665 }
0x165e   :  { %676 = vst.msk [vmem:[#allocation3 + $0x8] sm:$0xff] %vm462_vm5, %v666_v48  ;;  %v664_v17 = vpop.permute.xlu0 %663 }
0x165f   :  { %675 = vst.msk [vmem:[#allocation3] sm:$0xff] %vm462_vm5, %v664_v17 }
0x1661   :  { %v670_v35 = vpop.permute.xlu1 %669 }
0x1662   :  { %v7854_v52 = vpop.eup %7853  ;;  %678 = vst.msk [vmem:[#allocation3 + $0x18] sm:$0xff] %vm462_vm5, %v670_v35  ;;  %v668_v7 = vpop.permute.xlu0 %667 }
0x1663   :  { %v7856_v49 = vpop.eup %7855  ;;  %677 = vst.msk [vmem:[#allocation3 + $0x10] sm:$0xff] %vm462_vm5, %v668_v7  ;;  %2324 = vrot.lane.b32.xlu1 %v7854_v52, %s8279_s18 }
0x1664   :  { %2322 = vrot.lane.b32.xlu0 %v7856_v49, %s8279_s18 }
0x1665   :  { %v903_v19 = vpop.permute.xlu1 %902  ;;  %v2339_v44 = vld [vmem:[#allocation3 + $0x8] sm:$0xff] }
0x1666   :  { %v7858_v23 = vpop.eup %7857  ;;  %913 = vst.msk [vmem:[#allocation3 + $0x28] sm:$0xff] %vm462_vm5, %v903_v19  ;;  %v901_v36 = vpop.permute.xlu0 %900  ;;  %v2338_v12 = vld [vmem:[#allocation3] sm:$0xff] }
0x1667   :  { %v7860_v28 = vpop.eup %7859  ;;  %912 = vst.msk [vmem:[#allocation3 + $0x20] sm:$0xff] %vm462_vm5, %v901_v36  ;;  %2328 = vrot.lane.b32.xlu1 %v7858_v23, %s8279_s18  ;;  %6847 = vmatprep.mubr.msk.f32.mxu1 %vm462_vm5, %v2338_v12 }
0x1668   :  { %2326 = vrot.lane.b32.xlu0 %v7860_v28, %s8279_s18  ;;  %6848 = vmatmul.mubr.msk.f32.vlgmr.msra.gmra.mrb[0].mxu1 %vm462_vm5, %v2339_v44  ;;  %v9213_v28 = vld [vmem:[%s10190_s6] ss:$0 sm:$0xff] }
0x1669   :  { %v907_v14 = vpop.permute.xlu1 %906  ;;  %7227 = vmatpush3.bf16.msra.mxu1 %v9113_v4  ;;  %v2341_v38 = vld [vmem:[#allocation3 + $0x18] sm:$0xff] }
0x166a   :  { %915 = vst.msk [vmem:[#allocation3 + $0x38] sm:$0xff] %vm462_vm5, %v907_v14  ;;  %v905_v11 = vpop.permute.xlu0 %904  ;;  %v2340_v37 = vld [vmem:[#allocation3 + $0x10] sm:$0xff]  ;;  %7229 = vmatprep.subr.bf16.mxu1 %v9135_v3 }
0x166b   :  { %914 = vst.msk [vmem:[#allocation3 + $0x30] sm:$0xff] %vm462_vm5, %v905_v11  ;;  %6850 = vmatprep.mubr.msk.f32.mxu1 %vm462_vm5, %v2340_v37 }
0x166c   :  { %6851 = vmatmul.mubr.msk.f32.gmra.mrb[2].mxu1 %vm462_vm5, %v2341_v38 }
0x166d   :  { %v1140_v41 = vpop.permute.xlu1 %1139  ;;  %7231 = vmatpush3.bf16.msra.mxu1 %v9135_v3  ;;  %v2343_v6 = vld [vmem:[#allocation3 + $0x28] sm:$0xff] }
0x166e   :  { %1150 = vst.msk [vmem:[#allocation3 + $0x48] sm:$0xff] %vm462_vm5, %v1140_v41  ;;  %v1138_v43 = vpop.permute.xlu0 %1137  ;;  %v2342_v29 = vld [vmem:[#allocation3 + $0x20] sm:$0xff]  ;;  %7233 = vmatprep.subr.bf16.mxu1 %v9113_v4 }
0x166f   :  { %1149 = vst.msk [vmem:[#allocation3 + $0x40] sm:$0xff] %vm462_vm5, %v1138_v43  ;;  %6853 = vmatprep.mubr.msk.f32.mxu1 %vm462_vm5, %v2342_v29 }
0x1670   :  { %6854 = vmatmul.mubr.msk.f32.gmra.mrb[4].mxu1 %vm462_vm5, %v2343_v6 }
0x1671   :  { %v1144_v45 = vpop.permute.xlu1 %1143  ;;  %v2345_v59 = vld [vmem:[#allocation3 + $0x38] sm:$0xff] }
0x1672   :  { %1152 = vst.msk [vmem:[#allocation3 + $0x58] sm:$0xff] %vm462_vm5, %v1144_v45  ;;  %v1142_v47 = vpop.permute.xlu0 %1141  ;;  %v2344_v57 = vld [vmem:[#allocation3 + $0x30] sm:$0xff] }
0x1673   :  { %1151 = vst.msk [vmem:[#allocation3 + $0x50] sm:$0xff] %vm462_vm5, %v1142_v47  ;;  %6856 = vmatprep.mubr.msk.f32.mxu1 %vm462_vm5, %v2344_v57 }
0x1674   :  { %6857 = vmatmul.mubr.msk.f32.gmra.mrb[6].mxu1 %vm462_vm5, %v2345_v59 }
0x1675   :  { %v1377_v62 = vpop.permute.xlu1 %1376  ;;  %v2347_v18 = vld [vmem:[#allocation3 + $0x48] sm:$0xff] }
0x1676   :  { %1387 = vst.msk [vmem:[#allocation3 + $0x68] sm:$0xff] %vm462_vm5, %v1377_v62  ;;  %v1375_v1 = vpop.permute.xlu0 %1374  ;;  %v2346_v16 = vld [vmem:[#allocation3 + $0x40] sm:$0xff] }
0x1677   :  { %1386 = vst.msk [vmem:[#allocation3 + $0x60] sm:$0xff] %vm462_vm5, %v1375_v1  ;;  %6859 = vmatprep.mubr.msk.f32.mxu1 %vm462_vm5, %v2346_v16 }
0x1678   :  { %6860 = vmatmul.mubr.msk.f32.gmra.mrb[8].mxu1 %vm462_vm5, %v2347_v18 }
0x1679   :  { %v1381_v20 = vpop.permute.xlu1 %1380  ;;  %v2349_v24 = vld [vmem:[#allocation3 + $0x58] sm:$0xff] }
0x167a   :  { %1389 = vst.msk [vmem:[#allocation3 + $0x78] sm:$0xff] %vm462_vm5, %v1381_v20  ;;  %v1379_v22 = vpop.permute.xlu0 %1378  ;;  %v2348_v51 = vld [vmem:[#allocation3 + $0x50] sm:$0xff] }
0x167b   :  { %1388 = vst.msk [vmem:[#allocation3 + $0x70] sm:$0xff] %vm462_vm5, %v1379_v22  ;;  %6862 = vmatprep.mubr.msk.f32.mxu1 %vm462_vm5, %v2348_v51 }
0x167c   :  { %6863 = vmatmul.mubr.msk.f32.gmra.mrb[10].mxu1 %vm462_vm5, %v2349_v24 }
0x167d   :  { %v1614_v33 = vpop.permute.xlu1 %1613  ;;  %v2351_v27 = vld [vmem:[#allocation3 + $0x68] sm:$0xff] }
0x167e   :  { %1624 = vst.msk [vmem:[#allocation3 + $0x88] sm:$0xff] %vm462_vm5, %v1614_v33  ;;  %v1612_v30 = vpop.permute.xlu0 %1611  ;;  %v2350_v25 = vld [vmem:[#allocation3 + $0x60] sm:$0xff] }
0x167f   :  { %1623 = vst.msk [vmem:[#allocation3 + $0x80] sm:$0xff] %vm462_vm5, %v1612_v30  ;;  %6865 = vmatprep.mubr.msk.f32.mxu1 %vm462_vm5, %v2350_v25 }
0x1680   :  { %6866 = vmatmul.mubr.msk.f32.gmra.mrb[12].mxu1 %vm462_vm5, %v2351_v27 }
0x1681   :  { %v1618_v31 = vpop.permute.xlu1 %1617  ;;  %v2353_v21 = vld [vmem:[#allocation3 + $0x78] sm:$0xff] }
0x1682   :  { %1626 = vst.msk [vmem:[#allocation3 + $0x98] sm:$0xff] %vm462_vm5, %v1618_v31  ;;  %v1616_v34 = vpop.permute.xlu0 %1615  ;;  %v2352_v32 = vld [vmem:[#allocation3 + $0x70] sm:$0xff] }
0x1683   :  { %1625 = vst.msk [vmem:[#allocation3 + $0x90] sm:$0xff] %vm462_vm5, %v1616_v34  ;;  %6868 = vmatprep.mubr.msk.f32.mxu1 %vm462_vm5, %v2352_v32 }
0x1684   :  { %6869 = vmatmul.mubr.msk.f32.gmra.mrb[14].mxu1 %vm462_vm5, %v2353_v21 }
0x1685   :  { %v1851_v46 = vpop.permute.xlu1 %1850  ;;  %v2355_v54 = vld [vmem:[#allocation3 + $0x88] sm:$0xff] }
0x1686   :  { %1861 = vst.msk [vmem:[#allocation3 + $0xa8] sm:$0xff] %vm462_vm5, %v1851_v46  ;;  %v1849_v40 = vpop.permute.xlu0 %1848  ;;  %v2354_v53 = vld [vmem:[#allocation3 + $0x80] sm:$0xff] }
0x1687   :  { %1860 = vst.msk [vmem:[#allocation3 + $0xa0] sm:$0xff] %vm462_vm5, %v1849_v40  ;;  %6871 = vmatprep.mubr.msk.f32.mxu1 %vm462_vm5, %v2354_v53 }
0x1688   :  { %6872 = vmatmul.mubr.msk.f32.gmra.mrb[16].mxu1 %vm462_vm5, %v2355_v54 }
0x1689   :  { %v1855_v42 = vpop.permute.xlu1 %1854  ;;  %v2357_v58 = vld [vmem:[#allocation3 + $0x98] sm:$0xff] }
0x168a   :  { %1863 = vst.msk [vmem:[#allocation3 + $0xb8] sm:$0xff] %vm462_vm5, %v1855_v42  ;;  %v1853_v26 = vpop.permute.xlu0 %1852  ;;  %v2356_v56 = vld [vmem:[#allocation3 + $0x90] sm:$0xff] }
0x168b   :  { %1862 = vst.msk [vmem:[#allocation3 + $0xb0] sm:$0xff] %vm462_vm5, %v1853_v26  ;;  %6874 = vmatprep.mubr.msk.f32.mxu1 %vm462_vm5, %v2356_v56 }
0x168c   :  { %6875 = vmatmul.mubr.msk.f32.gmra.mrb[18].mxu1 %vm462_vm5, %v2357_v58 }
0x168d   :  { %v2088_v61 = vpop.permute.xlu1 %2087  ;;  %v2359_v9 = vld [vmem:[#allocation3 + $0xa8] sm:$0xff] }
0x168e   :  { %2098 = vst.msk [vmem:[#allocation3 + $0xc8] sm:$0xff] %vm462_vm5, %v2088_v61  ;;  %v2086_v0 = vpop.permute.xlu0 %2085  ;;  %v2358_v8 = vld [vmem:[#allocation3 + $0xa0] sm:$0xff] }
0x168f   :  { %2097 = vst.msk [vmem:[#allocation3 + $0xc0] sm:$0xff] %vm462_vm5, %v2086_v0  ;;  %6877 = vmatprep.mubr.msk.f32.mxu1 %vm462_vm5, %v2358_v8 }
0x1690   :  { %6878 = vmatmul.mubr.msk.f32.gmra.mrb[20].mxu1 %vm462_vm5, %v2359_v9 }
0x1691   :  { %v2092_v10 = vpop.permute.xlu1 %2091  ;;  %v2361_v15 = vld [vmem:[#allocation3 + $0xb8] sm:$0xff] }
0x1692   :  { %2100 = vst.msk [vmem:[#allocation3 + $0xd8] sm:$0xff] %vm462_vm5, %v2092_v10  ;;  %v2090_v2 = vpop.permute.xlu0 %2089  ;;  %v2360_v5 = vld [vmem:[#allocation3 + $0xb0] sm:$0xff] }
0x1693   :  { %2099 = vst.msk [vmem:[#allocation3 + $0xd0] sm:$0xff] %vm462_vm5, %v2090_v2  ;;  %6880 = vmatprep.mubr.msk.f32.mxu1 %vm462_vm5, %v2360_v5 }
0x1694   :  { %6881 = vmatmul.mubr.msk.f32.gmra.mrb[22].mxu1 %vm462_vm5, %v2361_v15 }
0x1695   :  { %v2363_v17 = vld [vmem:[#allocation3 + $0xc8] sm:$0xff] }
0x1696   :  { %v2362_v48 = vld [vmem:[#allocation3 + $0xc0] sm:$0xff] }
0x1697   :  { %6883 = vmatprep.mubr.msk.f32.mxu1 %vm462_vm5, %v2362_v48 }
0x1698   :  { %6884 = vmatmul.mubr.msk.f32.gmra.mrb[24].mxu1 %vm462_vm5, %v2363_v17 }
0x1699   :  { %v2365_v52 = vld [vmem:[#allocation3 + $0xd8] sm:$0xff] }
0x169a   :  { %v2364_v35 = vld [vmem:[#allocation3 + $0xd0] sm:$0xff] }
0x169b   :  { %6886 = vmatprep.mubr.msk.f32.mxu1 %vm462_vm5, %v2364_v35 }
0x169c   :  { %6887 = vmatmul.mubr.msk.f32.gmra.mrb[26].mxu1 %vm462_vm5, %v2365_v52 }
0x16d5   :  { %v2325_v7 = vpop.permute.xlu1 %2324 }
0x16d6   :  { %2335 = vst.msk [vmem:[#allocation3 + $0xe8] sm:$0xff] %vm462_vm5, %v2325_v7  ;;  %v2323_v49 = vpop.permute.xlu0 %2322 }
0x16d7   :  { %2334 = vst.msk [vmem:[#allocation3 + $0xe0] sm:$0xff] %vm462_vm5, %v2323_v49 }
0x16d9   :  { %v2329_v50 = vpop.permute.xlu1 %2328 }
0x16da   :  { %2337 = vst.msk [vmem:[#allocation3 + $0xf8] sm:$0xff] %vm462_vm5, %v2329_v50  ;;  %v2327_v13 = vpop.permute.xlu0 %2326 }
0x16db   :  { %2336 = vst.msk [vmem:[#allocation3 + $0xf0] sm:$0xff] %vm462_vm5, %v2327_v13 }
0x16dd   :  { %v2367_v23 = vld [vmem:[#allocation3 + $0xe8] sm:$0xff] }
0x16de   :  { %v2366_v19 = vld [vmem:[#allocation3 + $0xe0] sm:$0xff] }
0x16df   :  { %6889 = vmatprep.mubr.msk.f32.mxu1 %vm462_vm5, %v2366_v19 }
0x16e0   :  { %6890 = vmatmul.mubr.msk.f32.gmra.mrb[28].mxu1 %vm462_vm5, %v2367_v23 }
0x16e1   :  { %v2369_v12 = vld [vmem:[#allocation3 + $0xf8] sm:$0xff] }
0x16e2   :  { %v2368_v36 = vld [vmem:[#allocation3 + $0xf0] sm:$0xff] }
0x16e3   :  { %6892 = vmatprep.mubr.msk.f32.mxu1 %vm462_vm5, %v2368_v36 }
0x16e4   :  { %6893 = vmatmul.mubr.msk.f32.gmra.mrb[30].mxu1 %vm462_vm5, %v2369_v12 }
0x16e5   :  { %6903 = vmatprep.mubr.f32.mxu1 %v8277_v39 }
0x16e8   :  { %6904 = vmatmul.mubr.f32.vlgmr.msra.gmra.mrb[0].mxu1 %v8277_v39 }
0x16e9   :  { %6906 = vmatprep.mubr.f32.mxu1 %v8277_v39  ;;  %7235 = vmatpush3.bf16.msra.mxu1 %v9113_v4 }
0x16ea   :  { %7237 = vmatprep.subr.bf16.mxu1 %v9135_v3 }
0x16ec   :  { %6907 = vmatmul.mubr.f32.gmra.mrb[2].mxu1 %v8277_v39 }
0x16ed   :  { %7239 = vmatpush3.bf16.msra.mxu1 %v9135_v3 }
0x16ee   :  { %7241 = vmatprep.subr.bf16.mxu1 %v9113_v4 }
0x17bb   :  { %v6905_v44 = vpop.f32.mrb[0].mxu1 }
0x17bc   :  { %v7414_v14 = vadd.f32 %v6905_v44, %v9213_v28  ;;  %v2808_v11 = vpop.f32.mrb[1].mxu1 }
0x17bd   :  { %v7415_v37 = vadd.f32 %v9213_v28, %v2808_v11 }
0x17be   :  { %v6277_v38 = vmul.f32 -1.442695, %v7414_v14 }
0x17bf   :  { %v6276_v41 = vmul.f32 -1.442695, %v7415_v37  ;;  %v6908_v43 = vpop.f32.mrb[2].mxu1 }
0x17c0   :  { %7861 = vpow2.f32 %v6277_v38  ;;  %v7416_v29 = vadd.f32 %v6908_v43, %v9213_v28  ;;  %v2818_v6 = vpop.f32.mrb[3].mxu1 }
0x17c1   :  { %7863 = vpow2.f32 %v6276_v41  ;;  %v7417_v45 = vadd.f32 %v9213_v28, %v2818_v6 }
0x17c2   :  { %v6279_v47 = vmul.f32 -1.442695, %v7416_v29 }
0x17c3   :  { %v6278_v57 = vmul.f32 -1.442695, %v7417_v45 }
0x17c4   :  { %7865 = vpow2.f32 %v6279_v47 }
0x17c5   :  { %7867 = vpow2.f32 %v6278_v57 }
0x17c6   :  { %7869 = vtanh.f32 %v7414_v14 }
0x17c7   :  { %7871 = vtanh.f32 %v7415_v37 }
0x17ca   :  { %v7862_v59 = vpop.eup %7861 }
0x17cb   :  { %v7864_v62 = vpop.eup %7863  ;;  %v2844_v1 = vadd.f32 1.0, %v7862_v59 }
0x17cc   :  { %v2843_v16 = vadd.f32 1.0, %v7864_v62 }
0x17cd   :  { %7873 = vrcp.f32 %v2844_v1 }
0x17ce   :  { %v7866_v18 = vpop.eup %7865  ;;  %7875 = vrcp.f32 %v2843_v16 }
0x17cf   :  { %v7868_v20 = vpop.eup %7867  ;;  %v2846_v22 = vadd.f32 1.0, %v7866_v18  ;;  %7877 = vtanh.f32 %v7416_v29 }
0x17d0   :  { %v2845_v51 = vadd.f32 1.0, %v7868_v20  ;;  %7879 = vtanh.f32 %v7417_v45  ;;  %v7870_v24 = vpop.eup %7869 }
0x17d1   :  { %7881 = vrcp.f32 %v2846_v22  ;;  %v7872_v33 = vpop.eup %7871 }
0x17d2   :  { %7883 = vrcp.f32 %v2845_v51 }
0x17d7   :  { %v7874_v30 = vpop.eup %7873 }
0x17d8   :  { %v7876_v25 = vpop.eup %7875  ;;  %v2860_v27 = vsel %vm8549_vm4, %v7870_v24, %v7874_v30 }
0x17d9   :  { %v7878_v31 = vpop.eup %7877  ;;  %2873 = vrot.lane.b32.xlu1 %v2860_v27, %s8278_s17  ;;  %v2859_v34 = vsel %vm8549_vm4, %v7872_v33, %v7876_v25  ;;  %v2864_v9 = vmul.f32 0.0, %v2860_v27 }
0x17da   :  { %v7880_v32 = vpop.eup %7879  ;;  %2871 = vrot.lane.b32.xlu0 %v2859_v34, %s8278_s17  ;;  %v2863_v2 = vmul.f32 0.0, %v2859_v34 }
0x17db   :  { %v7882_v21 = vpop.eup %7881 }
0x17dc   :  { %v7884_v46 = vpop.eup %7883  ;;  %v2862_v40 = vsel %vm8549_vm4, %v7878_v31, %v7882_v21 }
0x17dd   :  { %2877 = vrot.lane.b32.xlu1 %v2862_v40, %s8278_s17  ;;  %v2861_v53 = vsel %vm8549_vm4, %v7880_v32, %v7884_v46  ;;  %v2866_v17 = vmul.f32 0.0, %v2862_v40 }
0x17de   :  { %2875 = vrot.lane.b32.xlu0 %v2861_v53, %s8278_s17  ;;  %v2865_v52 = vmul.f32 0.0, %v2861_v53 }
0x184b   :  { %v2874_v54 = vpop.permute.xlu1 %2873 }
0x184c   :  { %v2884_v42 = vmul.f32 %v2874_v54, %v2860_v27  ;;  %v2872_v26 = vpop.permute.xlu0 %2871 }
0x184d   :  { %v2883_v56 = vmul.f32 %v2872_v26, %v2859_v34 }
0x184e   :  { %2893 = vrot.lane.b32.xlu1 %v2884_v42, %s8279_s18 }
0x184f   :  { %v2878_v58 = vpop.permute.xlu1 %2877  ;;  %2891 = vrot.lane.b32.xlu0 %v2883_v56, %s8279_s18 }
0x1850   :  { %v2886_v61 = vmul.f32 %v2878_v58, %v2862_v40  ;;  %v2876_v0 = vpop.permute.xlu0 %2875 }
0x1851   :  { %v2885_v8 = vmul.f32 %v2876_v0, %v2861_v53 }
0x1852   :  { %2897 = vrot.lane.b32.xlu1 %v2886_v61, %s8279_s18 }
0x1853   :  { %2895 = vrot.lane.b32.xlu0 %v2885_v8, %s8279_s18 }
0x18c0   :  { %v2894_v10 = vpop.permute.xlu1 %2893 }
0x18c1   :  { %v9235_v5 = vadd.f32 %v2894_v10, %v2864_v9  ;;  %v2892_v15 = vpop.permute.xlu0 %2891 }
0x18c2   :  { %v9237_v48 = vadd.f32 %v2892_v15, %v2863_v2 }
0x18c3   :  { %7885 = vtanh.f32 %v9235_v5 }
0x18c4   :  { %7887 = vtanh.f32 %v9237_v48  ;;  %v2898_v35 = vpop.permute.xlu1 %2897 }
0x18c5   :  { %v9241_v7 = vadd.f32 %v2898_v35, %v2866_v17  ;;  %v2896_v49 = vpop.permute.xlu0 %2895 }
0x18c6   :  { %v9243_v50 = vadd.f32 %v2896_v49, %v2865_v52 }
0x18c7   :  { %7889 = vtanh.f32 %v9241_v7 }
0x18c8   :  { %7891 = vtanh.f32 %v9243_v50 }
0x18cd   :  { %v7886_v13 = vpop.eup %7885 }
0x18ce   :  { %v7888_v19 = vpop.eup %7887  ;;  %2917 = vrot.lane.b32.xlu1 %v7886_v13, %s8278_s17 }
0x18cf   :  { %2915 = vrot.lane.b32.xlu0 %v7888_v19, %s8278_s17 }
0x18d1   :  { %v7890_v23 = vpop.eup %7889 }
0x18d2   :  { %v7892_v36 = vpop.eup %7891  ;;  %2921 = vrot.lane.b32.xlu1 %v7890_v23, %s8278_s17 }
0x18d3   :  { %2919 = vrot.lane.b32.xlu0 %v7892_v36, %s8278_s17 }
0x1940   :  { %v2918_v12 = vpop.permute.xlu1 %2917 }
0x1941   :  { %v2928_v44 = vmul.f32 %v2918_v12, %v2860_v27  ;;  %v2916_v14 = vpop.permute.xlu0 %2915 }
0x1942   :  { %v2927_v11 = vmul.f32 %v2916_v14, %v2859_v34 }
0x1943   :  { %2941 = vrot.lane.b32.xlu1 %v2928_v44, %s8279_s18 }
0x1944   :  { %v2922_v37 = vpop.permute.xlu1 %2921  ;;  %2939 = vrot.lane.b32.xlu0 %v2927_v11, %s8279_s18 }
0x1945   :  { %v2930_v38 = vmul.f32 %v2922_v37, %v2862_v40  ;;  %v2920_v41 = vpop.permute.xlu0 %2919 }
0x1946   :  { %v2929_v43 = vmul.f32 %v2920_v41, %v2861_v53 }
0x1947   :  { %2945 = vrot.lane.b32.xlu1 %v2930_v38, %s8279_s18 }
0x1948   :  { %2943 = vrot.lane.b32.xlu0 %v2929_v43, %s8279_s18 }
0x19b5   :  { %v2942_v29 = vpop.permute.xlu1 %2941 }
0x19b6   :  { %v2940_v6 = vpop.permute.xlu0 %2939 }
0x19b7   :  { %6917 = vmatprep.mubr.msk.f32.mxu1 %vm462_vm5, %v2940_v6 }
0x19b8   :  { %6918 = vmatmul.mubr.msk.f32.vlgmr.msra.gmra.mrb[4].mxu1 %vm462_vm5, %v2942_v29 }
0x19b9   :  { %7243 = vmatpush3.bf16.msra.mxu1 %v9113_v4  ;;  %v2946_v47 = vpop.permute.xlu1 %2945 }
0x19ba   :  { %v2944_v45 = vpop.permute.xlu0 %2943  ;;  %7245 = vmatprep.subr.bf16.mxu1 %v9135_v3 }
0x19bb   :  { %6920 = vmatprep.mubr.msk.f32.mxu1 %vm462_vm5, %v2944_v45 }
0x19bc   :  { %6921 = vmatmul.mubr.msk.f32.gmra.mrb[6].mxu1 %vm462_vm5, %v2946_v47 }
0x19bd   :  { %7247 = vmatpush3.bf16.msra.mxu1 %v9135_v3 }
0x19be   :  { %7249 = vmatprep.subr.bf16.mxu1 %v9113_v4 }
0x1a8b   :  { %v6919_v57 = vpop.f32.mrb[4].mxu1 }
0x1a8c   :  { %v7418_v59 = vadd.f32 %v6919_v57, %v9213_v28  ;;  %v3021_v62 = vpop.f32.mrb[5].mxu1 }
0x1a8d   :  { %v7419_v1 = vadd.f32 %v9213_v28, %v3021_v62 }
0x1a8e   :  { %v6285_v16 = vmul.f32 -1.442695, %v7418_v59 }
0x1a8f   :  { %v6284_v18 = vmul.f32 -1.442695, %v7419_v1  ;;  %v6922_v20 = vpop.f32.mrb[6].mxu1 }
0x1a90   :  { %7893 = vpow2.f32 %v6285_v16  ;;  %v7420_v22 = vadd.f32 %v6922_v20, %v9213_v28  ;;  %v3031_v51 = vpop.f32.mrb[7].mxu1 }
0x1a91   :  { %7895 = vpow2.f32 %v6284_v18  ;;  %v7421_v24 = vadd.f32 %v9213_v28, %v3031_v51 }
0x1a92   :  { %v6287_v33 = vmul.f32 -1.442695, %v7420_v22 }
0x1a93   :  { %v6286_v30 = vmul.f32 -1.442695, %v7421_v24 }
0x1a94   :  { %7897 = vpow2.f32 %v6287_v33 }
0x1a95   :  { %7899 = vpow2.f32 %v6286_v30 }
0x1a96   :  { %7901 = vtanh.f32 %v7418_v59 }
0x1a97   :  { %7903 = vtanh.f32 %v7419_v1 }
0x1a9a   :  { %v7894_v25 = vpop.eup %7893 }
0x1a9b   :  { %v7896_v27 = vpop.eup %7895  ;;  %v3057_v31 = vadd.f32 1.0, %v7894_v25 }
0x1a9c   :  { %v3056_v34 = vadd.f32 1.0, %v7896_v27 }
0x1a9d   :  { %7905 = vrcp.f32 %v3057_v31 }
0x1a9e   :  { %v7898_v32 = vpop.eup %7897  ;;  %7907 = vrcp.f32 %v3056_v34 }
0x1a9f   :  { %v7900_v21 = vpop.eup %7899  ;;  %v3059_v46 = vadd.f32 1.0, %v7898_v32  ;;  %7909 = vtanh.f32 %v7420_v22 }
0x1aa0   :  { %v3058_v40 = vadd.f32 1.0, %v7900_v21  ;;  %7911 = vtanh.f32 %v7421_v24  ;;  %v7902_v53 = vpop.eup %7901 }
0x1aa1   :  { %7913 = vrcp.f32 %v3059_v46  ;;  %v7904_v54 = vpop.eup %7903 }
0x1aa2   :  { %7915 = vrcp.f32 %v3058_v40 }
0x1aa7   :  { %v7906_v42 = vpop.eup %7905 }
0x1aa8   :  { %v7908_v26 = vpop.eup %7907  ;;  %v3073_v56 = vsel %vm8549_vm4, %v7902_v53, %v7906_v42 }
0x1aa9   :  { %v7910_v58 = vpop.eup %7909  ;;  %3086 = vrot.lane.b32.xlu1 %v3073_v56, %s8278_s17  ;;  %v3072_v61 = vsel %vm8549_vm4, %v7904_v54, %v7908_v26  ;;  %v3077_v36 = vmul.f32 %v3073_v56, %v9235_v5 }
0x1aaa   :  { %v7912_v0 = vpop.eup %7911  ;;  %3084 = vrot.lane.b32.xlu0 %v3072_v61, %s8278_s17  ;;  %v3076_v44 = vmul.f32 %v3072_v61, %v9237_v48 }
0x1aab   :  { %v7914_v8 = vpop.eup %7913 }
0x1aac   :  { %v7916_v9 = vpop.eup %7915  ;;  %v3075_v10 = vsel %vm8549_vm4, %v7910_v58, %v7914_v8 }
0x1aad   :  { %3090 = vrot.lane.b32.xlu1 %v3075_v10, %s8278_s17  ;;  %v3074_v2 = vsel %vm8549_vm4, %v7912_v0, %v7916_v9  ;;  %v3079_v38 = vmul.f32 %v3075_v10, %v9241_v7 }
0x1aae   :  { %3088 = vrot.lane.b32.xlu0 %v3074_v2, %s8278_s17  ;;  %v3078_v43 = vmul.f32 %v3074_v2, %v9243_v50 }
0x1b1b   :  { %v3087_v15 = vpop.permute.xlu1 %3086 }
0x1b1c   :  { %v3097_v17 = vmul.f32 %v3087_v15, %v3073_v56  ;;  %v3085_v35 = vpop.permute.xlu0 %3084 }
0x1b1d   :  { %v3096_v52 = vmul.f32 %v3085_v35, %v3072_v61 }
0x1b1e   :  { %3106 = vrot.lane.b32.xlu1 %v3097_v17, %s8279_s18 }
0x1b1f   :  { %v3091_v49 = vpop.permute.xlu1 %3090  ;;  %3104 = vrot.lane.b32.xlu0 %v3096_v52, %s8279_s18 }
0x1b20   :  { %v3099_v13 = vmul.f32 %v3091_v49, %v3075_v10  ;;  %v3089_v19 = vpop.permute.xlu0 %3088 }
0x1b21   :  { %v3098_v23 = vmul.f32 %v3089_v19, %v3074_v2 }
0x1b22   :  { %3110 = vrot.lane.b32.xlu1 %v3099_v13, %s8279_s18 }
0x1b23   :  { %3108 = vrot.lane.b32.xlu0 %v3098_v23, %s8279_s18 }
0x1b90   :  { %v3107_v12 = vpop.permute.xlu1 %3106 }
0x1b91   :  { %v9285_v14 = vadd.f32 %v3107_v12, %v3077_v36  ;;  %v3105_v11 = vpop.permute.xlu0 %3104 }
0x1b92   :  { %v9287_v37 = vadd.f32 %v3105_v11, %v3076_v44 }
0x1b93   :  { %7917 = vtanh.f32 %v9285_v14 }
0x1b94   :  { %7919 = vtanh.f32 %v9287_v37  ;;  %v3111_v41 = vpop.permute.xlu1 %3110 }
0x1b95   :  { %v9293_v29 = vadd.f32 %v3111_v41, %v3079_v38  ;;  %v3109_v5 = vpop.permute.xlu0 %3108 }
0x1b96   :  { %v9295_v6 = vadd.f32 %v3109_v5, %v3078_v43 }
0x1b97   :  { %7921 = vtanh.f32 %v9293_v29 }
0x1b98   :  { %7923 = vtanh.f32 %v9295_v6 }
0x1b9d   :  { %v7918_v48 = vpop.eup %7917 }
0x1b9e   :  { %v7920_v45 = vpop.eup %7919  ;;  %3130 = vrot.lane.b32.xlu1 %v7918_v48, %s8278_s17 }
0x1b9f   :  { %3128 = vrot.lane.b32.xlu0 %v7920_v45, %s8278_s17 }
0x1ba1   :  { %v7922_v7 = vpop.eup %7921 }
0x1ba2   :  { %v7924_v47 = vpop.eup %7923  ;;  %3134 = vrot.lane.b32.xlu1 %v7922_v7, %s8278_s17 }
0x1ba3   :  { %3132 = vrot.lane.b32.xlu0 %v7924_v47, %s8278_s17 }
0x1c10   :  { %v3131_v50 = vpop.permute.xlu1 %3130 }
0x1c11   :  { %v3141_v57 = vmul.f32 %v3131_v50, %v3073_v56  ;;  %v3129_v59 = vpop.permute.xlu0 %3128 }
0x1c12   :  { %v3140_v62 = vmul.f32 %v3129_v59, %v3072_v61 }
0x1c13   :  { %3154 = vrot.lane.b32.xlu1 %v3141_v57, %s8279_s18 }
0x1c14   :  { %v3135_v1 = vpop.permute.xlu1 %3134  ;;  %3152 = vrot.lane.b32.xlu0 %v3140_v62, %s8279_s18 }
0x1c15   :  { %v3143_v16 = vmul.f32 %v3135_v1, %v3075_v10  ;;  %v3133_v18 = vpop.permute.xlu0 %3132 }
0x1c16   :  { %v3142_v20 = vmul.f32 %v3133_v18, %v3074_v2 }
0x1c17   :  { %3158 = vrot.lane.b32.xlu1 %v3143_v16, %s8279_s18 }
0x1c18   :  { %3156 = vrot.lane.b32.xlu0 %v3142_v20, %s8279_s18 }
0x1c85   :  { %v3155_v22 = vpop.permute.xlu1 %3154 }
0x1c86   :  { %v3153_v51 = vpop.permute.xlu0 %3152 }
0x1c87   :  { %6931 = vmatprep.mubr.msk.f32.mxu1 %vm462_vm5, %v3153_v51 }
0x1c88   :  { %6932 = vmatmul.mubr.msk.f32.vlgmr.msra.gmra.mrb[8].mxu1 %vm462_vm5, %v3155_v22 }
0x1c89   :  { %7251 = vmatpush3.bf16.msra.mxu1 %v9113_v4  ;;  %v3159_v33 = vpop.permute.xlu1 %3158 }
0x1c8a   :  { %v3157_v24 = vpop.permute.xlu0 %3156  ;;  %7253 = vmatprep.subr.bf16.mxu1 %v9135_v3 }
0x1c8b   :  { %6934 = vmatprep.mubr.msk.f32.mxu1 %vm462_vm5, %v3157_v24 }
0x1c8c   :  { %6935 = vmatmul.mubr.msk.f32.gmra.mrb[10].mxu1 %vm462_vm5, %v3159_v33 }
0x1c8d   :  { %7255 = vmatpush3.bf16.msra.mxu1 %v9135_v3 }
0x1c8e   :  { %7257 = vmatprep.subr.bf16.mxu1 %v9113_v4 }
0x1d5b   :  { %v6933_v30 = vpop.f32.mrb[8].mxu1 }
0x1d5c   :  { %v7422_v25 = vadd.f32 %v6933_v30, %v9213_v28  ;;  %v3234_v27 = vpop.f32.mrb[9].mxu1 }
0x1d5d   :  { %v7423_v31 = vadd.f32 %v9213_v28, %v3234_v27 }
0x1d5e   :  { %v6293_v34 = vmul.f32 -1.442695, %v7422_v25 }
0x1d5f   :  { %v6292_v32 = vmul.f32 -1.442695, %v7423_v31  ;;  %v6936_v21 = vpop.f32.mrb[10].mxu1 }
0x1d60   :  { %7925 = vpow2.f32 %v6293_v34  ;;  %v7424_v46 = vadd.f32 %v6936_v21, %v9213_v28  ;;  %v3244_v40 = vpop.f32.mrb[11].mxu1 }
0x1d61   :  { %7927 = vpow2.f32 %v6292_v32  ;;  %v7425_v53 = vadd.f32 %v9213_v28, %v3244_v40 }
0x1d62   :  { %v6295_v54 = vmul.f32 -1.442695, %v7424_v46 }
0x1d63   :  { %v6294_v42 = vmul.f32 -1.442695, %v7425_v53 }
0x1d64   :  { %7929 = vpow2.f32 %v6295_v54 }
0x1d65   :  { %7931 = vpow2.f32 %v6294_v42 }
0x1d66   :  { %7933 = vtanh.f32 %v7422_v25 }
0x1d67   :  { %7935 = vtanh.f32 %v7423_v31 }
0x1d6a   :  { %v7926_v26 = vpop.eup %7925 }
0x1d6b   :  { %v7928_v56 = vpop.eup %7927  ;;  %v3270_v58 = vadd.f32 1.0, %v7926_v26 }
0x1d6c   :  { %v3269_v61 = vadd.f32 1.0, %v7928_v56 }
0x1d6d   :  { %7937 = vrcp.f32 %v3270_v58 }
0x1d6e   :  { %v7930_v0 = vpop.eup %7929  ;;  %7939 = vrcp.f32 %v3269_v61 }
0x1d6f   :  { %v7932_v8 = vpop.eup %7931  ;;  %v3272_v9 = vadd.f32 1.0, %v7930_v0  ;;  %7941 = vtanh.f32 %v7424_v46 }
0x1d70   :  { %v3271_v10 = vadd.f32 1.0, %v7932_v8  ;;  %7943 = vtanh.f32 %v7425_v53  ;;  %v7934_v2 = vpop.eup %7933 }
0x1d71   :  { %7945 = vrcp.f32 %v3272_v9  ;;  %v7936_v15 = vpop.eup %7935 }
0x1d72   :  { %7947 = vrcp.f32 %v3271_v10 }
0x1d77   :  { %v7938_v17 = vpop.eup %7937 }
0x1d78   :  { %v7940_v35 = vpop.eup %7939  ;;  %v3286_v52 = vsel %vm8549_vm4, %v7934_v2, %v7938_v17 }
0x1d79   :  { %v7942_v49 = vpop.eup %7941  ;;  %3299 = vrot.lane.b32.xlu1 %v3286_v52, %s8278_s17  ;;  %v3285_v13 = vsel %vm8549_vm4, %v7936_v15, %v7940_v35  ;;  %v3290_v47 = vmul.f32 %v3286_v52, %v9285_v14 }
0x1d7a   :  { %v7944_v19 = vpop.eup %7943  ;;  %3297 = vrot.lane.b32.xlu0 %v3285_v13, %s8278_s17  ;;  %v3289_v57 = vmul.f32 %v3285_v13, %v9287_v37 }
0x1d7b   :  { %v7946_v23 = vpop.eup %7945 }
0x1d7c   :  { %v7948_v36 = vpop.eup %7947  ;;  %v3288_v12 = vsel %vm8549_vm4, %v7942_v49, %v7946_v23 }
0x1d7d   :  { %3303 = vrot.lane.b32.xlu1 %v3288_v12, %s8278_s17  ;;  %v3287_v44 = vsel %vm8549_vm4, %v7944_v19, %v7948_v36  ;;  %v3292_v16 = vmul.f32 %v3288_v12, %v9293_v29 }
0x1d7e   :  { %3301 = vrot.lane.b32.xlu0 %v3287_v44, %s8278_s17  ;;  %v3291_v20 = vmul.f32 %v3287_v44, %v9295_v6 }
0x1deb   :  { %v3300_v11 = vpop.permute.xlu1 %3299 }
0x1dec   :  { %v3310_v38 = vmul.f32 %v3300_v11, %v3286_v52  ;;  %v3298_v41 = vpop.permute.xlu0 %3297 }
0x1ded   :  { %v3309_v43 = vmul.f32 %v3298_v41, %v3285_v13 }
0x1dee   :  { %3319 = vrot.lane.b32.xlu1 %v3310_v38, %s8279_s18 }
0x1def   :  { %v3304_v5 = vpop.permute.xlu1 %3303  ;;  %3317 = vrot.lane.b32.xlu0 %v3309_v43, %s8279_s18 }
0x1df0   :  { %v3312_v48 = vmul.f32 %v3304_v5, %v3288_v12  ;;  %v3302_v45 = vpop.permute.xlu0 %3301 }
0x1df1   :  { %v3311_v7 = vmul.f32 %v3302_v45, %v3287_v44 }
0x1df2   :  { %3323 = vrot.lane.b32.xlu1 %v3312_v48, %s8279_s18 }
0x1df3   :  { %3321 = vrot.lane.b32.xlu0 %v3311_v7, %s8279_s18 }
0x1e60   :  { %v3320_v50 = vpop.permute.xlu1 %3319 }
0x1e61   :  { %v9337_v59 = vadd.f32 %v3320_v50, %v3290_v47  ;;  %v3318_v62 = vpop.permute.xlu0 %3317 }
0x1e62   :  { %v9339_v1 = vadd.f32 %v3318_v62, %v3289_v57 }
0x1e63   :  { %7949 = vtanh.f32 %v9337_v59 }
0x1e64   :  { %7951 = vtanh.f32 %v9339_v1  ;;  %v3324_v18 = vpop.permute.xlu1 %3323 }
0x1e65   :  { %v9345_v22 = vadd.f32 %v3324_v18, %v3292_v16  ;;  %v3322_v14 = vpop.permute.xlu0 %3321 }
0x1e66   :  { %v9347_v51 = vadd.f32 %v3322_v14, %v3291_v20 }
0x1e67   :  { %7953 = vtanh.f32 %v9345_v22 }
0x1e68   :  { %7955 = vtanh.f32 %v9347_v51 }
0x1e6d   :  { %v7950_v37 = vpop.eup %7949 }
0x1e6e   :  { %v7952_v24 = vpop.eup %7951  ;;  %3343 = vrot.lane.b32.xlu1 %v7950_v37, %s8278_s17 }
0x1e6f   :  { %3341 = vrot.lane.b32.xlu0 %v7952_v24, %s8278_s17 }
0x1e71   :  { %v7954_v29 = vpop.eup %7953 }
0x1e72   :  { %v7956_v33 = vpop.eup %7955  ;;  %3347 = vrot.lane.b32.xlu1 %v7954_v29, %s8278_s17 }
0x1e73   :  { %3345 = vrot.lane.b32.xlu0 %v7956_v33, %s8278_s17 }
0x1ee0   :  { %v3344_v6 = vpop.permute.xlu1 %3343 }
0x1ee1   :  { %v3354_v30 = vmul.f32 %v3344_v6, %v3286_v52  ;;  %v3342_v25 = vpop.permute.xlu0 %3341 }
0x1ee2   :  { %v3353_v27 = vmul.f32 %v3342_v25, %v3285_v13 }
0x1ee3   :  { %3367 = vrot.lane.b32.xlu1 %v3354_v30, %s8279_s18 }
0x1ee4   :  { %v3348_v31 = vpop.permute.xlu1 %3347  ;;  %3365 = vrot.lane.b32.xlu0 %v3353_v27, %s8279_s18 }
0x1ee5   :  { %v3356_v34 = vmul.f32 %v3348_v31, %v3288_v12  ;;  %v3346_v32 = vpop.permute.xlu0 %3345 }
0x1ee6   :  { %v3355_v21 = vmul.f32 %v3346_v32, %v3287_v44 }
0x1ee7   :  { %3371 = vrot.lane.b32.xlu1 %v3356_v34, %s8279_s18 }
0x1ee8   :  { %3369 = vrot.lane.b32.xlu0 %v3355_v21, %s8279_s18 }
0x1f55   :  { %v3368_v46 = vpop.permute.xlu1 %3367 }
0x1f56   :  { %v3366_v40 = vpop.permute.xlu0 %3365 }
0x1f57   :  { %6945 = vmatprep.mubr.msk.f32.mxu1 %vm462_vm5, %v3366_v40 }
0x1f58   :  { %6946 = vmatmul.mubr.msk.f32.vlgmr.msra.gmra.mrb[12].mxu1 %vm462_vm5, %v3368_v46 }
0x1f59   :  { %7259 = vmatpush3.bf16.msra.mxu1 %v9113_v4  ;;  %v3372_v54 = vpop.permute.xlu1 %3371 }
0x1f5a   :  { %v3370_v53 = vpop.permute.xlu0 %3369  ;;  %7261 = vmatprep.subr.bf16.mxu1 %v9135_v3 }
0x1f5b   :  { %6948 = vmatprep.mubr.msk.f32.mxu1 %vm462_vm5, %v3370_v53 }
0x1f5c   :  { %6949 = vmatmul.mubr.msk.f32.gmra.mrb[14].mxu1 %vm462_vm5, %v3372_v54 }
0x1f5d   :  { %7263 = vmatpush3.bf16.msra.mxu1 %v9135_v3 }
0x1f5e   :  { %7265 = vmatprep.subr.bf16.mxu1 %v9113_v4 }
0x202b   :  { %v6947_v42 = vpop.f32.mrb[12].mxu1 }
0x202c   :  { %v7426_v26 = vadd.f32 %v6947_v42, %v9213_v28  ;;  %v3447_v56 = vpop.f32.mrb[13].mxu1 }
0x202d   :  { %v7427_v58 = vadd.f32 %v9213_v28, %v3447_v56 }
0x202e   :  { %v6301_v61 = vmul.f32 -1.442695, %v7426_v26 }
0x202f   :  { %v6300_v0 = vmul.f32 -1.442695, %v7427_v58  ;;  %v6950_v8 = vpop.f32.mrb[14].mxu1 }
0x2030   :  { %7957 = vpow2.f32 %v6301_v61  ;;  %v7428_v9 = vadd.f32 %v6950_v8, %v9213_v28  ;;  %v3457_v10 = vpop.f32.mrb[15].mxu1 }
0x2031   :  { %7959 = vpow2.f32 %v6300_v0  ;;  %v7429_v2 = vadd.f32 %v9213_v28, %v3457_v10 }
0x2032   :  { %v6303_v15 = vmul.f32 -1.442695, %v7428_v9 }
0x2033   :  { %v6302_v17 = vmul.f32 -1.442695, %v7429_v2 }
0x2034   :  { %7961 = vpow2.f32 %v6303_v15 }
0x2035   :  { %7963 = vpow2.f32 %v6302_v17 }
0x2036   :  { %7965 = vtanh.f32 %v7426_v26 }
0x2037   :  { %7967 = vtanh.f32 %v7427_v58 }
0x203a   :  { %v7958_v35 = vpop.eup %7957 }
0x203b   :  { %v7960_v52 = vpop.eup %7959  ;;  %v3483_v49 = vadd.f32 1.0, %v7958_v35 }
0x203c   :  { %v3482_v13 = vadd.f32 1.0, %v7960_v52 }
0x203d   :  { %7969 = vrcp.f32 %v3483_v49 }
0x203e   :  { %v7962_v19 = vpop.eup %7961  ;;  %7971 = vrcp.f32 %v3482_v13 }
0x203f   :  { %v7964_v23 = vpop.eup %7963  ;;  %v3485_v36 = vadd.f32 1.0, %v7962_v19  ;;  %7973 = vtanh.f32 %v7428_v9 }
0x2040   :  { %v3484_v12 = vadd.f32 1.0, %v7964_v23  ;;  %7975 = vtanh.f32 %v7429_v2  ;;  %v7966_v44 = vpop.eup %7965 }
0x2041   :  { %7977 = vrcp.f32 %v3485_v36  ;;  %v7968_v11 = vpop.eup %7967 }
0x2042   :  { %7979 = vrcp.f32 %v3484_v12 }
0x2047   :  { %v7970_v38 = vpop.eup %7969 }
0x2048   :  { %v7972_v41 = vpop.eup %7971  ;;  %v3499_v43 = vsel %vm8549_vm4, %v7966_v44, %v7970_v38 }
0x2049   :  { %v7974_v5 = vpop.eup %7973  ;;  %3512 = vrot.lane.b32.xlu1 %v3499_v43, %s8278_s17  ;;  %v3498_v48 = vsel %vm8549_vm4, %v7968_v11, %v7972_v41  ;;  %v3503_v33 = vmul.f32 %v3499_v43, %v9337_v59 }
0x204a   :  { %v7976_v45 = vpop.eup %7975  ;;  %3510 = vrot.lane.b32.xlu0 %v3498_v48, %s8278_s17  ;;  %v3502_v30 = vmul.f32 %v3498_v48, %v9339_v1 }
0x204b   :  { %v7978_v7 = vpop.eup %7977 }
0x204c   :  { %v7980_v47 = vpop.eup %7979  ;;  %v3501_v50 = vsel %vm8549_vm4, %v7974_v5, %v7978_v7 }
0x204d   :  { %3516 = vrot.lane.b32.xlu1 %v3501_v50, %s8278_s17  ;;  %v3500_v57 = vsel %vm8549_vm4, %v7976_v45, %v7980_v47  ;;  %v3505_v34 = vmul.f32 %v3501_v50, %v9345_v22 }
0x204e   :  { %3514 = vrot.lane.b32.xlu0 %v3500_v57, %s8278_s17  ;;  %v3504_v21 = vmul.f32 %v3500_v57, %v9347_v51 }
0x20bb   :  { %v3513_v62 = vpop.permute.xlu1 %3512 }
0x20bc   :  { %v3523_v16 = vmul.f32 %v3513_v62, %v3499_v43  ;;  %v3511_v18 = vpop.permute.xlu0 %3510 }
0x20bd   :  { %v3522_v20 = vmul.f32 %v3511_v18, %v3498_v48 }
0x20be   :  { %3532 = vrot.lane.b32.xlu1 %v3523_v16, %s8279_s18 }
0x20bf   :  { %v3517_v14 = vpop.permute.xlu1 %3516  ;;  %3530 = vrot.lane.b32.xlu0 %v3522_v20, %s8279_s18 }
0x20c0   :  { %v3525_v37 = vmul.f32 %v3517_v14, %v3501_v50  ;;  %v3515_v24 = vpop.permute.xlu0 %3514 }
0x20c1   :  { %v3524_v29 = vmul.f32 %v3515_v24, %v3500_v57 }
0x20c2   :  { %3536 = vrot.lane.b32.xlu1 %v3525_v37, %s8279_s18 }
0x20c3   :  { %3534 = vrot.lane.b32.xlu0 %v3524_v29, %s8279_s18 }
0x2130   :  { %v3533_v6 = vpop.permute.xlu1 %3532 }
0x2131   :  { %v9389_v25 = vadd.f32 %v3533_v6, %v3503_v33  ;;  %v3531_v27 = vpop.permute.xlu0 %3530 }
0x2132   :  { %v9391_v31 = vadd.f32 %v3531_v27, %v3502_v30 }
0x2133   :  { %7981 = vtanh.f32 %v9389_v25 }
0x2134   :  { %7983 = vtanh.f32 %v9391_v31  ;;  %v3537_v32 = vpop.permute.xlu1 %3536 }
0x2135   :  { %v9397_v46 = vadd.f32 %v3537_v32, %v3505_v34  ;;  %v3535_v59 = vpop.permute.xlu0 %3534 }
0x2136   :  { %v9399_v40 = vadd.f32 %v3535_v59, %v3504_v21 }
0x2137   :  { %7985 = vtanh.f32 %v9397_v46 }
0x2138   :  { %7987 = vtanh.f32 %v9399_v40 }
0x213d   :  { %v7982_v1 = vpop.eup %7981 }
0x213e   :  { %v7984_v53 = vpop.eup %7983  ;;  %3556 = vrot.lane.b32.xlu1 %v7982_v1, %s8278_s17 }
0x213f   :  { %3554 = vrot.lane.b32.xlu0 %v7984_v53, %s8278_s17 }
0x2141   :  { %v7986_v22 = vpop.eup %7985 }
0x2142   :  { %v7988_v54 = vpop.eup %7987  ;;  %3560 = vrot.lane.b32.xlu1 %v7986_v22, %s8278_s17 }
0x2143   :  { %3558 = vrot.lane.b32.xlu0 %v7988_v54, %s8278_s17 }
0x21b0   :  { %v3557_v51 = vpop.permute.xlu1 %3556 }
0x21b1   :  { %v3567_v42 = vmul.f32 %v3557_v51, %v3499_v43  ;;  %v3555_v26 = vpop.permute.xlu0 %3554 }
0x21b2   :  { %v3566_v56 = vmul.f32 %v3555_v26, %v3498_v48 }
0x21b3   :  { %3580 = vrot.lane.b32.xlu1 %v3567_v42, %s8279_s18 }
0x21b4   :  { %v3561_v58 = vpop.permute.xlu1 %3560  ;;  %3578 = vrot.lane.b32.xlu0 %v3566_v56, %s8279_s18 }
0x21b5   :  { %v3569_v61 = vmul.f32 %v3561_v58, %v3501_v50  ;;  %v3559_v0 = vpop.permute.xlu0 %3558 }
0x21b6   :  { %v3568_v8 = vmul.f32 %v3559_v0, %v3500_v57 }
0x21b7   :  { %3584 = vrot.lane.b32.xlu1 %v3569_v61, %s8279_s18 }
0x21b8   :  { %3582 = vrot.lane.b32.xlu0 %v3568_v8, %s8279_s18 }
0x2225   :  { %v3581_v9 = vpop.permute.xlu1 %3580 }
0x2226   :  { %v3579_v10 = vpop.permute.xlu0 %3578 }
0x2227   :  { %6959 = vmatprep.mubr.msk.f32.mxu1 %vm462_vm5, %v3579_v10 }
0x2228   :  { %6960 = vmatmul.mubr.msk.f32.vlgmr.msra.gmra.mrb[16].mxu1 %vm462_vm5, %v3581_v9 }
0x2229   :  { %7267 = vmatpush3.bf16.msra.mxu1 %v9113_v4  ;;  %v3585_v15 = vpop.permute.xlu1 %3584 }
0x222a   :  { %v3583_v2 = vpop.permute.xlu0 %3582  ;;  %7269 = vmatprep.subr.bf16.mxu1 %v9135_v3 }
0x222b   :  { %6962 = vmatprep.mubr.msk.f32.mxu1 %vm462_vm5, %v3583_v2 }
0x222c   :  { %6963 = vmatmul.mubr.msk.f32.gmra.mrb[18].mxu1 %vm462_vm5, %v3585_v15 }
0x222d   :  { %7271 = vmatpush3.bf16.msra.mxu1 %v9135_v3 }
0x222e   :  { %7273 = vmatprep.subr.bf16.mxu1 %v9113_v4 }
0x22fb   :  { %v6961_v17 = vpop.f32.mrb[16].mxu1 }
0x22fc   :  { %v7430_v35 = vadd.f32 %v6961_v17, %v9213_v28  ;;  %v3660_v52 = vpop.f32.mrb[17].mxu1 }
0x22fd   :  { %v7431_v49 = vadd.f32 %v9213_v28, %v3660_v52 }
0x22fe   :  { %v6309_v13 = vmul.f32 -1.442695, %v7430_v35 }
0x22ff   :  { %v6308_v19 = vmul.f32 -1.442695, %v7431_v49  ;;  %v6964_v23 = vpop.f32.mrb[18].mxu1 }
0x2300   :  { %7989 = vpow2.f32 %v6309_v13  ;;  %v7432_v36 = vadd.f32 %v6964_v23, %v9213_v28  ;;  %v3670_v12 = vpop.f32.mrb[19].mxu1 }
0x2301   :  { %7991 = vpow2.f32 %v6308_v19  ;;  %v7433_v44 = vadd.f32 %v9213_v28, %v3670_v12 }
0x2302   :  { %v6311_v11 = vmul.f32 -1.442695, %v7432_v36 }
0x2303   :  { %v6310_v38 = vmul.f32 -1.442695, %v7433_v44 }
0x2304   :  { %7993 = vpow2.f32 %v6311_v11 }
0x2305   :  { %7995 = vpow2.f32 %v6310_v38  ;;  %v9474_v38 = vld [vmem:[%s10190_s6] ss:$0 sm:$0xff] }
0x2306   :  { %7997 = vtanh.f32 %v7430_v35 }
0x2307   :  { %7999 = vtanh.f32 %v7431_v49 }
0x230a   :  { %v7990_v41 = vpop.eup %7989 }
0x230b   :  { %v7992_v43 = vpop.eup %7991  ;;  %v3696_v5 = vadd.f32 1.0, %v7990_v41 }
0x230c   :  { %v3695_v48 = vadd.f32 1.0, %v7992_v43 }
0x230d   :  { %8001 = vrcp.f32 %v3696_v5 }
0x230e   :  { %v7994_v45 = vpop.eup %7993  ;;  %8003 = vrcp.f32 %v3695_v48 }
0x230f   :  { %v7996_v7 = vpop.eup %7995  ;;  %v3698_v47 = vadd.f32 1.0, %v7994_v45  ;;  %8005 = vtanh.f32 %v7432_v36 }
0x2310   :  { %v3697_v50 = vadd.f32 1.0, %v7996_v7  ;;  %8007 = vtanh.f32 %v7433_v44  ;;  %v7998_v28 = vpop.eup %7997 }
0x2311   :  { %8009 = vrcp.f32 %v3698_v47  ;;  %v8000_v57 = vpop.eup %7999 }
0x2312   :  { %8011 = vrcp.f32 %v3697_v50 }
0x2317   :  { %v8002_v62 = vpop.eup %8001 }
0x2318   :  { %v8004_v16 = vpop.eup %8003  ;;  %v3712_v18 = vsel %vm8549_vm4, %v7998_v28, %v8002_v62 }
0x2319   :  { %v8006_v20 = vpop.eup %8005  ;;  %3725 = vrot.lane.b32.xlu1 %v3712_v18, %s8278_s17  ;;  %v3711_v14 = vsel %vm8549_vm4, %v8000_v57, %v8004_v16  ;;  %v3716_v22 = vmul.f32 %v3712_v18, %v9389_v25 }
0x231a   :  { %v8008_v37 = vpop.eup %8007  ;;  %3723 = vrot.lane.b32.xlu0 %v3711_v14, %s8278_s17  ;;  %v3715_v51 = vmul.f32 %v3711_v14, %v9391_v31 }
0x231b   :  { %v8010_v24 = vpop.eup %8009 }
0x231c   :  { %v8012_v29 = vpop.eup %8011  ;;  %v3714_v33 = vsel %vm8549_vm4, %v8006_v20, %v8010_v24 }
0x231d   :  { %3729 = vrot.lane.b32.xlu1 %v3714_v33, %s8278_s17  ;;  %v3713_v6 = vsel %vm8549_vm4, %v8008_v37, %v8012_v29  ;;  %v3718_v58 = vmul.f32 %v3714_v33, %v9397_v46 }
0x231e   :  { %3727 = vrot.lane.b32.xlu0 %v3713_v6, %s8278_s17  ;;  %v3717_v0 = vmul.f32 %v3713_v6, %v9399_v40 }
0x238b   :  { %v3726_v30 = vpop.permute.xlu1 %3725 }
0x238c   :  { %v3736_v27 = vmul.f32 %v3726_v30, %v3712_v18  ;;  %v3724_v34 = vpop.permute.xlu0 %3723 }
0x238d   :  { %v3735_v32 = vmul.f32 %v3724_v34, %v3711_v14 }
0x238e   :  { %3745 = vrot.lane.b32.xlu1 %v3736_v27, %s8279_s18 }
0x238f   :  { %v3730_v21 = vpop.permute.xlu1 %3729  ;;  %3743 = vrot.lane.b32.xlu0 %v3735_v32, %s8279_s18 }
0x2390   :  { %v3738_v59 = vmul.f32 %v3730_v21, %v3714_v33  ;;  %v3728_v1 = vpop.permute.xlu0 %3727 }
0x2391   :  { %v3737_v53 = vmul.f32 %v3728_v1, %v3713_v6 }
0x2392   :  { %3749 = vrot.lane.b32.xlu1 %v3738_v59, %s8279_s18 }
0x2393   :  { %3747 = vrot.lane.b32.xlu0 %v3737_v53, %s8279_s18 }
0x2400   :  { %v3746_v54 = vpop.permute.xlu1 %3745 }
0x2401   :  { %v9441_v42 = vadd.f32 %v3746_v54, %v3716_v22  ;;  %v3744_v26 = vpop.permute.xlu0 %3743 }
0x2402   :  { %v9443_v56 = vadd.f32 %v3744_v26, %v3715_v51 }
0x2403   :  { %8013 = vtanh.f32 %v9441_v42 }
0x2404   :  { %8015 = vtanh.f32 %v9443_v56  ;;  %v3750_v61 = vpop.permute.xlu1 %3749 }
0x2405   :  { %v9449_v8 = vadd.f32 %v3750_v61, %v3718_v58  ;;  %v3748_v25 = vpop.permute.xlu0 %3747 }
0x2406   :  { %v9451_v9 = vadd.f32 %v3748_v25, %v3717_v0 }
0x2407   :  { %8017 = vtanh.f32 %v9449_v8 }
0x2408   :  { %8019 = vtanh.f32 %v9451_v9 }
0x240d   :  { %v8014_v31 = vpop.eup %8013 }
0x240e   :  { %v8016_v10 = vpop.eup %8015  ;;  %3769 = vrot.lane.b32.xlu1 %v8014_v31, %s8278_s17 }
0x240f   :  { %3767 = vrot.lane.b32.xlu0 %v8016_v10, %s8278_s17 }
0x2411   :  { %v8018_v46 = vpop.eup %8017 }
0x2412   :  { %v8020_v2 = vpop.eup %8019  ;;  %3773 = vrot.lane.b32.xlu1 %v8018_v46, %s8278_s17 }
0x2413   :  { %3771 = vrot.lane.b32.xlu0 %v8020_v2, %s8278_s17 }
0x2480   :  { %v3770_v40 = vpop.permute.xlu1 %3769 }
0x2481   :  { %v3780_v15 = vmul.f32 %v3770_v40, %v3712_v18  ;;  %v3768_v17 = vpop.permute.xlu0 %3767 }
0x2482   :  { %v3779_v35 = vmul.f32 %v3768_v17, %v3711_v14 }
0x2483   :  { %3793 = vrot.lane.b32.xlu1 %v3780_v15, %s8279_s18 }
0x2484   :  { %v3774_v52 = vpop.permute.xlu1 %3773  ;;  %3791 = vrot.lane.b32.xlu0 %v3779_v35, %s8279_s18 }
0x2485   :  { %v3782_v49 = vmul.f32 %v3774_v52, %v3714_v33  ;;  %v3772_v13 = vpop.permute.xlu0 %3771 }
0x2486   :  { %v3781_v19 = vmul.f32 %v3772_v13, %v3713_v6 }
0x2487   :  { %3797 = vrot.lane.b32.xlu1 %v3782_v49, %s8279_s18 }
0x2488   :  { %3795 = vrot.lane.b32.xlu0 %v3781_v19, %s8279_s18 }
0x24f5   :  { %v3794_v23 = vpop.permute.xlu1 %3793 }
0x24f6   :  { %v3792_v36 = vpop.permute.xlu0 %3791 }
0x24f7   :  { %6973 = vmatprep.mubr.msk.f32.mxu1 %vm462_vm5, %v3792_v36 }
0x24f8   :  { %6974 = vmatmul.mubr.msk.f32.vlgmr.msra.gmra.mrb[20].mxu1 %vm462_vm5, %v3794_v23 }
0x24f9   :  { %7275 = vmatpush3.bf16.msra.mxu1 %v9113_v4  ;;  %v3798_v44 = vpop.permute.xlu1 %3797 }
0x24fa   :  { %v3796_v12 = vpop.permute.xlu0 %3795  ;;  %7277 = vmatprep.subr.bf16.mxu1 %v9135_v3 }
0x24fb   :  { %6976 = vmatprep.mubr.msk.f32.mxu1 %vm462_vm5, %v3796_v12 }
0x24fc   :  { %6977 = vmatmul.mubr.msk.f32.gmra.mrb[22].mxu1 %vm462_vm5, %v3798_v44 }
0x24fd   :  { %7279 = vmatpush3.bf16.msra.mxu1 %v9135_v3 }
0x24fe   :  { %7281 = vmatprep.subr.bf16.mxu1 %v9113_v4 }
0x25cb   :  { %v6975_v11 = vpop.f32.mrb[20].mxu1 }
0x25cc   :  { %v7434_v41 = vadd.f32 %v9474_v38, %v6975_v11  ;;  %v3873_v43 = vpop.f32.mrb[21].mxu1 }
0x25cd   :  { %v7435_v5 = vadd.f32 %v9474_v38, %v3873_v43 }
0x25ce   :  { %v6317_v48 = vmul.f32 -1.442695, %v7434_v41 }
0x25cf   :  { %v6316_v45 = vmul.f32 -1.442695, %v7435_v5  ;;  %v6978_v7 = vpop.f32.mrb[22].mxu1 }
0x25d0   :  { %8021 = vpow2.f32 %v6317_v48  ;;  %v7436_v47 = vadd.f32 %v9474_v38, %v6978_v7  ;;  %v3883_v50 = vpop.f32.mrb[23].mxu1 }
0x25d1   :  { %8023 = vpow2.f32 %v6316_v45  ;;  %v7437_v28 = vadd.f32 %v9474_v38, %v3883_v50 }
0x25d2   :  { %v6319_v57 = vmul.f32 -1.442695, %v7436_v47 }
0x25d3   :  { %v6318_v62 = vmul.f32 -1.442695, %v7437_v28 }
0x25d4   :  { %8025 = vpow2.f32 %v6319_v57 }
0x25d5   :  { %8027 = vpow2.f32 %v6318_v62 }
0x25d6   :  { %8029 = vtanh.f32 %v7434_v41 }
0x25d7   :  { %8031 = vtanh.f32 %v7435_v5 }
0x25da   :  { %v8022_v16 = vpop.eup %8021 }
0x25db   :  { %v8024_v18 = vpop.eup %8023  ;;  %v3909_v20 = vadd.f32 1.0, %v8022_v16 }
0x25dc   :  { %v3908_v14 = vadd.f32 1.0, %v8024_v18 }
0x25dd   :  { %8033 = vrcp.f32 %v3909_v20 }
0x25de   :  { %v8026_v37 = vpop.eup %8025  ;;  %8035 = vrcp.f32 %v3908_v14 }
0x25df   :  { %v8028_v24 = vpop.eup %8027  ;;  %v3911_v29 = vadd.f32 1.0, %v8026_v37  ;;  %8037 = vtanh.f32 %v7436_v47 }
0x25e0   :  { %v3910_v33 = vadd.f32 1.0, %v8028_v24  ;;  %8039 = vtanh.f32 %v7437_v28  ;;  %v8030_v6 = vpop.eup %8029 }
0x25e1   :  { %8041 = vrcp.f32 %v3911_v29  ;;  %v8032_v30 = vpop.eup %8031 }
0x25e2   :  { %8043 = vrcp.f32 %v3910_v33 }
0x25e7   :  { %v8034_v27 = vpop.eup %8033 }
0x25e8   :  { %v8036_v34 = vpop.eup %8035  ;;  %v3925_v32 = vsel %vm8549_vm4, %v8030_v6, %v8034_v27 }
0x25e9   :  { %v8038_v21 = vpop.eup %8037  ;;  %3938 = vrot.lane.b32.xlu1 %v3925_v32, %s8278_s17  ;;  %v3924_v59 = vsel %vm8549_vm4, %v8032_v30, %v8036_v34  ;;  %v3929_v2 = vmul.f32 %v3925_v32, %v9441_v42 }
0x25ea   :  { %v8040_v1 = vpop.eup %8039  ;;  %3936 = vrot.lane.b32.xlu0 %v3924_v59, %s8278_s17  ;;  %v3928_v15 = vmul.f32 %v3924_v59, %v9443_v56 }
0x25eb   :  { %v8042_v53 = vpop.eup %8041 }
0x25ec   :  { %v8044_v22 = vpop.eup %8043  ;;  %v3927_v54 = vsel %vm8549_vm4, %v8038_v21, %v8042_v53 }
0x25ed   :  { %3942 = vrot.lane.b32.xlu1 %v3927_v54, %s8278_s17  ;;  %v3926_v51 = vsel %vm8549_vm4, %v8040_v1, %v8044_v22  ;;  %v3931_v49 = vmul.f32 %v3927_v54, %v9449_v8 }
0x25ee   :  { %3940 = vrot.lane.b32.xlu0 %v3926_v51, %s8278_s17  ;;  %v3930_v19 = vmul.f32 %v3926_v51, %v9451_v9 }
0x265b   :  { %v3939_v26 = vpop.permute.xlu1 %3938 }
0x265c   :  { %v3949_v58 = vmul.f32 %v3939_v26, %v3925_v32  ;;  %v3937_v61 = vpop.permute.xlu0 %3936 }
0x265d   :  { %v3948_v0 = vmul.f32 %v3937_v61, %v3924_v59 }
0x265e   :  { %3958 = vrot.lane.b32.xlu1 %v3949_v58, %s8279_s18 }
0x265f   :  { %v3943_v25 = vpop.permute.xlu1 %3942  ;;  %3956 = vrot.lane.b32.xlu0 %v3948_v0, %s8279_s18 }
0x2660   :  { %v3951_v31 = vmul.f32 %v3943_v25, %v3927_v54  ;;  %v3941_v10 = vpop.permute.xlu0 %3940 }
0x2661   :  { %v3950_v46 = vmul.f32 %v3941_v10, %v3926_v51 }
0x2662   :  { %3962 = vrot.lane.b32.xlu1 %v3951_v31, %s8279_s18 }
0x2663   :  { %3960 = vrot.lane.b32.xlu0 %v3950_v46, %s8279_s18 }
0x26d0   :  { %v3959_v40 = vpop.permute.xlu1 %3958 }
0x26d1   :  { %v9498_v17 = vadd.f32 %v3959_v40, %v3929_v2  ;;  %v3957_v35 = vpop.permute.xlu0 %3956 }
0x26d2   :  { %v9500_v52 = vadd.f32 %v3957_v35, %v3928_v15 }
0x26d3   :  { %8045 = vtanh.f32 %v9498_v17 }
0x26d4   :  { %8047 = vtanh.f32 %v9500_v52  ;;  %v3963_v13 = vpop.permute.xlu1 %3962 }
0x26d5   :  { %v9506_v23 = vadd.f32 %v3963_v13, %v3931_v49  ;;  %v3961_v42 = vpop.permute.xlu0 %3960 }
0x26d6   :  { %v9508_v36 = vadd.f32 %v3961_v42, %v3930_v19 }
0x26d7   :  { %8049 = vtanh.f32 %v9506_v23 }
0x26d8   :  { %8051 = vtanh.f32 %v9508_v36 }
0x26dd   :  { %v8046_v56 = vpop.eup %8045 }
0x26de   :  { %v8048_v12 = vpop.eup %8047  ;;  %3982 = vrot.lane.b32.xlu1 %v8046_v56, %s8278_s17 }
0x26df   :  { %3980 = vrot.lane.b32.xlu0 %v8048_v12, %s8278_s17 }
0x26e1   :  { %v8050_v8 = vpop.eup %8049 }
0x26e2   :  { %v8052_v44 = vpop.eup %8051  ;;  %3986 = vrot.lane.b32.xlu1 %v8050_v8, %s8278_s17 }
0x26e3   :  { %3984 = vrot.lane.b32.xlu0 %v8052_v44, %s8278_s17 }
0x2750   :  { %v3983_v9 = vpop.permute.xlu1 %3982 }
0x2751   :  { %v3993_v11 = vmul.f32 %v3983_v9, %v3925_v32  ;;  %v3981_v41 = vpop.permute.xlu0 %3980 }
0x2752   :  { %v3992_v43 = vmul.f32 %v3981_v41, %v3924_v59 }
0x2753   :  { %4006 = vrot.lane.b32.xlu1 %v3993_v11, %s8279_s18 }
0x2754   :  { %v3987_v5 = vpop.permute.xlu1 %3986  ;;  %4004 = vrot.lane.b32.xlu0 %v3992_v43, %s8279_s18 }
0x2755   :  { %v3995_v48 = vmul.f32 %v3987_v5, %v3927_v54  ;;  %v3985_v45 = vpop.permute.xlu0 %3984 }
0x2756   :  { %v3994_v7 = vmul.f32 %v3985_v45, %v3926_v51 }
0x2757   :  { %4010 = vrot.lane.b32.xlu1 %v3995_v48, %s8279_s18 }
0x2758   :  { %4008 = vrot.lane.b32.xlu0 %v3994_v7, %s8279_s18 }
0x27c5   :  { %v4007_v47 = vpop.permute.xlu1 %4006 }
0x27c6   :  { %v4005_v50 = vpop.permute.xlu0 %4004 }
0x27c7   :  { %6987 = vmatprep.mubr.msk.f32.mxu1 %vm462_vm5, %v4005_v50 }
0x27c8   :  { %6988 = vmatmul.mubr.msk.f32.vlgmr.msra.gmra.mrb[24].mxu1 %vm462_vm5, %v4007_v47 }
0x27c9   :  { %7283 = vmatpush3.bf16.msra.mxu1 %v9113_v4  ;;  %v4011_v57 = vpop.permute.xlu1 %4010 }
0x27ca   :  { %v4009_v28 = vpop.permute.xlu0 %4008  ;;  %7285 = vmatprep.subr.bf16.mxu1 %v9135_v3 }
0x27cb   :  { %6990 = vmatprep.mubr.msk.f32.mxu1 %vm462_vm5, %v4009_v28 }
0x27cc   :  { %6991 = vmatmul.mubr.msk.f32.gmra.mrb[26].mxu1 %vm462_vm5, %v4011_v57 }
0x27cd   :  { %7287 = vmatpush3.bf16.msra.mxu1 %v9135_v3 }
0x289b   :  { %v6989_v62 = vpop.f32.mrb[24].mxu1 }
0x289c   :  { %v7438_v16 = vadd.f32 %v9474_v38, %v6989_v62  ;;  %v4086_v18 = vpop.f32.mrb[25].mxu1 }
0x289d   :  { %v7439_v20 = vadd.f32 %v9474_v38, %v4086_v18 }
0x289e   :  { %v6325_v14 = vmul.f32 -1.442695, %v7438_v16 }
0x289f   :  { %v6324_v37 = vmul.f32 -1.442695, %v7439_v20  ;;  %v6992_v24 = vpop.f32.mrb[26].mxu1 }
0x28a0   :  { %8053 = vpow2.f32 %v6325_v14  ;;  %v7440_v4 = vadd.f32 %v9474_v38, %v6992_v24  ;;  %v4096_v29 = vpop.f32.mrb[27].mxu1 }
0x28a1   :  { %8055 = vpow2.f32 %v6324_v37  ;;  %v7441_v33 = vadd.f32 %v9474_v38, %v4096_v29 }
0x28a2   :  { %v6327_v6 = vmul.f32 -1.442695, %v7440_v4 }
0x28a3   :  { %v6326_v30 = vmul.f32 -1.442695, %v7441_v33 }
0x28a4   :  { %8057 = vpow2.f32 %v6327_v6 }
0x28a5   :  { %8059 = vpow2.f32 %v6326_v30 }
0x28a6   :  { %8061 = vtanh.f32 %v7438_v16 }
0x28a7   :  { %8063 = vtanh.f32 %v7439_v20 }
0x28aa   :  { %v8054_v3 = vpop.eup %8053 }
0x28ab   :  { %v8056_v27 = vpop.eup %8055  ;;  %v4122_v34 = vadd.f32 1.0, %v8054_v3 }
0x28ac   :  { %v4121_v32 = vadd.f32 1.0, %v8056_v27 }
0x28ad   :  { %8065 = vrcp.f32 %v4122_v34 }
0x28ae   :  { %v8058_v21 = vpop.eup %8057  ;;  %8067 = vrcp.f32 %v4121_v32 }
0x28af   :  { %v8060_v59 = vpop.eup %8059  ;;  %v4124_v1 = vadd.f32 1.0, %v8058_v21  ;;  %8069 = vtanh.f32 %v7440_v4 }
0x28b0   :  { %v4123_v53 = vadd.f32 1.0, %v8060_v59  ;;  %8071 = vtanh.f32 %v7441_v33  ;;  %v8062_v22 = vpop.eup %8061 }
0x28b1   :  { %8073 = vrcp.f32 %v4124_v1  ;;  %v8064_v54 = vpop.eup %8063 }
0x28b2   :  { %8075 = vrcp.f32 %v4123_v53 }
0x28b7   :  { %v8066_v51 = vpop.eup %8065 }
0x28b8   :  { %v8068_v26 = vpop.eup %8067  ;;  %v4138_v58 = vsel %vm8549_vm4, %v8062_v22, %v8066_v51 }
0x28b9   :  { %v8070_v61 = vpop.eup %8069  ;;  %4151 = vrot.lane.b32.xlu1 %v4138_v58, %s8278_s17  ;;  %v4137_v0 = vsel %vm8549_vm4, %v8064_v54, %v8068_v26  ;;  %v4142_v12 = vmul.f32 %v4138_v58, %v9498_v17 }
0x28ba   :  { %v8072_v25 = vpop.eup %8071  ;;  %4149 = vrot.lane.b32.xlu0 %v4137_v0, %s8278_s17  ;;  %v4141_v44 = vmul.f32 %v4137_v0, %v9500_v52 }
0x28bb   :  { %v8074_v31 = vpop.eup %8073 }
0x28bc   :  { %v8076_v10 = vpop.eup %8075  ;;  %v4140_v46 = vsel %vm8549_vm4, %v8070_v61, %v8074_v31 }
0x28bd   :  { %4155 = vrot.lane.b32.xlu1 %v4140_v46, %s8278_s17  ;;  %v4139_v2 = vsel %vm8549_vm4, %v8072_v25, %v8076_v10  ;;  %v4144_v43 = vmul.f32 %v4140_v46, %v9506_v23 }
0x28be   :  { %4153 = vrot.lane.b32.xlu0 %v4139_v2, %s8278_s17  ;;  %v4143_v48 = vmul.f32 %v4139_v2, %v9508_v36 }
0x292b   :  { %v4152_v40 = vpop.permute.xlu1 %4151 }
0x292c   :  { %v4162_v15 = vmul.f32 %v4152_v40, %v4138_v58  ;;  %v4150_v35 = vpop.permute.xlu0 %4149 }
0x292d   :  { %v4161_v49 = vmul.f32 %v4150_v35, %v4137_v0 }
0x292e   :  { %4171 = vrot.lane.b32.xlu1 %v4162_v15, %s8279_s18 }
0x292f   :  { %v4156_v13 = vpop.permute.xlu1 %4155  ;;  %4169 = vrot.lane.b32.xlu0 %v4161_v49, %s8279_s18 }
0x2930   :  { %v4164_v19 = vmul.f32 %v4156_v13, %v4140_v46  ;;  %v4154_v42 = vpop.permute.xlu0 %4153 }
0x2931   :  { %v4163_v56 = vmul.f32 %v4154_v42, %v4139_v2 }
0x2932   :  { %4175 = vrot.lane.b32.xlu1 %v4164_v19, %s8279_s18 }
0x2933   :  { %4173 = vrot.lane.b32.xlu0 %v4163_v56, %s8279_s18 }
0x29a0   :  { %v4172_v8 = vpop.permute.xlu1 %4171 }
0x29a1   :  { %v9549_v9 = vadd.f32 %v4172_v8, %v4142_v12  ;;  %v4170_v11 = vpop.permute.xlu0 %4169 }
0x29a2   :  { %v9551_v41 = vadd.f32 %v4170_v11, %v4141_v44 }
0x29a3   :  { %8077 = vtanh.f32 %v9549_v9 }
0x29a4   :  { %8079 = vtanh.f32 %v9551_v41  ;;  %v4176_v5 = vpop.permute.xlu1 %4175 }
0x29a5   :  { %v9557_v45 = vadd.f32 %v4176_v5, %v4144_v43  ;;  %v4174_v17 = vpop.permute.xlu0 %4173 }
0x29a6   :  { %v9559_v7 = vadd.f32 %v4174_v17, %v4143_v48 }
0x29a7   :  { %8081 = vtanh.f32 %v9557_v45 }
0x29a8   :  { %8083 = vtanh.f32 %v9559_v7 }
0x29ad   :  { %v8078_v52 = vpop.eup %8077 }
0x29ae   :  { %v8080_v47 = vpop.eup %8079  ;;  %4195 = vrot.lane.b32.xlu1 %v8078_v52, %s8278_s17 }
0x29af   :  { %4193 = vrot.lane.b32.xlu0 %v8080_v47, %s8278_s17 }
0x29b1   :  { %v8082_v23 = vpop.eup %8081 }
0x29b2   :  { %v8084_v50 = vpop.eup %8083  ;;  %4199 = vrot.lane.b32.xlu1 %v8082_v23, %s8278_s17 }
0x29b3   :  { %4197 = vrot.lane.b32.xlu0 %v8084_v50, %s8278_s17 }
0x2a20   :  { %v4196_v36 = vpop.permute.xlu1 %4195 }
0x2a21   :  { %v4206_v28 = vmul.f32 %v4196_v36, %v4138_v58  ;;  %v4194_v57 = vpop.permute.xlu0 %4193 }
0x2a22   :  { %v4205_v62 = vmul.f32 %v4194_v57, %v4137_v0 }
0x2a23   :  { %4219 = vrot.lane.b32.xlu1 %v4206_v28, %s8279_s18 }
0x2a24   :  { %v4200_v16 = vpop.permute.xlu1 %4199  ;;  %4217 = vrot.lane.b32.xlu0 %v4205_v62, %s8279_s18 }
0x2a25   :  { %v4208_v18 = vmul.f32 %v4200_v16, %v4140_v46  ;;  %v4198_v20 = vpop.permute.xlu0 %4197 }
0x2a26   :  { %v4207_v14 = vmul.f32 %v4198_v20, %v4139_v2 }
0x2a27   :  { %4223 = vrot.lane.b32.xlu1 %v4208_v18, %s8279_s18 }
0x2a28   :  { %4221 = vrot.lane.b32.xlu0 %v4207_v14, %s8279_s18 }
0x2a95   :  { %v4220_v37 = vpop.permute.xlu1 %4219 }
0x2a96   :  { %v4218_v24 = vpop.permute.xlu0 %4217 }
0x2a97   :  { %7001 = vmatprep.mubr.msk.f32.mxu1 %vm462_vm5, %v4218_v24  ;;  %v4549_v24 = vld [vmem:[%s10193_s9] sm:$0xff] }
0x2a98   :  { %7002 = vmatmul.mubr.msk.f32.vlgmr.msra.gmra.mrb[28].mxu1 %vm462_vm5, %v4220_v37 }
0x2a99   :  { %v4224_v29 = vpop.permute.xlu1 %4223 }
0x2a9a   :  { %v4222_v4 = vpop.permute.xlu0 %4221 }
0x2a9b   :  { %7004 = vmatprep.mubr.msk.f32.mxu1 %vm462_vm5, %v4222_v4 }
0x2a9c   :  { %7005 = vmatmul.mubr.msk.f32.gmra.mrb[30].mxu1 %vm462_vm5, %v4224_v29  ;;  %v4550_v29 = vld [vmem:[%s10193_s9 + $0x8] sm:$0xff] }
0x2b6b   :  { %v7003_v33 = vpop.f32.mrb[28].mxu1 }
0x2b6c   :  { %v7442_v6 = vadd.f32 %v9474_v38, %v7003_v33  ;;  %v4299_v30 = vpop.f32.mrb[29].mxu1  ;;  %v4435_v33 = vld [vmem:[%s10191_s7 + $0x10] sm:$0xff] }
0x2b6d   :  { %v7443_v3 = vadd.f32 %v9474_v38, %v4299_v30  ;;  %v7296_v30 = vpack.c.bf16 %v4550_v29, %v4549_v24 }
0x2b6e   :  { %v6333_v27 = vmul.f32 -1.442695, %v7442_v6 }
0x2b6f   :  { %v6332_v34 = vmul.f32 -1.442695, %v7443_v3  ;;  %v7006_v32 = vpop.f32.mrb[30].mxu1  ;;  %7297 = vmatprep.subr.bf16.mxu1 %v7296_v30 }
0x2b70   :  { %8085 = vpow2.f32 %v6333_v27  ;;  %v7444_v21 = vadd.f32 %v9474_v38, %v7006_v32  ;;  %v4309_v59 = vpop.f32.mrb[31].mxu1  ;;  %v4551_v27 = vld [vmem:[%s10193_s9 + $0x10] sm:$0xff]  ;;  %7299 = vmatpush3.bf16.msra.mxu1 %v7296_v30 }
0x2b71   :  { %8087 = vpow2.f32 %v6332_v34  ;;  %v7445_v1 = vadd.f32 %v9474_v38, %v4309_v59  ;;  %v4552_v34 = vld [vmem:[%s10193_s9 + $0x18] sm:$0xff] }
0x2b72   :  { %v6335_v53 = vmul.f32 -1.442695, %v7444_v21  ;;  %v7300_v32 = vpack.c.bf16 %v4552_v34, %v4551_v27 }
0x2b73   :  { %v6334_v22 = vmul.f32 -1.442695, %v7445_v1 }
0x2b74   :  { %8089 = vpow2.f32 %v6335_v53  ;;  %7301 = vmatprep.subr.bf16.mxu1 %v7300_v32 }
0x2b75   :  { %8091 = vpow2.f32 %v6334_v22  ;;  %7303 = vmatpush3.bf16.msra.mxu1 %v7300_v32 }
0x2b76   :  { %8093 = vtanh.f32 %v7442_v6  ;;  %v4436_v6 = vld [vmem:[%s10191_s7 + $0x18] sm:$0xff] }
0x2b77   :  { %8095 = vtanh.f32 %v7443_v3  ;;  %v7292_v3 = vpack.c.bf16 %v4436_v6, %v4435_v33 }
0x2b7a   :  { %v8086_v54 = vpop.eup %8085 }
0x2b7b   :  { %v8088_v51 = vpop.eup %8087  ;;  %v4335_v26 = vadd.f32 1.0, %v8086_v54 }
0x2b7c   :  { %v4334_v58 = vadd.f32 1.0, %v8088_v51 }
0x2b7d   :  { %8097 = vrcp.f32 %v4335_v26 }
0x2b7e   :  { %v8090_v61 = vpop.eup %8089  ;;  %8099 = vrcp.f32 %v4334_v58 }
0x2b7f   :  { %v8092_v0 = vpop.eup %8091  ;;  %v4337_v25 = vadd.f32 1.0, %v8090_v61  ;;  %8101 = vtanh.f32 %v7444_v21 }
0x2b80   :  { %v4336_v31 = vadd.f32 1.0, %v8092_v0  ;;  %8103 = vtanh.f32 %v7445_v1  ;;  %v8094_v38 = vpop.eup %8093 }
0x2b81   :  { %8105 = vrcp.f32 %v4337_v25  ;;  %v8096_v10 = vpop.eup %8095 }
0x2b82   :  { %8107 = vrcp.f32 %v4336_v31 }
0x2b87   :  { %v8098_v46 = vpop.eup %8097 }
0x2b88   :  { %v8100_v2 = vpop.eup %8099  ;;  %v9581_v40 = vsel %vm8549_vm4, %v8094_v38, %v8098_v46 }
0x2b89   :  { %v8102_v15 = vpop.eup %8101  ;;  %4364 = vrot.lane.b32.xlu1 %v9581_v40, %s8278_s17  ;;  %v9587_v35 = vsel %vm8549_vm4, %v8096_v10, %v8100_v2  ;;  %v4355_v17 = vmul.f32 %v9581_v40, %v9549_v9  ;;  %v6336_v2 = vld [vmem:[%s10192_s8] ss:$0 sm:$0xff] }
0x2b8a   :  { %v8104_v49 = vpop.eup %8103  ;;  %4362 = vrot.lane.b32.xlu0 %v9587_v35, %s8278_s17  ;;  %v4354_v47 = vmul.f32 %v9587_v35, %v9551_v41 }
0x2b8b   :  { %v8106_v13 = vpop.eup %8105 }
0x2b8c   :  { %v8108_v19 = vpop.eup %8107  ;;  %v9593_v42 = vsel %vm8549_vm4, %v8102_v15, %v8106_v13 }
0x2b8d   :  { %4368 = vrot.lane.b32.xlu1 %v9593_v42, %s8278_s17  ;;  %v9599_v56 = vsel %vm8549_vm4, %v8104_v49, %v8108_v19  ;;  %v4357_v28 = vmul.f32 %v9593_v42, %v9557_v45  ;;  %v4433_v45 = vld [vmem:[%s10191_s7] sm:$0xff] }
0x2b8e   :  { %4366 = vrot.lane.b32.xlu0 %v9599_v56, %s8278_s17  ;;  %v4356_v62 = vmul.f32 %v9599_v56, %v9559_v7  ;;  %v4434_v7 = vld [vmem:[%s10191_s7 + $0x8] sm:$0xff] }
0x2b8f   :  { %v7288_v4 = vpack.c.bf16 %v4434_v7, %v4433_v45 }
0x2b91   :  { %7289 = vmatprep.subr.bf16.mxu0 %v7288_v4 }
0x2b92   :  { %7291 = vmatpush3.bf16.msra.mxu0 %v7288_v4 }
0x2b93   :  { %7293 = vmatprep.subr.bf16.mxu0 %v7292_v3 }
0x2b96   :  { %7295 = vmatpush3.bf16.msra.mxu0 %v7292_v3 }
0x2bfb   :  { %v4365_v12 = vpop.permute.xlu1 %4364 }
0x2bfc   :  { %v4375_v8 = vmul.f32 %v4365_v12, %v9581_v40  ;;  %v4363_v44 = vpop.permute.xlu0 %4362 }
0x2bfd   :  { %v4374_v11 = vmul.f32 %v4363_v44, %v9587_v35 }
0x2bfe   :  { %4384 = vrot.lane.b32.xlu1 %v4375_v8, %s8279_s18 }
0x2bff   :  { %v4369_v43 = vpop.permute.xlu1 %4368  ;;  %4382 = vrot.lane.b32.xlu0 %v4374_v11, %s8279_s18 }
0x2c00   :  { %v4377_v5 = vmul.f32 %v4369_v43, %v9593_v42  ;;  %v4367_v48 = vpop.permute.xlu0 %4366 }
0x2c01   :  { %v4376_v63 = vmul.f32 %v4367_v48, %v9599_v56 }
0x2c02   :  { %4388 = vrot.lane.b32.xlu1 %v4377_v5, %s8279_s18 }
0x2c03   :  { %4386 = vrot.lane.b32.xlu0 %v4376_v63, %s8279_s18 }
0x2c70   :  { %v4385_v52 = vpop.permute.xlu1 %4384 }
0x2c71   :  { %v4395_v23 = vadd.f32 %v4385_v52, %v4355_v17  ;;  %v4383_v50 = vpop.permute.xlu0 %4382 }
0x2c72   :  { %v4394_v36 = vadd.f32 %v4383_v50, %v4354_v47 }
0x2c73   :  { %8109 = vtanh.f32 %v4395_v23 }
0x2c74   :  { %8111 = vtanh.f32 %v4394_v36  ;;  %v4389_v57 = vpop.permute.xlu1 %4388 }
0x2c75   :  { %v4397_v16 = vadd.f32 %v4389_v57, %v4357_v28  ;;  %v4387_v18 = vpop.permute.xlu0 %4386 }
0x2c76   :  { %v4396_v20 = vadd.f32 %v4387_v18, %v4356_v62 }
0x2c77   :  { %8113 = vtanh.f32 %v4397_v16 }
0x2c78   :  { %8115 = vtanh.f32 %v4396_v20 }
0x2c7d   :  { %v8110_v9 = vpop.eup %8109 }
0x2c7e   :  { %v8112_v14 = vpop.eup %8111  ;;  %4408 = vrot.lane.b32.xlu1 %v8110_v9, %s8278_s17 }
0x2c7f   :  { %4406 = vrot.lane.b32.xlu0 %v8112_v14, %s8278_s17 }
0x2c81   :  { %v8114_v41 = vpop.eup %8113 }
0x2c82   :  { %v8116_v37 = vpop.eup %8115  ;;  %4412 = vrot.lane.b32.xlu1 %v8114_v41, %s8278_s17 }
0x2c83   :  { %4410 = vrot.lane.b32.xlu0 %v8116_v37, %s8278_s17 }
0x2cf0   :  { %v4409_v21 = vpop.permute.xlu1 %4408 }
0x2cf1   :  { %v4419_v59 = vmul.f32 %v4409_v21, %v9581_v40  ;;  %v4407_v1 = vpop.permute.xlu0 %4406 }
0x2cf2   :  { %v4418_v53 = vmul.f32 %v4407_v1, %v9587_v35 }
0x2cf3   :  { %8117 = vtanh.f32 %v4419_v59 }
0x2cf4   :  { %8119 = vtanh.f32 %v4418_v53  ;;  %v4413_v22 = vpop.permute.xlu1 %4412 }
0x2cf5   :  { %v4421_v54 = vmul.f32 %v4413_v22, %v9593_v42  ;;  %v4411_v51 = vpop.permute.xlu0 %4410 }
0x2cf6   :  { %v4420_v26 = vmul.f32 %v4411_v51, %v9599_v56 }
0x2cf7   :  { %8121 = vtanh.f32 %v4421_v54 }
0x2cf8   :  { %8123 = vtanh.f32 %v4420_v26 }
0x2cfd   :  { %v8118_v58 = vpop.eup %8117 }
0x2cfe   :  { %v8120_v61 = vpop.eup %8119  ;;  %4450 = vrot.lane.b32.xlu1 %v8118_v58, %s8279_s18 }
0x2cff   :  { %4448 = vrot.lane.b32.xlu0 %v8120_v61, %s8279_s18 }
0x2d01   :  { %v8122_v0 = vpop.eup %8121 }
0x2d02   :  { %v8124_v25 = vpop.eup %8123  ;;  %4454 = vrot.lane.b32.xlu1 %v8122_v0, %s8279_s18 }
0x2d03   :  { %4452 = vrot.lane.b32.xlu0 %v8124_v25, %s8279_s18  ;;  %s8280_s18 = smov 96  }
0x2d70   :  { %v4451_v31 = vpop.permute.xlu1 %4450 }
0x2d71   :  { %v4449_v38 = vpop.permute.xlu0 %4448 }
0x2d72   :  { %7015 = vmatprep.mubr.msk.f32.mxu0 %vm462_vm5, %v4449_v38  ;;  %7029 = vmatprep.mubr.msk.f32.mxu1 %vm462_vm5, %v4449_v38 }
0x2d73   :  { %7016 = vmatmul.mubr.msk.f32.vlgmr.msra.gmra.mrb[32].mxu0 %vm462_vm5, %v4451_v31  ;;  %7030 = vmatmul.mubr.msk.f32.vlgmr.msra.gmra.mrb[32].mxu1 %vm462_vm5, %v4451_v31 }
0x2d74   :  { %v4455_v46 = vpop.permute.xlu1 %4454 }
0x2d75   :  { %v4453_v10 = vpop.permute.xlu0 %4452 }
0x2d76   :  { %7018 = vmatprep.mubr.msk.f32.mxu0 %vm462_vm5, %v4453_v10  ;;  %7032 = vmatprep.mubr.msk.f32.mxu1 %vm462_vm5, %v4453_v10 }
0x2d77   :  { %7019 = vmatmul.mubr.msk.f32.gmra.mrb[34].mxu0 %vm462_vm5, %v4455_v46  ;;  %7033 = vmatmul.mubr.msk.f32.gmra.mrb[34].mxu1 %vm462_vm5, %v4455_v46 }
0x2e46   :  { %v7017_v40 = vpop.f32.mrb[32].mxu0  ;;  %v9666_v15 = vpop.f32.mrb[32].mxu1 }
0x2e47   :  { %v9668_v35 = vadd.f32 %v7017_v40, %v6336_v2  ;;  %v4530_v49 = vpop.f32.mrb[33].mxu0  ;;  %v9670_v13 = vpop.f32.mrb[33].mxu1  ;;  %v4783_v7 = vmul.f32 %v9666_v15, %v9666_v15 }
0x2e48   :  { %v9672_v19 = vadd.f32 %v6336_v2, %v4530_v49  ;;  %v7328_v42 = vpack.c.bf16 %v9666_v15, %v9670_v13  ;;  %v4782_v29 = vmul.f32 %v9670_v13, %v9670_v13 }
0x2e49   :  { %4644 = vrot.lane.b32.xlu1 %v9668_v35, %s8280_s18  ;;  %v4671_v17 = vmul.f32 %v9668_v35, %v9668_v35  ;;  %v4793_v30 = vsel %vm462_vm5, %v4783_v7, 0.0 }
0x2e4a   :  { %7329 = vmatprep.subr.bf16.mxu1 %v7328_v42  ;;  %4642 = vrot.lane.b32.xlu0 %v9672_v19, %s8280_s18  ;;  %v7020_v56 = vpop.f32.mrb[34].mxu0  ;;  %v9680_v12 = vpop.f32.mrb[34].mxu1  ;;  %v4670_v48 = vmul.f32 %v9672_v19, %v9672_v19  ;;  %v4790_v34 = vsel %vm462_vm5, %v4782_v29, 0.0 }
0x2e4b   :  { %v9682_v8 = vadd.f32 %v7020_v56, %v6336_v2  ;;  %v4540_v44 = vpop.f32.mrb[35].mxu0  ;;  %v9684_v11 = vpop.f32.mrb[35].mxu1  ;;  %7331 = vmatpush3.bf16.msra.mxu1 %v7328_v42  ;;  %v4681_v47 = vsel %vm462_vm5, %v4671_v17, 0.0  ;;  %v4785_v3 = vmul.f32 %v9680_v12, %v9680_v12 }
0x2e4c   :  { %v9686_v43 = vadd.f32 %v6336_v2, %v4540_v44  ;;  %v7332_v5 = vpack.c.bf16 %v9680_v12, %v9684_v11  ;;  %v4678_v63 = vsel %vm462_vm5, %v4670_v48, 0.0  ;;  %v4784_v32 = vmul.f32 %v9684_v11, %v9684_v11  ;;  %v9773_v2 = vld [vmem:[%s10194_s10] sm:$0x1] }
0x2e4d   :  { %4648 = vrot.lane.b32.xlu1 %v9682_v8, %s8280_s18  ;;  %v4673_v50 = vmul.f32 %v9682_v8, %v9682_v8  ;;  %v4799_v53 = vsel %vm462_vm5, %v4785_v3, 0.0  ;;  %7510 = vpush %v9773_v2 }
0x2e4e   :  { %7333 = vmatprep.subr.bf16.mxu1 %v7332_v5  ;;  %4646 = vrot.lane.b32.xlu0 %v9686_v43, %s8280_s18  ;;  %v4672_v52 = vmul.f32 %v9686_v43, %v9686_v43  ;;  %v4796_v54 = vsel %vm462_vm5, %v4784_v32, 0.0 }
0x2e4f   :  { %7335 = vmatpush3.bf16.msra.mxu1 %v7332_v5  ;;  %v4687_v36 = vsel %vm462_vm5, %v4673_v50, 0.0 }
0x2e50   :  { %v4684_v23 = vsel %vm462_vm5, %v4672_v52, 0.0 }
0x2e51   :  { %4660 = vrot.lane.b32.xlu1 %v9666_v15, %s8280_s18 }
0x2e52   :  { %4658 = vrot.lane.b32.xlu0 %v9670_v13, %s8280_s18 }
0x2e55   :  { %4664 = vrot.lane.b32.xlu1 %v9680_v12, %s8280_s18 }
0x2e56   :  { %4662 = vrot.lane.b32.xlu0 %v9684_v11, %s8280_s18 }
0x2e75   :  { %4679 = vadd.xlane.f32.xlu0 %v4678_v63 }
0x2e79   :  { %4682 = vadd.xlane.f32.xlu1 %v4681_v47  ;;  %4685 = vadd.xlane.f32.xlu0 %v4684_v23 }
0x2e7d   :  { %4688 = vadd.xlane.f32.xlu0 %v4687_v36 }
0x2e7e   :  { %s7511_s3 = spop %7510 }
0x2ebb   :  { %v9714_v28 = vpop.permute.xlu1 %4644 }
0x2ebc   :  { %v4675_v57 = vmul.f32 %v9714_v28, %v9714_v28  ;;  %v9718_v62 = vpop.permute.xlu0 %4642 }
0x2ebd   :  { %v4674_v16 = vmul.f32 %v9718_v62, %v9718_v62 }
0x2ebe   :  { %v4693_v18 = vsel %vm462_vm5, %v4675_v57, 0.0 }
0x2ebf   :  { %v9723_v20 = vpop.permute.xlu1 %4648  ;;  %4694 = vadd.xlane.f32.xlu0 %v4693_v18  ;;  %v4690_v9 = vsel %vm462_vm5, %v4674_v16, 0.0 }
0x2ec0   :  { %v4677_v14 = vmul.f32 %v9723_v20, %v9723_v20  ;;  %4691 = vadd.xlane.f32.xlu1 %v4690_v9  ;;  %v9728_v41 = vpop.permute.xlu0 %4646 }
0x2ec1   :  { %v4676_v37 = vmul.f32 %v9728_v41, %v9728_v41 }
0x2ec2   :  { %v4699_v45 = vsel %vm462_vm5, %v4677_v14, 0.0 }
0x2ec3   :  { %v9735_v24 = vpop.permute.xlu1 %4660  ;;  %4700 = vadd.xlane.f32.xlu0 %v4699_v45  ;;  %v4696_v4 = vsel %vm462_vm5, %v4676_v37, 0.0 }
0x2ec4   :  { %4697 = vadd.xlane.f32.xlu1 %v4696_v4  ;;  %v9740_v33 = vpop.permute.xlu0 %4658  ;;  %v4787_v1 = vmul.f32 %v9735_v24, %v9735_v24 }
0x2ec5   :  { %v7336_v6 = vpack.c.bf16 %v9735_v24, %v9740_v33  ;;  %v4786_v22 = vmul.f32 %v9740_v33, %v9740_v33 }
0x2ec6   :  { %v4805_v26 = vsel %vm462_vm5, %v4787_v1, 0.0 }
0x2ec7   :  { %v9747_v27 = vpop.permute.xlu1 %4664  ;;  %4794 = vadd.xlane.f32.xlu0 %v4793_v30  ;;  %7337 = vmatprep.subr.bf16.mxu1 %v7336_v6  ;;  %v4802_v61 = vsel %vm462_vm5, %v4786_v22, 0.0 }
0x2ec8   :  { %4791 = vadd.xlane.f32.xlu1 %v4790_v34  ;;  %7339 = vmatpush3.bf16.msra.mxu1 %v7336_v6  ;;  %v9752_v21 = vpop.permute.xlu0 %4662  ;;  %v4789_v51 = vmul.f32 %v9747_v27, %v9747_v27 }
0x2ec9   :  { %v7340_v59 = vpack.c.bf16 %v9747_v27, %v9752_v21  ;;  %v4788_v58 = vmul.f32 %v9752_v21, %v9752_v21 }
0x2eca   :  { %v4811_v0 = vsel %vm462_vm5, %v4789_v51, 0.0 }
0x2ecb   :  { %4800 = vadd.xlane.f32.xlu0 %v4799_v53  ;;  %7341 = vmatprep.subr.bf16.mxu1 %v7340_v59  ;;  %v4808_v25 = vsel %vm462_vm5, %v4788_v58, 0.0 }
0x2ecc   :  { %4797 = vadd.xlane.f32.xlu1 %v4796_v54  ;;  %7343 = vmatpush3.bf16.msra.mxu1 %v7340_v59 }
0x2ecf   :  { %4806 = vadd.xlane.f32.xlu0 %v4805_v26 }
0x2ed0   :  { %4803 = vadd.xlane.f32.xlu1 %v4802_v61 }
0x2ed3   :  { %4812 = vadd.xlane.f32.xlu0 %v4811_v0 }
0x2ed4   :  { %4809 = vadd.xlane.f32.xlu1 %v4808_v25 }
0x2f02   :  { %v4680_v31 = vpop.xlane.xlu0 %4679 }
0x2f03   :  { %8125 = vrsqrt.f32 %v4680_v31  ;;  %vm4704_vm6 = vcmp.eq.f32.partialorder %v4680_v31, inf  ;;  %v4707_v42 = vand.u32 2147483648, %v4680_v31  ;;  %vm4706_vm7 = vcmp.eq.f32.partialorder %v4680_v31, 0.0 }
0x2f06   :  { %v4683_v38 = vpop.xlane.xlu1 %4682  ;;  %v4686_v10 = vpop.xlane.xlu0 %4685 }
0x2f07   :  { %8127 = vrsqrt.f32 %v4683_v38  ;;  %vm4711_vm8 = vcmp.eq.f32.partialorder %v4683_v38, inf  ;;  %v4714_v52 = vand.u32 2147483648, %v4683_v38  ;;  %vm4713_vm9 = vcmp.eq.f32.partialorder %v4683_v38, 0.0 }
0x2f08   :  { %8129 = vrsqrt.f32 %v4686_v10  ;;  %vm4718_vm10 = vcmp.eq.f32.partialorder %v4686_v10, inf  ;;  %v4721_v50 = vand.u32 2147483648, %v4686_v10  ;;  %vm4720_vm11 = vcmp.eq.f32.partialorder %v4686_v10, 0.0 }
0x2f0a   :  { %v4689_v46 = vpop.xlane.xlu0 %4688 }
0x2f0b   :  { %8131 = vrsqrt.f32 %v4689_v46  ;;  %vm4725_vm12 = vcmp.eq.f32.partialorder %v4689_v46, inf  ;;  %v4728_v45 = vand.u32 2147483648, %v4689_v46  ;;  %vm4727_vm13 = vcmp.eq.f32.partialorder %v4689_v46, 0.0 }
0x2f0d   :  { %v8126_v40 = vpop.eup %8125 }
0x2f0e   :  { %v4703_v49 = vmul.f32 %v8126_v40, %v4680_v31 }
0x2f10   :  { %v4705_v56 = vsel %vm4704_vm6, %v4680_v31, %v4703_v49 }
0x2f11   :  { %v8128_v44 = vpop.eup %8127  ;;  %v4708_v5 = vsel %vm4706_vm7, %v4707_v42, %v4705_v56 }
0x2f12   :  { %v8130_v48 = vpop.eup %8129  ;;  %v4758_v63 = vmax.f32 %v4708_v5, 1e-12  ;;  %v4710_v17 = vmul.f32 %v8128_v44, %v4683_v38 }
0x2f13   :  { %v4717_v47 = vmul.f32 %v8130_v48, %v4686_v10 }
0x2f14   :  { %v4712_v23 = vsel %vm4711_vm8, %v4683_v38, %v4710_v17  ;;  %8133 = vrcp.f32 %v4758_v63 }
0x2f15   :  { %v8132_v36 = vpop.eup %8131  ;;  %v4715_v57 = vsel %vm4713_vm9, %v4714_v52, %v4712_v23  ;;  %v4719_v16 = vsel %vm4718_vm10, %v4686_v10, %v4717_v47 }
0x2f16   :  { %v4759_v18 = vmax.f32 %v4715_v57, 1e-12  ;;  %v4722_v9 = vsel %vm4720_vm11, %v4721_v50, %v4719_v16  ;;  %v4724_v14 = vmul.f32 %v8132_v36, %v4689_v46 }
0x2f17   :  { %v4760_v37 = vmax.f32 %v4722_v9, 1e-12 }
0x2f18   :  { %8135 = vrcp.f32 %v4759_v18  ;;  %v4726_v7 = vsel %vm4725_vm12, %v4689_v46, %v4724_v14 }
0x2f19   :  { %v4729_v4 = vsel %vm4727_vm13, %v4728_v45, %v4726_v7  ;;  %8137 = vrcp.f32 %v4760_v37 }
0x2f1a   :  { %v4761_v29 = vmax.f32 %v4729_v4, 1e-12 }
0x2f1c   :  { %8139 = vrcp.f32 %v4761_v29 }
0x2f1e   :  { %v8134_v6 = vpop.eup %8133 }
0x2f1f   :  { %v4767_v3 = vmul.f32 %v8134_v6, %v9672_v19 }
0x2f22   :  { %v8136_v30 = vpop.eup %8135 }
0x2f23   :  { %v4769_v34 = vmul.f32 %v8136_v30, %v9668_v35  ;;  %v8138_v32 = vpop.eup %8137 }
0x2f24   :  { %v4771_v22 = vmul.f32 %v8138_v32, %v9686_v43 }
0x2f25   :  { %v7304_v1 = vpack.c.bf16 %v4769_v34, %v4767_v3 }
0x2f26   :  { %v8140_v53 = vpop.eup %8139 }
0x2f27   :  { %7306 = vmatprep.subr.msk.bf16.mxu0 %vm9780_vm14, %v7304_v1  ;;  %v4773_v54 = vmul.f32 %v8140_v53, %v9682_v8 }
0x2f28   :  { %7309 = vmatpush3.bf16.xpose.msk.msra.mxu0 %vm9780_vm14, %v7304_v1 }
0x2f29   :  { %v7310_v35 = vpack.c.bf16 %v4773_v54, %v4771_v22 }
0x2f2b   :  { %7312 = vmatprep.subr.msk.bf16.mxu0 %vm9780_vm14, %v7310_v35 }
0x2f30   :  { %7315 = vmatpush3.bf16.xpose.msk.msra.mxu0 %vm9780_vm14, %v7310_v35 }
0x2f4c   :  { %v4695_v19 = vpop.xlane.xlu0 %4694 }
0x2f4d   :  { %8141 = vrsqrt.f32 %v4695_v19  ;;  %v4692_v51 = vpop.xlane.xlu1 %4691  ;;  %vm4739_vm15 = vcmp.eq.f32.partialorder %v4695_v19, inf  ;;  %vm4741_vm1 = vcmp.eq.f32.partialorder %v4695_v19, 0.0  ;;  %v4742_v38 = vand.u32 2147483648, %v4695_v19 }
0x2f4e   :  { %8143 = vrsqrt.f32 %v4692_v51  ;;  %vm4732_vm2 = vcmp.eq.f32.partialorder %v4692_v51, inf  ;;  %v4735_v49 = vand.u32 2147483648, %v4692_v51  ;;  %vm4734_vm3 = vcmp.eq.f32.partialorder %v4692_v51, 0.0 }
0x2f50   :  { %v4701_v26 = vpop.xlane.xlu0 %4700 }
0x2f51   :  { %8145 = vrsqrt.f32 %v4701_v26  ;;  %v4698_v58 = vpop.xlane.xlu1 %4697  ;;  %vm4753_vm4 = vcmp.eq.f32.partialorder %v4701_v26, inf  ;;  %vm4755_vm6 = vcmp.eq.f32.partialorder %v4701_v26, 0.0  ;;  %v4756_v23 = vand.u32 2147483648, %v4701_v26 }
0x2f52   :  { %8147 = vrsqrt.f32 %v4698_v58  ;;  %vm4746_vm7 = vcmp.eq.f32.partialorder %v4698_v58, inf  ;;  %v4749_v16 = vand.u32 2147483648, %v4698_v58  ;;  %vm4748_vm8 = vcmp.eq.f32.partialorder %v4698_v58, 0.0 }
0x2f54   :  { %v9794_v43 = vpop.xlane.xlu0 %4794 }
0x2f55   :  { %8149 = vrsqrt.f32 %v9794_v43  ;;  %v9797_v8 = vpop.xlane.xlu1 %4791  ;;  %vm4823_vm10 = vcmp.eq.f32.partialorder %v9794_v43, inf  ;;  %v4826_v54 = vand.u32 2147483648, %v9794_v43  ;;  %vm4825_vm12 = vcmp.eq.f32.partialorder %v9794_v43, 0.0 }
0x2f56   :  { %8151 = vrsqrt.f32 %v9797_v8  ;;  %vm4816_vm9 = vcmp.eq.f32.partialorder %v9797_v8, inf  ;;  %v4819_v3 = vand.u32 2147483648, %v9797_v8  ;;  %vm4818_vm11 = vcmp.eq.f32.partialorder %v9797_v8, 0.0 }
0x2f57   :  { %v8142_v61 = vpop.eup %8141 }
0x2f58   :  { %v8144_v0 = vpop.eup %8143  ;;  %v4738_v25 = vmul.f32 %v8142_v61, %v4695_v19  ;;  %v9800_v31 = vpop.xlane.xlu0 %4800 }
0x2f59   :  { %v4731_v10 = vmul.f32 %v8144_v0, %v4692_v51  ;;  %8153 = vrsqrt.f32 %v9800_v31  ;;  %v9803_v46 = vpop.xlane.xlu1 %4797 }
0x2f5a   :  { %v4740_v40 = vsel %vm4739_vm15, %v4695_v19, %v4738_v25  ;;  %8155 = vrsqrt.f32 %v9803_v46  ;;  %vm4830_vm13 = vcmp.eq.f32.partialorder %v9803_v46, inf  ;;  %vm4832_vm15 = vcmp.eq.f32.partialorder %v9803_v46, 0.0 }
0x2f5b   :  { %v8146_v42 = vpop.eup %8145  ;;  %v4743_v56 = vsel %vm4741_vm1, %v4742_v38, %v4740_v40  ;;  %v4733_v44 = vsel %vm4732_vm2, %v4692_v51, %v4731_v10  ;;  %vm4837_vm1 = vcmp.eq.f32.partialorder %v9800_v31, inf  ;;  %vm4839_vm2 = vcmp.eq.f32.partialorder %v9800_v31, 0.0 }
0x2f5c   :  { %v8148_v5 = vpop.eup %8147  ;;  %v4763_v48 = vmax.f32 %v4743_v56, 1e-12  ;;  %v4736_v63 = vsel %vm4734_vm3, %v4735_v49, %v4733_v44  ;;  %v4752_v17 = vmul.f32 %v8146_v42, %v4701_v26  ;;  %v9806_v52 = vpop.xlane.xlu0 %4806  ;;  %v4840_v44 = vand.u32 2147483648, %v9800_v31 }
0x2f5d   :  { %v4762_v47 = vmax.f32 %v4736_v63, 1e-12  ;;  %v4745_v50 = vmul.f32 %v8148_v5, %v4698_v58  ;;  %8157 = vrsqrt.f32 %v9806_v52  ;;  %v9809_v36 = vpop.xlane.xlu1 %4803  ;;  %vm4851_vm3 = vcmp.eq.f32.partialorder %v9806_v52, inf }
0x2f5e   :  { %8159 = vrcp.f32 %v4763_v48  ;;  %v4754_v57 = vsel %vm4753_vm4, %v4701_v26, %v4752_v17  ;;  %vm4853_vm4 = vcmp.eq.f32.partialorder %v9806_v52, 0.0 }
0x2f5f   :  { %v8150_v18 = vpop.eup %8149  ;;  %8161 = vrcp.f32 %v4762_v47  ;;  %v4757_v9 = vsel %vm4755_vm6, %v4756_v23, %v4754_v57  ;;  %v4747_v14 = vsel %vm4746_vm7, %v4698_v58, %v4745_v50  ;;  %v4833_v58 = vand.u32 2147483648, %v9803_v46 }
0x2f60   :  { %v8152_v37 = vpop.eup %8151  ;;  %v4765_v45 = vmax.f32 %v4757_v9, 1e-12  ;;  %v4750_v7 = vsel %vm4748_vm8, %v4749_v16, %v4747_v14  ;;  %v4822_v4 = vmul.f32 %v8150_v18, %v9794_v43  ;;  %8163 = vrsqrt.f32 %v9809_v36  ;;  %v9814_v30 = vpop.xlane.xlu0 %4812 }
0x2f61   :  { %v4764_v29 = vmax.f32 %v4750_v7, 1e-12  ;;  %v4815_v6 = vmul.f32 %v8152_v37, %v9797_v8  ;;  %v9818_v34 = vpop.xlane.xlu1 %4809  ;;  %vm4844_vm6 = vcmp.eq.f32.partialorder %v9809_v36, inf  ;;  %vm4846_vm7 = vcmp.eq.f32.partialorder %v9809_v36, 0.0 }
0x2f62   :  { %8165 = vrcp.f32 %v4765_v45  ;;  %v4824_v22 = vsel %vm4823_vm10, %v9794_v43, %v4822_v4  ;;  %v4854_v16 = vand.u32 2147483648, %v9806_v52  ;;  %vm4865_vm8 = vcmp.eq.f32.partialorder %v9814_v30, inf }
0x2f63   :  { %v8154_v32 = vpop.eup %8153  ;;  %8167 = vrcp.f32 %v4764_v29  ;;  %v4817_v1 = vsel %vm4816_vm9, %v9797_v8, %v4815_v6  ;;  %v4827_v61 = vsel %vm4825_vm12, %v4826_v54, %v4824_v22  ;;  %vm4858_vm9 = vcmp.eq.f32.partialorder %v9818_v34, inf }
0x2f64   :  { %v8156_v53 = vpop.eup %8155  ;;  %v4820_v35 = vsel %vm4818_vm11, %v4819_v3, %v4817_v1  ;;  %8169 = vrsqrt.f32 %v9814_v30  ;;  %v4836_v51 = vmul.f32 %v8154_v32, %v9800_v31  ;;  %v4871_v56 = vmax.f32 %v4827_v61, 1e-12 }
0x2f65   :  { %v4870_v19 = vmax.f32 %v4820_v35, 1e-12  ;;  %v4829_v26 = vmul.f32 %v8156_v53, %v9803_v46  ;;  %8171 = vrsqrt.f32 %v9818_v34  ;;  %v4861_v6 = vand.u32 2147483648, %v9818_v34 }
0x2f66   :  { %v4838_v40 = vsel %vm4837_vm1, %v9800_v31, %v4836_v51  ;;  %v4868_v3 = vand.u32 2147483648, %v9814_v30  ;;  %vm4860_vm10 = vcmp.eq.f32.partialorder %v9818_v34, 0.0  ;;  %vm4867_vm11 = vcmp.eq.f32.partialorder %v9814_v30, 0.0 }
0x2f67   :  { %v8158_v8 = vpop.eup %8157  ;;  %8173 = vrcp.f32 %v4870_v19  ;;  %v4831_v0 = vsel %vm4830_vm13, %v9803_v46, %v4829_v26  ;;  %v4841_v17 = vsel %vm4839_vm2, %v4840_v44, %v4838_v40  ;;  %v5096_v44 = vstv %s7511_s3 }
0x2f68   :  { %v8160_v25 = vpop.eup %8159  ;;  %v4834_v38 = vsel %vm4832_vm15, %v4833_v58, %v4831_v0  ;;  %v4850_v43 = vmul.f32 %v8158_v8, %v9806_v52  ;;  %8175 = vrcp.f32 %v4871_v56  ;;  %v4873_v37 = vmax.f32 %v4841_v17, 1e-12  ;;  %v4932_v56 = vld [vmem:[%s10195_s11 + $0x28] sm:$0xff] }
0x2f69   :  { %v8162_v10 = vpop.eup %8161  ;;  %v4777_v49 = vmul.f32 %v8160_v25, %v9714_v28  ;;  %v4872_v46 = vmax.f32 %v4834_v38, 1e-12  ;;  %v4847_v28 = vand.u32 2147483648, %v9809_v36 }
0x2f6a   :  { %v8164_v42 = vpop.eup %8163  ;;  %v4775_v5 = vmul.f32 %v8162_v10, %v9718_v62  ;;  %v4852_v50 = vsel %vm4851_vm3, %v9806_v52, %v4850_v43 }
0x2f6b   :  { %v4843_v48 = vmul.f32 %v8164_v42, %v9809_v36  ;;  %8177 = vrcp.f32 %v4872_v46 }
0x2f6c   :  { %v8166_v63 = vpop.eup %8165  ;;  %v7316_v47 = vpack.c.bf16 %v4777_v49, %v4775_v5  ;;  %8179 = vrcp.f32 %v4873_v37  ;;  %v4934_v37 = vld [vmem:[%s10195_s11 + $0x38] sm:$0xff] }
0x2f6d   :  { %v8168_v23 = vpop.eup %8167  ;;  %v4845_v31 = vsel %vm4844_vm6, %v9809_v36, %v4843_v48  ;;  %v4781_v62 = vmul.f32 %v8166_v63, %v9723_v20  ;;  %v4855_v20 = vsel %vm4853_vm4, %v4854_v16, %v4852_v50  ;;  %v4931_v48 = vld [vmem:[%s10195_s11 + $0x20] sm:$0xff] }
0x2f6e   :  { %v8170_v57 = vpop.eup %8169  ;;  %v4848_v18 = vsel %vm4846_vm7, %v4847_v28, %v4845_v31  ;;  %7318 = vmatprep.subr.msk.bf16.mxu0 %vm9780_vm14, %v7316_v47  ;;  %v4779_v9 = vmul.f32 %v8168_v23, %v9728_v41  ;;  %v4875_v1 = vmax.f32 %v4855_v20, 1e-12  ;;  %v4930_v31 = vld [vmem:[%s10195_s11 + $0x18] sm:$0xff]  ;;  %vm5145_vm7 = vcmask 523264  }
0x2f6f   :  { %v8172_v14 = vpop.eup %8171  ;;  %v4864_v45 = vmul.f32 %v8170_v57, %v9814_v30  ;;  %7321 = vmatpush3.bf16.xpose.msk.msra.mxu0 %vm9780_vm14, %v7316_v47  ;;  %v4874_v36 = vmax.f32 %v4848_v18, 1e-12  ;;  %v6382_v57 = vadd.f32 -1.0, %v4932_v56 }
0x2f70   :  { %v4857_v7 = vmul.f32 %v8172_v14, %v9818_v34  ;;  %v7322_v4 = vpack.c.bf16 %v4781_v62, %v4779_v9  ;;  %v6381_v14 = vadd.f32 -1.0, %v4931_v48 }
0x2f71   :  { %v8174_v29 = vpop.eup %8173  ;;  %v4866_v41 = vsel %vm4865_vm8, %v9814_v30, %v4864_v45  ;;  %8181 = vrcp.f32 %v4874_v36  ;;  %vm5447_vm8 = vcmask 7168  }
0x2f72   :  { %v4859_v32 = vsel %vm4858_vm9, %v9818_v34, %v4857_v7  ;;  %7324 = vmatprep.subr.msk.bf16.mxu0 %vm9780_vm14, %v7322_v4  ;;  %v4879_v52 = vmul.f32 %v8174_v29, %v9670_v13  ;;  %v4869_v22 = vsel %vm4867_vm11, %v4868_v3, %v4866_v41  ;;  %8183 = vrcp.f32 %v4875_v1  ;;  %v8176_v34 = vpop.eup %8175  ;;  %v4933_v7 = vld [vmem:[%s10195_s11 + $0x30] sm:$0xff] }
0x2f73   :  { %v4862_v53 = vsel %vm4860_vm10, %v4861_v6, %v4859_v32  ;;  %v4877_v35 = vmax.f32 %v4869_v22, 1e-12  ;;  %v4881_v13 = vmul.f32 %v8176_v34, %v9666_v15  ;;  %v6380_v29 = vadd.f32 -1.0, %v4930_v31  ;;  %v4929_v41 = vld [vmem:[%s10195_s11 + $0x10] sm:$0xff] }
0x2f74   :  { %v4876_v54 = vmax.f32 %v4862_v53, 1e-12  ;;  %7051 = vmatprep.mubr.msk.f32.mxu0 %vm462_vm5, %v4879_v52  ;;  %v5320_v1 = vmul.f32 1e+30, %v6382_v57  ;;  %v6384_v22 = vadd.f32 -1.0, %v4934_v37  ;;  %vm5792_vm9 = vcmask 130048  }
0x2f75   :  { %v8178_v19 = vpop.eup %8177  ;;  %vm5485_vm10 = vcmask 124928   ;;  %vm5810_vm11 = vcmp.ge.s32.totalorder %v8545_v60, 16 }
0x2f76   :  { %8185 = vrcp.f32 %v4876_v54  ;;  %v8180_v51 = vpop.eup %8179  ;;  %v4883_v30 = vmul.f32 %v8178_v19, %v9684_v11  ;;  %v6383_v19 = vadd.f32 -1.0, %v4933_v7 }
0x2f77   :  { %7327 = vmatpush3.bf16.xpose.msk.msra.mxu0 %vm9780_vm14, %v7322_v4  ;;  %8187 = vrcp.f32 %v4877_v35  ;;  %v4885_v58 = vmul.f32 %v8180_v51, %v9680_v12  ;;  %v9889_v12 = vshrl.u32 %v51_v55, 7  ;;  %v4927_v55 = vld [vmem:[%s10195_s11] sm:$0xff]  ;;  %v5319_v35 = vmul.f32 1e+30, %v6381_v14 }
0x2f78   :  { %v6377_v46 = vadd.f32 -1.0, %v4927_v55  ;;  %v6379_v51 = vadd.f32 -1.0, %v4929_v41 }
0x2f79   :  { %v4900_v10 = vadd.s32 40, %v9889_v12  ;;  %v4899_v40 = vadd.s32 32, %v9889_v12  ;;  %vm4903_vm13 = vcmp.eq.s32.totalorder %v9889_v12, %v8545_v60  ;;  %v4897_v42 = vadd.s32 16, %v9889_v12 }
0x2f7a   :  { %v4902_v63 = vadd.s32 56, %v9889_v12  ;;  %v6345_v17 = vsel %vm4903_vm13, 1.0, %v8277_v39  ;;  %v4901_v23 = vadd.s32 48, %v9889_v12  ;;  %v5315_v20 = vmul.f32 1e+30, %v6377_v46 }
0x2f7b   :  { %v8182_v26 = vpop.eup %8181  ;;  %vm4908_vm15 = vcmp.eq.s32.totalorder %v4900_v10, %v8545_v60  ;;  %vm4907_vm2 = vcmp.eq.s32.totalorder %v4899_v40, %v8545_v60  ;;  %vm4905_vm3 = vcmp.eq.s32.totalorder %v4897_v42, %v8545_v60  ;;  %v5097_v45 = vmul.f32 %v6345_v17, %v5096_v44 }
0x2f7c   :  { %v8184_v8 = vpop.eup %8183  ;;  %v4887_v61 = vmul.f32 %v8182_v26, %v9740_v33  ;;  %v4896_v33 = vadd.s32 8, %v9889_v12  ;;  %v6350_v47 = vsel %vm4908_vm15, 1.0, %v8277_v39  ;;  %v6349_v16 = vsel %vm4907_vm2, 1.0, %v8277_v39 }
0x2f7d   :  { %v4889_v15 = vmul.f32 %v8184_v8, %v9735_v24  ;;  %v4898_v24 = vadd.s32 24, %v9889_v12  ;;  %v5102_v36 = vmul.f32 %v6350_v47, %v5096_v44  ;;  %vm4910_vm4 = vcmp.eq.s32.totalorder %v4902_v63, %v8545_v60 }
0x2f7e   :  { %7052 = vmatmul.mubr.msk.f32.vlgmr.msra.gmra.mrb[36].mxu0 %vm462_vm5, %v4881_v13  ;;  %vm4904_vm12 = vcmp.eq.s32.totalorder %v4896_v33, %v8545_v60  ;;  %v5101_v3 = vmul.f32 %v6349_v16, %v5096_v44  ;;  %vm4909_vm6 = vcmp.eq.s32.totalorder %v4901_v23, %v8545_v60  ;;  %v6347_v32 = vsel %vm4905_vm3, 1.0, %v8277_v39 }
0x2f7f   :  { %7054 = vmatprep.mubr.msk.f32.mxu0 %vm462_vm5, %v4883_v30  ;;  %vm4906_vm1 = vcmp.eq.s32.totalorder %v4898_v24, %v8545_v60  ;;  %v6346_v5 = vsel %vm4904_vm12, 1.0, %v8277_v39  ;;  %v6352_v34 = vsel %vm4910_vm4, 1.0, %v8277_v39  ;;  %v6351_v26 = vsel %vm4909_vm6, 1.0, %v8277_v39 }
0x2f80   :  { %v8186_v0 = vpop.eup %8185  ;;  %v6348_v50 = vsel %vm4906_vm1, 1.0, %v8277_v39  ;;  %v5098_v18 = vmul.f32 %v6346_v5, %v5096_v44  ;;  %v5099_v8 = vmul.f32 %v6347_v32, %v5096_v44  ;;  %v5103_v24 = vmul.f32 %v6351_v26, %v5096_v44 }
0x2f81   :  { %v8188_v25 = vpop.eup %8187  ;;  %v4891_v11 = vmul.f32 %v8186_v0, %v9752_v21  ;;  %v4928_v21 = vld [vmem:[%s10195_s11 + $0x8] sm:$0xff]  ;;  %v5100_v4 = vmul.f32 %v6348_v50, %v5096_v44  ;;  %v5321_v40 = vmul.f32 1e+30, %v6383_v19  ;;  %v5318_v17 = vmul.f32 1e+30, %v6380_v29  ;;  %s8281_s11 = smov 127  }
0x2f82   :  { %7055 = vmatmul.mubr.msk.f32.gmra.mrb[38].mxu0 %vm462_vm5, %v4885_v58  ;;  %v4893_v38 = vmul.f32 %v8188_v25, %v9747_v27  ;;  %v6378_v49 = vadd.f32 -1.0, %v4928_v21  ;;  %v5104_v25 = vmul.f32 %v6352_v34, %v5096_v44  ;;  %v5317_v50 = vmul.f32 1e+30, %v6379_v51 }
0x2f83   :  { %7057 = vmatprep.mubr.msk.f32.mxu0 %vm462_vm5, %v4887_v61  ;;  %vm5811_vm12 = vcmp.lt.s32.totalorder %v8545_v60, 32  ;;  %vm5807_vm13 = vcmp.lt.s32.totalorder %v8545_v60, 16  ;;  %vm6106_vm1 = vcmask 1040384   ;;  %vm6108_vm2 = vcmask 1041408  }
0x2f84   :  { %v5316_v9 = vmul.f32 1e+30, %v6378_v49  ;;  %vm5812_vm15 = vmand %vm5810_vm11, %vm5811_vm12  ;;  %vm6110_vm3 = vcmask 1042432   ;;  %vm6113_vm4 = vcmask 1044480   ;;  %vm6115_vm6 = vcmask 1045504  }
0x2f86   :  { %7058 = vmatmul.mubr.msk.f32.gmra.mrb[40].mxu0 %vm462_vm5, %v4889_v15 }
0x2f87   :  { %7060 = vmatprep.mubr.msk.f32.mxu0 %vm462_vm5, %v4891_v11  ;;  %v5322_v11 = vmul.f32 1e+30, %v6384_v22 }
0x2f8a   :  { %7061 = vmatmul.mubr.msk.f32.gmra.mrb[42].mxu0 %vm462_vm5, %v4893_v38 }
0x3051   :  { %v7053_v27 = vpop.f32.mrb[36].mxu0 }
0x3052   :  { %v5049_v43 = vpop.f32.mrb[37].mxu0  ;;  %v5089_v13 = vmul.f32 %v7053_v27, %v4928_v21 }
0x3053   :  { %v5088_v58 = vmul.f32 %v5049_v43, %v4927_v55 }
0x3054   :  { %v9945_v27 = vadd.f32 %v5098_v18, %v5089_v13 }
0x3055   :  { %v7056_v28 = vpop.f32.mrb[38].mxu0  ;;  %v9950_v42 = vadd.f32 %v5097_v45, %v5088_v58 }
0x3056   :  { %v5059_v62 = vpop.f32.mrb[39].mxu0  ;;  %v5091_v49 = vmul.f32 %v7056_v28, %v4930_v31  ;;  %v5324_v47 = vadd.f32 %v5316_v9, %v9945_v27 }
0x3058   :  { %v9959_v63 = vadd.f32 %v5100_v4, %v5091_v49  ;;  %v5334_v57 = vsel %vm5145_vm7, %v5324_v47, -inf }
0x3059   :  { %v7059_v6 = vpop.f32.mrb[40].mxu0 }
0x305a   :  { %v5093_v52 = vmul.f32 %v7059_v6, %v4932_v56  ;;  %v5069_v53 = vpop.f32.mrb[41].mxu0  ;;  %v5090_v56 = vmul.f32 %v5059_v62, %v4929_v41  ;;  %v5323_v62 = vadd.f32 %v5315_v20, %v9950_v42  ;;  %v5326_v16 = vadd.f32 %v5318_v17, %v9959_v63 }
0x305b   :  { %v5092_v54 = vmul.f32 %v5069_v53, %v4931_v48 }
0x305c   :  { %v9938_v30 = vadd.f32 %v5102_v36, %v5093_v52  ;;  %v9963_v23 = vadd.f32 %v5099_v8, %v5090_v56  ;;  %v5331_v18 = vsel %vm5145_vm7, %v5323_v62, -inf  ;;  %v5340_v9 = vsel %vm5145_vm7, %v5326_v16, -inf }
0x305d   :  { %v9941_v61 = vadd.f32 %v5101_v3, %v5092_v54  ;;  %v7062_v0 = vpop.f32.mrb[42].mxu0 }
0x305e   :  { %v5095_v15 = vmul.f32 %v7062_v0, %v4934_v37  ;;  %v5079_v38 = vpop.f32.mrb[43].mxu0  ;;  %v5328_v33 = vadd.f32 %v5320_v1, %v9938_v30  ;;  %v5325_v14 = vadd.f32 %v5317_v50, %v9963_v23 }
0x305f   :  { %v5094_v10 = vmul.f32 %v5079_v38, %v4933_v7  ;;  %v5327_v21 = vadd.f32 %v5319_v35, %v9941_v61 }
0x3060   :  { %v9947_v55 = vadd.f32 %v5104_v25, %v5095_v15  ;;  %v5346_v43 = vsel %vm5145_vm7, %v5328_v33, -inf  ;;  %v5337_v37 = vsel %vm5145_vm7, %v5325_v14, -inf }
0x3061   :  { %v9952_v5 = vadd.f32 %v5103_v24, %v5094_v10  ;;  %5347 = vmax.xlane.f32.xlu0 %v5346_v43  ;;  %v5343_v46 = vsel %vm5145_vm7, %v5327_v21, -inf }
0x3062   :  { %5344 = vmax.xlane.f32.xlu1 %v5343_v46  ;;  %v5330_v44 = vadd.f32 %v5322_v11, %v9947_v55 }
0x3063   :  { %v9957_v48 = vadd.f32 %v5321_v40, %v9952_v5 }
0x3064   :  { %v5352_v28 = vsel %vm5145_vm7, %v5330_v44, -inf }
0x3065   :  { %5353 = vmax.xlane.f32.xlu0 %v5352_v28  ;;  %v5349_v31 = vsel %vm5145_vm7, %v9957_v48, -inf }
0x3066   :  { %5350 = vmax.xlane.f32.xlu1 %v5349_v31 }
0x3069   :  { %5335 = vmax.xlane.f32.xlu0 %v5334_v57 }
0x306a   :  { %5332 = vmax.xlane.f32.xlu1 %v5331_v18 }
0x306d   :  { %5341 = vmax.xlane.f32.xlu0 %v5340_v9 }
0x306e   :  { %5338 = vmax.xlane.f32.xlu1 %v5337_v37 }
0x30ee   :  { %v5348_v45 = vpop.xlane.xlu0 %5347 }
0x30ef   :  { %v5360_v36 = vsub.f32 %v5328_v33, %v5348_v45  ;;  %v5345_v20 = vpop.xlane.xlu1 %5344 }
0x30f0   :  { %v5359_v7 = vsub.f32 %v5327_v21, %v5345_v20  ;;  %v5526_v20 = vld [vmem:[%s10196_s12] sm:$0xff] }
0x30f1   :  { %v5373_v4 = vmul.f32 1.442695, %v5360_v36 }
0x30f2   :  { %v5371_v29 = vmul.f32 1.442695, %v5359_v7  ;;  %v5354_v41 = vpop.xlane.xlu0 %5353  ;;  %v5527_v7 = vld [vmem:[%s10196_s12 + $0x8] sm:$0xff] }
0x30f3   :  { %8189 = vpow2.f32 %v5373_v4  ;;  %v5362_v6 = vsub.f32 %v5330_v44, %v5354_v41  ;;  %v5351_v3 = vpop.xlane.xlu1 %5350 }
0x30f4   :  { %8191 = vpow2.f32 %v5371_v29  ;;  %v5361_v46 = vsub.f32 %v9957_v48, %v5351_v3 }
0x30f5   :  { %v5377_v32 = vmul.f32 1.442695, %v5362_v6 }
0x30f6   :  { %v5336_v52 = vpop.xlane.xlu0 %5335  ;;  %v5375_v44 = vmul.f32 1.442695, %v5361_v46 }
0x30f7   :  { %8193 = vpow2.f32 %v5377_v32  ;;  %v5356_v1 = vsub.f32 %v5324_v47, %v5336_v52  ;;  %v5333_v53 = vpop.xlane.xlu1 %5332 }
0x30f8   :  { %v5355_v22 = vsub.f32 %v5323_v62, %v5333_v53 }
0x30f9   :  { %v5365_v54 = vmul.f32 1.442695, %v5356_v1 }
0x30fa   :  { %v5363_v35 = vmul.f32 1.442695, %v5355_v22  ;;  %v5342_v34 = vpop.xlane.xlu0 %5341 }
0x30fb   :  { %v5339_v19 = vpop.xlane.xlu1 %5338  ;;  %v5358_v58 = vsub.f32 %v5326_v16, %v5342_v34 }
0x30fc   :  { %8195 = vpow2.f32 %v5363_v35  ;;  %v5357_v13 = vsub.f32 %v5325_v14, %v5339_v19 }
0x30fd   :  { %v8190_v51 = vpop.eup %8189  ;;  %8197 = vpow2.f32 %v5365_v54  ;;  %v5369_v11 = vmul.f32 1.442695, %v5358_v58 }
0x30fe   :  { %v8192_v26 = vpop.eup %8191  ;;  %v5367_v8 = vmul.f32 1.442695, %v5357_v13  ;;  %v5394_v0 = vsel %vm5145_vm7, %v8190_v51, 0.0 }
0x30ff   :  { %5395 = vadd.xlane.f32.xlu0 %v5394_v0  ;;  %v5391_v15 = vsel %vm5145_vm7, %v8192_v26, 0.0 }
0x3100   :  { %5392 = vadd.xlane.f32.xlu1 %v5391_v15  ;;  %8199 = vpow2.f32 %v5367_v8 }
0x3101   :  { %v8194_v25 = vpop.eup %8193  ;;  %8201 = vpow2.f32 %v5369_v11 }
0x3102   :  { %v5400_v38 = vsel %vm5145_vm7, %v8194_v25, 0.0  ;;  %8203 = vpow2.f32 %v5375_v44 }
0x3103   :  { %5401 = vadd.xlane.f32.xlu0 %v5400_v38 }
0x3106   :  { %v9977_v33 = vpop.eup %8195 }
0x3107   :  { %v5379_v10 = vsel %vm5145_vm7, %v9977_v33, 0.0  ;;  %v9981_v24 = vpop.eup %8197 }
0x3108   :  { %5380 = vadd.xlane.f32.xlu0 %v5379_v10  ;;  %v5382_v40 = vsel %vm5145_vm7, %v9981_v24, 0.0 }
0x310a   :  { %v9985_v21 = vpop.eup %8199 }
0x310b   :  { %v5385_v49 = vsel %vm5145_vm7, %v9985_v21, 0.0  ;;  %v9989_v43 = vpop.eup %8201 }
0x310c   :  { %5383 = vadd.xlane.f32.xlu0 %v5382_v40  ;;  %v5388_v56 = vsel %vm5145_vm7, %v9989_v43, 0.0  ;;  %v8204_v17 = vpop.eup %8203 }
0x310d   :  { %v5397_v28 = vsel %vm5145_vm7, %v8204_v17, 0.0 }
0x3110   :  { %5386 = vadd.xlane.f32.xlu0 %v5385_v49 }
0x3111   :  { %4429 = vrot.lane.b32.xlu1 %v9773_v2, %s8281_s11 }
0x3114   :  { %5389 = vadd.xlane.f32.xlu0 %v5388_v56 }
0x3135   :  { %5398 = vadd.xlane.f32.xlu1 %v5397_v28 }
0x318c   :  { %v5396_v47 = vpop.xlane.xlu0 %5395 }
0x318d   :  { %8205 = vrcp.f32 %v5396_v47  ;;  %v5393_v50 = vpop.xlane.xlu1 %5392 }
0x318e   :  { %8207 = vrcp.f32 %v5393_v50 }
0x3190   :  { %v5402_v31 = vpop.xlane.xlu0 %5401 }
0x3191   :  { %8209 = vrcp.f32 %v5402_v31  ;;  %v4430_v62 = vpop.permute.xlu1 %4429 }
0x3192   :  { %7512 = vpush %v4430_v62 }
0x3195   :  { %v5381_v52 = vpop.xlane.xlu0 %5380 }
0x3197   :  { %v8206_v2 = vpop.eup %8205 }
0x3198   :  { %v8208_v57 = vpop.eup %8207  ;;  %v5414_v16 = vmul.f32 %v8206_v2, %v8190_v51 }
0x3199   :  { %v5412_v18 = vmul.f32 %v8208_v57, %v8192_v26 }
0x319a   :  { %5429 = vrot.lane.b32.xlu0 %v5414_v16, %s8280_s18 }
0x319b   :  { %v8210_v48 = vpop.eup %8209  ;;  %5427 = vrot.lane.b32.xlu1 %v5412_v18, %s8280_s18 }
0x319c   :  { %v5418_v14 = vmul.f32 %v8210_v48, %v8194_v25 }
0x319f   :  { %5433 = vrot.lane.b32.xlu1 %v5418_v14, %s8280_s18 }
0x31c2   :  { %v5399_v9 = vpop.xlane.xlu1 %5398 }
0x31c3   :  { %8211 = vrcp.f32 %v5399_v9  ;;  %s7513_s25 = spop %7512 }
0x31c4   :  { %s5530_s0 = sand.u32 2147483647, %s7513_s25 }
0x31c5   :  { %s5531_s19 = smul.f32 10000.0, %s5530_s0 }
0x31c7   :  { %v5532_v37 = vstv %s5531_s19 }
0x31c8   :  { %8213 = vrcp.f32 %v5532_v37 }
0x31c9   :  { %8215 = vrcp.f32 %v5381_v52 }
0x31cd   :  { %v8212_v45 = vpop.eup %8211 }
0x31ce   :  { %v5416_v36 = vmul.f32 %v8212_v45, %v8204_v17 }
0x31d0   :  { %5431 = vrot.lane.b32.xlu1 %v5416_v36, %s8280_s18  ;;  %s8285_s18 = smov [#allocation4]  }
0x31d1   :  { %s6134_s10 = sshll.u32 %s8285_s18, 4  ;;  %s6135_s10 = int_to_ptr.vmem [resolvable:$true] %s6134_s10 }
0x31d2   :  { %v8214_v4 = vpop.eup %8213  ;;  %s8253_s20 = scalar_lea.vmem %s6135_s10, 512  ;;  %p8258_p1 = scmp.lt.s32.totalorder %s6135_s10, %s6135_s10 }
0x31d3   :  { %v5534_v29 = vmul.f32 %v8214_v4, %v5526_v20  ;;  %v5535_v41 = vmul.f32 %v8214_v4, %v5527_v7  ;;  %v8216_v19 = vpop.eup %8215  ;;  %p8254_p0 = scmp.ne.s32.totalorder %s6135_s10, %s8253_s20  ;;  %p8259_p2 = scmp.lt.s32.totalorder %s8253_s20, %s8253_s20 }
0x31d4   :  { %v5404_v26 = vmul.f32 %v8216_v19, %v9977_v33 }
0x31d5   :  { %v7344_v6 = vpack.c.bf16 %v5535_v41, %v5534_v29  ;;  %p8260_p3 = por %p8259_p2, %p8258_p1 }
0x31d7   :  { %7345 = vmatprep.subr.bf16.mxu1 %v7344_v6  ;;  %p8261_p4 = pnand %p8260_p3, %p8254_p0 }
0x31f9   :  { %5113 = vxpose.xlu1.b32.start [1/8] (short) (narrow) %v9950_v42, 64  ;;  %v5529_v42 = vld [vmem:[%s10196_s12 + $0x18] sm:$0xff] }
0x31fd   :  { %5114 = vxpose.xlu1.b32.cont [2/8] (short) (narrow) %v9945_v27, 64  ;;  %v5528_v27 = vld [vmem:[%s10196_s12 + $0x10] sm:$0xff] }
0x3201   :  { %5115 = vxpose.xlu1.b32.cont [3/8] (short) (narrow) %v9963_v23, 64 }
0x3205   :  { %5116 = vxpose.xlu1.b32.cont [4/8] (short) (narrow) %v9959_v63, 64 }
0x3209   :  { %5117 = vxpose.xlu1.b32.cont [5/8] (short) (narrow) %v9941_v61, 64  ;;  %v5384_v61 = vpop.xlane.xlu0 %5383 }
0x320a   :  { %8217 = vrcp.f32 %v5384_v61 }
0x320d   :  { %5118 = vxpose.xlu1.b32.cont [6/8] (short) (narrow) %v9938_v30, 64  ;;  %v5428_v3 = vpop.permute.xlu1 %5427  ;;  %v5536_v30 = vmul.f32 %v8214_v4, %v5528_v27  ;;  %v5387_v53 = vpop.xlane.xlu0 %5386 }
0x320e   :  { %8219 = vrcp.f32 %v5387_v53  ;;  %v5439_v0 = vadd.f32 %v5428_v3, %v5404_v26 }
0x3210   :  { %v5443_v40 = vmul.f32 0.5, %v5439_v0 }
0x3211   :  { %5119 = vxpose.xlu1.b32.cont [7/8] (short) (narrow) %v9952_v5, 64  ;;  %v5434_v32 = vpop.permute.xlu1 %5433  ;;  %v5537_v5 = vmul.f32 %v8214_v4, %v5529_v42  ;;  %v5390_v35 = vpop.xlane.xlu0 %5389 }
0x3212   :  { %8221 = vrcp.f32 %v5390_v35 }
0x3214   :  { %v8218_v51 = vpop.eup %8217 }
0x3215   :  { %5120 = vxpose.xlu1.b32.end [8/8] (short) (narrow) %v9947_v55, 64  ;;  %v7348_v55 = vpack.c.bf16 %v5537_v5, %v5536_v30  ;;  %v5430_v8 = vpop.permute.xlu0 %5429  ;;  %v5406_v25 = vmul.f32 %v8218_v51, %v9981_v24 }
0x3217   :  { %v5440_v10 = vadd.f32 %v5430_v8, %v5406_v25 }
0x3218   :  { %v8220_v58 = vpop.eup %8219 }
0x3219   :  { %v5408_v38 = vmul.f32 %v8220_v58, %v9985_v21  ;;  %v5444_v33 = vmul.f32 0.5, %v5440_v10 }
0x321c   :  { %v8222_v11 = vpop.eup %8221 }
0x321d   :  { %v5410_v46 = vmul.f32 %v8222_v11, %v9989_v43 }
0x321f   :  { %v5442_v44 = vadd.f32 %v5434_v32, %v5410_v46 }
0x3221   :  { %v5446_v24 = vmul.f32 0.5, %v5442_v44 }
0x3242   :  { %v5432_v1 = vpop.permute.xlu1 %5431 }
0x3243   :  { %v5441_v49 = vadd.f32 %v5432_v1, %v5408_v38 }
0x3245   :  { %v5445_v17 = vmul.f32 0.5, %v5441_v49 }
0x3279   :  { %v5129_v63 = vpop.trf.xlu1 }
0x327a   :  { %7079 = vmatprep.mubr.msk.f32.mxu1 %vm5145_vm7, %v5129_v63 }
0x327d   :  { %v5130_v23 = vpop.trf.xlu1 }
0x327e   :  { %7080 = vmatmul.mubr.msk.f32.vlgmr.msra.gmra.mrb[36].mxu1 %vm5145_vm7, %v5130_v23 }
0x327f   :  { %7347 = vmatpush3.bf16.msra.mxu1 %v7344_v6 }
0x3280   :  { %7349 = vmatprep.subr.bf16.mxu1 %v7348_v55 }
0x3281   :  { %v5131_v22 = vpop.trf.xlu1 }
0x3282   :  { %7082 = vmatprep.mubr.msk.f32.mxu1 %vm5145_vm7, %v5131_v22 }
0x3283   :  { %7351 = vmatpush3.bf16.msra.mxu1 %v7348_v55 }
0x3285   :  { %v5132_v54 = vpop.trf.xlu1 }
0x3286   :  { %7083 = vmatmul.mubr.msk.f32.gmra.mrb[38].mxu1 %vm5145_vm7, %v5132_v54 }
0x3289   :  { %v5133_v34 = vpop.trf.xlu1 }
0x328a   :  { %7085 = vmatprep.mubr.msk.f32.mxu1 %vm5145_vm7, %v5133_v34 }
0x328d   :  { %v5134_v13 = vpop.trf.xlu1 }
0x328e   :  { %7086 = vmatmul.mubr.msk.f32.gmra.mrb[40].mxu1 %vm5145_vm7, %v5134_v13 }
0x3291   :  { %v5135_v15 = vpop.trf.xlu1 }
0x3292   :  { %7088 = vmatprep.mubr.msk.f32.mxu1 %vm5145_vm7, %v5135_v15 }
0x3295   :  { %v5136_v56 = vpop.trf.xlu1 }
0x3296   :  { %7089 = vmatmul.mubr.msk.f32.gmra.mrb[42].mxu1 %vm5145_vm7, %v5136_v56  ;;  %vm6117_vm7 = vcmask 1046528  }
0x3297   :  { %7099 = vmatprep.mubr.msk.f32.mxu1 %vm462_vm5, %v5443_v40 }
0x329a   :  { %7100 = vmatmul.mubr.msk.f32.vlgmr.msra.gmra.mrb[44].mxu1 %vm462_vm5, %v5444_v33 }
0x329b   :  { %7102 = vmatprep.mubr.msk.f32.mxu1 %vm462_vm5, %v5445_v17 }
0x329e   :  { %7103 = vmatmul.mubr.msk.f32.gmra.mrb[46].mxu1 %vm462_vm5, %v5446_v24 }
0x3351   :  { %v7081_v21 = vpop.f32.mrb[36].mxu1 }
0x3352   :  { %v5236_v28 = vpop.f32.mrb[37].mxu1 }
0x3353   :  { %8223 = vtanh.f32 %v5236_v28 }
0x3354   :  { %8225 = vtanh.f32 %v7081_v21 }
0x3359   :  { %v7084_v47 = vpop.f32.mrb[38].mxu1 }
0x335a   :  { %v5246_v43 = vpop.f32.mrb[39].mxu1 }
0x335d   :  { %v8224_v50 = vpop.eup %8223 }
0x335e   :  { %v5283_v31 = vsel %vm462_vm5, %v8224_v50, 0.0  ;;  %v8226_v62 = vpop.eup %8225 }
0x335f   :  { %5284 = vadd.xlane.f32.xlu0 %v5283_v31  ;;  %v5286_v16 = vsel %vm462_vm5, %v8226_v62, 0.0 }
0x3361   :  { %v7087_v2 = vpop.f32.mrb[40].mxu1 }
0x3362   :  { %v5256_v57 = vpop.f32.mrb[41].mxu1 }
0x3363   :  { %8227 = vtanh.f32 %v5256_v57  ;;  %5287 = vadd.xlane.f32.xlu0 %v5286_v16  ;;  %v8282_v16 = vmov 0.0|0.0  }
0x3364   :  { %8229 = vtanh.f32 %v7087_v2  ;;  %7364 = vmatprep.subr.bf16.mxu1 %v8282_v16 }
0x3369   :  { %v7090_v18 = vpop.f32.mrb[42].mxu1 }
0x336a   :  { %v5266_v48 = vpop.f32.mrb[43].mxu1 }
0x336b   :  { %8231 = vtanh.f32 %v5266_v48 }
0x336c   :  { %8233 = vtanh.f32 %v5246_v43 }
0x336d   :  { %v8228_v14 = vpop.eup %8227  ;;  %v7101_v9 = vpop.f32.mrb[44].mxu1  ;;  %8235 = vtanh.f32 %v7084_v47 }
0x336e   :  { %v5616_v37 = vpop.f32.mrb[45].mxu1  ;;  %v5295_v45 = vsel %vm462_vm5, %v8228_v14, 0.0  ;;  %v8230_v36 = vpop.eup %8229  ;;  %8237 = vtanh.f32 %v7090_v18 }
0x336f   :  { %v7352_v20 = vpack.c.bf16 %v7101_v9, %v5616_v37  ;;  %5296 = vadd.xlane.f32.xlu0 %v5295_v45  ;;  %7113 = vmatprep.mubr.msk.f32.mxu0 %vm462_vm5, %v5616_v37  ;;  %v5298_v29 = vsel %vm462_vm5, %v8230_v36, 0.0 }
0x3371   :  { %v7104_v7 = vpop.f32.mrb[46].mxu1  ;;  %7354 = vmatprep.subr.msk.bf16.mxu0 %vm9780_vm14, %v7352_v20 }
0x3372   :  { %v5626_v4 = vpop.f32.mrb[47].mxu1  ;;  %7357 = vmatpush3.bf16.xpose.msk.msra.mxu0 %vm9780_vm14, %v7352_v20 }
0x3373   :  { %v7358_v41 = vpack.c.bf16 %v7104_v7, %v5626_v4  ;;  %5299 = vadd.xlane.f32.xlu0 %v5298_v29 }
0x3375   :  { %v8232_v6 = vpop.eup %8231  ;;  %7360 = vmatprep.subr.msk.bf16.mxu0 %vm9780_vm14, %v7358_v41 }
0x3376   :  { %v5301_v3 = vsel %vm462_vm5, %v8232_v6, 0.0  ;;  %v8234_v23 = vpop.eup %8233 }
0x3377   :  { %5302 = vadd.xlane.f32.xlu1 %v5301_v3  ;;  %v5289_v55 = vsel %vm462_vm5, %v8234_v23, 0.0  ;;  %v8236_v53 = vpop.eup %8235  ;;  %v5785_v23 = vsub.s32 0, %v9889_v12 }
0x3378   :  { %v5292_v22 = vsel %vm462_vm5, %v8236_v53, 0.0  ;;  %v8238_v54 = vpop.eup %8237 }
0x3379   :  { %v5304_v35 = vsel %vm462_vm5, %v8238_v54, 0.0 }
0x337a   :  { %7363 = vmatpush3.bf16.xpose.msk.msra.mxu0 %vm9780_vm14, %v7358_v41  ;;  %vm8283_vm14 = vmmov 0  }
0x337b   :  { %7376 = vmatprep.subr.bf16.mxu0 %v8282_v16  ;;  %7127 = vmatprep.mubr.msk.f32.mxu1 %vm8283_vm14, %v8277_v39 }
0x3381   :  { %7114 = vmatmul.mubr.msk.f32.vlgmr.msra.gmra.mrb[44].mxu0 %vm462_vm5, %v7101_v9 }
0x3382   :  { %7116 = vmatprep.mubr.msk.f32.mxu0 %vm462_vm5, %v5626_v4  ;;  %v10085_v4 = vld [vmem:[%s10197_s13] sm:$0xf] }
0x3383   :  { %v5774_v6 = vrot.slane %v10085_v4, 1 }
0x3385   :  { %7117 = vmatmul.mubr.msk.f32.gmra.mrb[46].mxu0 %vm462_vm5, %v7104_v7 }
0x3386   :  { %7149 = vmatprep.mubr.msk.f32.mxu0 %vm8283_vm14, %v8277_v39 }
0x33ec   :  { %v5285_v32 = vpop.xlane.xlu0 %5284 }
0x33ed   :  { %v5448_v1 = vsel %vm5447_vm8, %v5285_v32, 0.0 }
0x33f0   :  { %v5288_v52 = vpop.xlane.xlu0 %5287 }
0x33f1   :  { %v5449_v27 = vsel %vm5447_vm8, %v5288_v52, 0.0 }
0x33f2   :  { %v5450_v42 = vadd.f32 %v5449_v27, %v5448_v1  ;;  %v5776_v27 = vadd.f32 %v5774_v6, %v10085_v4 }
0x33f4   :  { %5451 = vadd.xlane.f32.xlu0 %v5450_v42  ;;  %v5777_v42 = vrot.slane %v10085_v4, 2 }
0x33fc   :  { %v5297_v63 = vpop.xlane.xlu0 %5296 }
0x33fd   :  { %v5461_v61 = vsel %vm5447_vm8, %v5297_v63, 0.0 }
0x3400   :  { %v5300_v59 = vpop.xlane.xlu0 %5299 }
0x3401   :  { %v5462_v30 = vsel %vm5447_vm8, %v5300_v59, 0.0 }
0x3402   :  { %v5463_v5 = vadd.f32 %v5462_v30, %v5461_v61  ;;  %v5779_v61 = vadd.f32 %v5777_v42, %v5776_v27  ;;  %v5780_v30 = vrot.slane %v10085_v4, 3 }
0x3404   :  { %5464 = vadd.xlane.f32.xlu0 %v5463_v5  ;;  %v5303_v21 = vpop.xlane.xlu1 %5302  ;;  %v10091_v5 = vadd.f32 %v5780_v30, %v5779_v61 }
0x3405   :  { %v5500_v50 = vsel %vm5447_vm8, %v5303_v21, 0.0 }
0x3408   :  { %5290 = vadd.xlane.f32.xlu0 %v5289_v55  ;;  %v5786_v55 = vrot.slane %v10091_v5, %v5785_v23 }
0x340c   :  { %5293 = vadd.xlane.f32.xlu0 %v5292_v22 }
0x3410   :  { %5305 = vadd.xlane.f32.xlu0 %v5304_v35 }
0x3454   :  { %v10060_v34 = vpop.f32.mrb[44].mxu0 }
0x3455   :  { %v10062_v19 = vpop.f32.mrb[45].mxu0 }
0x3458   :  { %v10064_v13 = vpop.f32.mrb[46].mxu0 }
0x3459   :  { %v10066_v51 = vpop.f32.mrb[47].mxu0 }
0x3481   :  { %v5452_v26 = vpop.xlane.xlu0 %5451 }
0x3482   :  { %v5453_v58 = vrot.slane %v5452_v26, 4 }
0x3484   :  { %v5454_v8 = vadd.f32 %v5453_v58, %v5452_v26 }
0x3486   :  { %v5455_v0 = vrot.slane %v5454_v8, 2 }
0x3488   :  { %v5456_v15 = vadd.f32 %v5455_v0, %v5454_v8 }
0x348a   :  { %v5457_v25 = vrot.slane %v5456_v15, 1 }
0x348c   :  { %v5458_v11 = vadd.f32 %v5457_v25, %v5456_v15 }
0x348e   :  { %7514 = vpush %v5458_v11 }
0x3491   :  { %v5465_v38 = vpop.xlane.xlu0 %5464 }
0x3492   :  { %v5466_v10 = vrot.slane %v5465_v38, 4 }
0x3494   :  { %v5467_v40 = vadd.f32 %v5466_v10, %v5465_v38  ;;  %v10108_v10 = vmul.f32 0.15384616, %v10085_v4 }
0x3495   :  { %v5291_v49 = vpop.xlane.xlu0 %5290 }
0x3496   :  { %v5468_v56 = vrot.slane %v5467_v40, 2  ;;  %v5487_v44 = vsel %vm5447_vm8, %v5291_v49, 0.0 }
0x3498   :  { %v5469_v46 = vadd.f32 %v5468_v56, %v5467_v40 }
0x3499   :  { %v5294_v33 = vpop.xlane.xlu0 %5293 }
0x349a   :  { %v5488_v17 = vsel %vm5447_vm8, %v5294_v33, 0.0  ;;  %v5470_v24 = vrot.slane %v5469_v46, 1 }
0x349b   :  { %v5489_v28 = vadd.f32 %v5488_v17, %v5487_v44  ;;  %v10116_v17 = vmul.f32 0.25, %v10085_v4 }
0x349c   :  { %v5471_v47 = vadd.f32 %v5470_v24, %v5469_v46 }
0x349d   :  { %5490 = vadd.xlane.f32.xlu0 %v5489_v28  ;;  %v5306_v43 = vpop.xlane.xlu0 %5305 }
0x349e   :  { %v5501_v31 = vsel %vm5447_vm8, %v5306_v43, 0.0  ;;  %7516 = vpush %v5471_v47 }
0x349f   :  { %v5502_v62 = vadd.f32 %v5501_v31, %v5500_v50 }
0x34a1   :  { %5503 = vadd.xlane.f32.xlu0 %v5502_v62 }
0x34bf   :  { %s7515_s12 = spop %7514 }
0x34ce   :  { %5732 = vxpose.xlu0.b32.start [1/4] (short) (narrow) %v10062_v19, 32 }
0x34cf   :  { %s7517_s21 = spop %7516 }
0x34d0   :  { %s5473_s6 = sadd.f32 %s7517_s21, %s7515_s12 }
0x34d2   :  { %s5474_s22 = smul.f32 0.0009765625, %s5473_s6  ;;  %5733 = vxpose.xlu0.b32.cont [2/4] (short) (narrow) %v10060_v34, 32 }
0x34d4   :  { %s5475_s23 = sxor.u32 2147483648, %s5474_s22 }
0x34d5   :  { %v5476_v2 = vstv %s5475_s23 }
0x34d6   :  { %v5477_v57 = vmul.f32 1.442695, %v5476_v2  ;;  %5734 = vxpose.xlu0.b32.cont [3/4] (short) (narrow) %v10066_v51, 32 }
0x34d8   :  { %8239 = vpow2.f32 %v5477_v57 }
0x34da   :  { %5735 = vxpose.xlu0.b32.end [4/4] (short) (narrow) %v10064_v13, 32 }
0x34e2   :  { %v8240_v18 = vpop.eup %8239 }
0x34e3   :  { %7518 = vpush %v8240_v18 }
0x3514   :  { %s7519_s24 = spop %7518 }
0x3515   :  { %s5480_s26 = sadd.f32 1.0, %s7519_s24 }
0x3517   :  { %v5481_v48 = vstv %s5480_s26 }
0x3518   :  { %8241 = vrcp.f32 %v5481_v48 }
0x3519   :  { %8243 = vrcp.f32 %v5786_v55 }
0x3522   :  { %v8242_v14 = vpop.eup %8241 }
0x3523   :  { %7520 = vpush %v8242_v14  ;;  %v8244_v54 = vpop.eup %8243 }
0x352a   :  { %v5491_v9 = vpop.xlane.xlu0 %5490 }
0x352b   :  { %v5492_v37 = vrot.slane %v5491_v9, 4 }
0x352d   :  { %v5493_v45 = vadd.f32 %v5492_v37, %v5491_v9 }
0x352e   :  { %v5504_v36 = vpop.xlane.xlu0 %5503 }
0x352f   :  { %v5494_v20 = vrot.slane %v5493_v45, 2  ;;  %v5505_v7 = vrot.slane %v5504_v36, 4 }
0x3531   :  { %v5506_v29 = vadd.f32 %v5505_v7, %v5504_v36  ;;  %v5495_v41 = vadd.f32 %v5494_v20, %v5493_v45  ;;  %v5904_v7 = vrot.slane %v10116_v17, 7 }
0x3533   :  { %v5507_v3 = vrot.slane %v5506_v29, 2  ;;  %v5496_v32 = vrot.slane %v5495_v41, 1 }
0x3535   :  { %v5497_v52 = vadd.f32 %v5496_v32, %v5495_v41  ;;  %v5508_v1 = vadd.f32 %v5507_v3, %v5506_v29 }
0x3537   :  { %7522 = vpush %v5497_v52  ;;  %v5509_v63 = vrot.slane %v5508_v1, 1 }
0x3539   :  { %v5510_v59 = vadd.f32 %v5509_v63, %v5508_v1 }
0x353b   :  { %7524 = vpush %v5510_v59 }
0x354e   :  { %v5748_v53 = vpop.trf.xlu0 }
0x354f   :  { %v5764_v22 = vadd.f32 %v5748_v53, %v10062_v19 }
0x3551   :  { %v5768_v35 = vmul.f32 0.5, %v5764_v22 }
0x3552   :  { %v5749_v26 = vpop.trf.xlu0 }
0x3553   :  { %v5788_v58 = vmul.f32 %v8244_v54, %v5768_v35  ;;  %v5765_v8 = vadd.f32 %v10060_v34, %v5749_v26 }
0x3554   :  { %s10097_s13 = spop %7520 }
0x3555   :  { %v5769_v0 = vmul.f32 0.5, %v5765_v8  ;;  %v5484_v15 = vstv %s10097_s13  ;;  %5793 = vst.msk [vmem:[#allocation4] sm:$0xff] %vm5792_vm9, %v5788_v58 }
0x3556   :  { %5486 = vst.msk [vmem:[%s10198_s14] sm:$0x7] %vm5485_vm10, %v5484_v15  ;;  %v5750_v12 = vpop.trf.xlu0  ;;  %v5809_v62 = vsel %vm5807_vm13, %v5484_v15, 0.0 }
0x3557   :  { %v5789_v19 = vmul.f32 %v8244_v54, %v5769_v0  ;;  %v5766_v25 = vadd.f32 %v5750_v12, %v10066_v51  ;;  %v5898_v51 = vrot.slane %v10108_v10, 7 }
0x3559   :  { %v7365_v11 = vpack.c.bf16 %v5789_v19, %v5788_v58  ;;  %v5770_v38 = vmul.f32 0.5, %v5766_v25  ;;  %5794 = vst.msk [vmem:[#allocation4 + $0x8] sm:$0xff] %vm5792_vm9, %v5789_v19  ;;  %v5900_v44 = vadd.f32 %v5898_v51, %v10085_v4 }
0x355a   :  { %v5751_v34 = vpop.trf.xlu0 }
0x355b   :  { %v5790_v40 = vmul.f32 %v8244_v54, %v5770_v38  ;;  %v5767_v49 = vadd.f32 %v10064_v13, %v5751_v34  ;;  %7366 = vmatpush3.bf16.msra.mxu1 %v7365_v11  ;;  %7378 = vmatpush3.bf16.msra.mxu0 %v7365_v11  ;;  %v10121_v13 = vsub.f32 %v5900_v44, %v10116_v17 }
0x355c   :  { %7367 = vmatprep.subr.bf16.mxu1 %v8282_v16  ;;  %7379 = vmatprep.subr.bf16.mxu0 %v8282_v16 }
0x355d   :  { %v5771_v56 = vmul.f32 0.5, %v5767_v49  ;;  %5797 = vrot.lane.b32.xlu1 %v5790_v40, %s8284_s30  ;;  %v5908_v24 = vrot.slane %v10121_v13, 2  ;;  %v5995_v36 = vmul.f32 0.25, %v10121_v13 }
0x355f   :  { %v5791_v46 = vmul.f32 %v8244_v54, %v5771_v56  ;;  %v5998_v52 = vrot.slane %v5995_v36, 7 }
0x3561   :  { %v7368_v33 = vpack.c.bf16 %v5791_v46, %v5790_v40  ;;  %5799 = vrot.lane.b32.xlu1 %v5791_v46, %s8284_s30 }
0x3563   :  { %7369 = vmatpush3.bf16.msra.mxu1 %v7368_v33  ;;  %7381 = vmatpush3.bf16.msra.mxu0 %v7368_v33 }
0x3564   :  { %7370 = vmatprep.subr.bf16.mxu1 %v8282_v16 }
0x3566   :  { %7128 = vmatmul.mubr.msk.f32.vlgmr.msra.gmra.mrb[48].mxu1 %vm462_vm5, %v5777_v42  ;;  %v5906_v42 = vadd.f32 %v5904_v7, %v10085_v4 }
0x3567   :  { %7372 = vmatpush3.bf16.msra.mxu1 %v7365_v11  ;;  %7138 = vmatprep.mubr.msk.f32.mxu1 %vm8283_vm14, %v8277_v39 }
0x3568   :  { %7373 = vmatprep.subr.bf16.mxu1 %v8282_v16  ;;  %s7523_s17 = spop %7522 }
0x356b   :  { %7375 = vmatpush3.bf16.msra.mxu1 %v7368_v33 }
0x356c   :  { %s7525_s1 = spop %7524 }
0x356d   :  { %s5512_s2 = sadd.f32 %s7525_s1, %s7523_s17 }
0x356e   :  { %7139 = vmatmul.mubr.msk.f32.vlgmr.msra.gmra.mrb[50].mxu1 %vm462_vm5, %v5908_v24 }
0x356f   :  { %s5513_s11 = smul.f32 0.0009765625, %s5512_s2 }
0x3571   :  { %s5514_s25 = sxor.u32 2147483648, %s5513_s11 }
0x3572   :  { %v5515_v21 = vstv %s5514_s25 }
0x3573   :  { %v5516_v28 = vmul.f32 1.442695, %v5515_v21 }
0x3575   :  { %8245 = vpow2.f32 %v5516_v28 }
0x357f   :  { %v8246_v47 = vpop.eup %8245 }
0x3580   :  { %7526 = vpush %v8246_v47 }
0x35b1   :  { %s7527_s0 = spop %7526 }
0x35b2   :  { %s5519_s19 = sadd.f32 1.0, %s7527_s0 }
0x35b4   :  { %v5520_v39 = vstv %s5519_s19 }
0x35b5   :  { %8247 = vrcp.f32 %v5520_v39 }
0x35b6   :  { %8249 = vrcp.f32 %v10091_v5  ;;  %v6000_v5 = vadd.f32 %v5998_v52, %v5906_v42 }
0x35bf   :  { %v8248_v43 = vpop.eup %8247 }
0x35c0   :  { %7528 = vpush %v8248_v43  ;;  %v10140_v16 = vpop.eup %8249 }
0x35c1   :  { %v5888_v18 = vmul.f32 %v10140_v16, %v10085_v4 }
0x35cf   :  { %v5798_v50 = vpop.permute.xlu1 %5797 }
0x35d0   :  { %5804 = vst.msk [vmem:[#allocation4 + $0x10] sm:$0xff] %vm5792_vm9, %v5798_v50 }
0x35d3   :  { %v5800_v31 = vpop.permute.xlu1 %5799 }
0x35d4   :  { %5805 = vst.msk [vmem:[#allocation4 + $0x18] sm:$0xff] %vm5792_vm9, %v5800_v31 }
0x35f1   :  { %s7529_s7 = spop %7528 }
0x35f2   :  { %v5523_v2 = vstv %s7529_s7 }
0x35f3   :  { %6385 = vst.msk [vmem:[%s10198_s14 + $0x4] sm:$0x7] %vm5485_vm10, %v5523_v2  ;;  %v10137_v57 = vsel %vm5812_vm15, %v5523_v2, %v5809_v62 }
0x3639   :  { %v5882_v48 = vpop.f32.mrb[48].mxu1 }
0x363a   :  { %v5886_v60 = vmul.f32 %v5882_v48, %v10137_v57  ;;  %v7129_v14 = vpop.f32.mrb[49].mxu1 }
0x363c   :  { %v5889_v9 = vmul.f32 %v5888_v18, %v5886_v60 }
0x363e   :  { %v5890_v37 = vsub.f32 %v10085_v4, %v5889_v9  ;;  %v5892_v45 = vrot.slane %v5889_v9, 7 }
0x3640   :  { %v5894_v20 = vadd.f32 %v5892_v45, %v10085_v4  ;;  %v5982_v3 = vmul.f32 %v10140_v16, %v5890_v37  ;;  %v6104_v4 = vrot.slane %v6000_v5, 4 }
0x3641   :  { %v5977_v29 = vpop.f32.mrb[50].mxu1 }
0x3642   :  { %v5896_v41 = vsub.f32 %v5894_v20, %v10108_v10  ;;  %v5981_v6 = vmul.f32 %v5977_v29, %v10137_v57  ;;  %v7140_v32 = vpop.f32.mrb[51].mxu1 }
0x3644   :  { %v5983_v1 = vmul.f32 %v5982_v3, %v5981_v6  ;;  %v5989_v27 = vmul.f32 0.15384616, %v5896_v41  ;;  %v6107_v63 = vsel %vm6106_vm1, %v5890_v37, %v5896_v41 }
0x3645   :  { %v6109_v53 = vsel %vm6108_vm2, %v6107_v63, %v10121_v13 }
0x3646   :  { %v5984_v59 = vsub.f32 %v5890_v37, %v5983_v1  ;;  %v5986_v61 = vrot.slane %v5983_v1, 7  ;;  %v5992_v30 = vrot.slane %v5989_v27, 7  ;;  %v6111_v26 = vsel %vm6110_vm3, %v6109_v53, %v5906_v42 }
0x3648   :  { %v5988_v23 = vadd.f32 %v5986_v61, %v5896_v41  ;;  %v5994_v55 = vadd.f32 %v5992_v30, %v10121_v13  ;;  %v6096_v22 = vrot.slane %v5984_v59, 4 }
0x364a   :  { %v5990_v54 = vsub.f32 %v5988_v23, %v5989_v27  ;;  %v5996_v35 = vsub.f32 %v5994_v55, %v5995_v36  ;;  %v6112_v15 = vsel %vm193_vm0, %v6111_v26, %v6096_v22 }
0x364c   :  { %v6099_v58 = vrot.slane %v5990_v54, 4  ;;  %v6101_v8 = vrot.slane %v5996_v35, 4  ;;  %v6002_v0 = vrot.slane %v5996_v35, 2 }
0x364e   :  { %v6114_v12 = vsel %vm6113_vm4, %v6112_v15, %v6099_v58  ;;  %7150 = vmatmul.mubr.msk.f32.vlgmr.msra.gmra.mrb[48].mxu0 %vm462_vm5, %v6002_v0 }
0x364f   :  { %v6116_v19 = vsel %vm6115_vm6, %v6114_v12, %v6101_v8 }
0x3650   :  { %v6118_v25 = vsel %vm6117_vm7, %v6116_v19, %v6104_v4 }
0x3651   :  { %6122 = vst.msk [vmem:[%s10199_s15] sm:$0xff] %vm462_vm5, %v6118_v25 }
0x3652   :  { %8264 = shalt.err (!%p8261_p4)
}
0x3653   :  { %s8265_s21 = scalar_lea.hbm %s10200_s16, 512 }
0x3654   :  { %p8266_p5 = scmp.ne.s32.totalorder %s10200_s16, %s8265_s21  ;;  %p8269_p6 = scmp.lt.u32.totalorder %s8265_s21, %s10200_s16 }
0x3656   :  { %p8271_p7 = pnand %p8269_p6, %p8266_p5 }
0x3658   :  { %8274 = shalt.err (!%p8271_p7)
}
0x3659   :  { %s8286_s26 = smov 128   ;;  %s8287_s27 = smov 8   ;;  %v6083_v11 = vmul.f32 0.15384616, %v5990_v54  ;;  %v6076_v10 = vmul.f32 %v10140_v16, %v5984_v59  ;;  %v6089_v51 = vmul.f32 0.25, %v5996_v35  ;;  %vm6123_vm0 = vcmask 257024  }
0x365a   :  { %6140 = dma.vmem_to_hbm [thread:$0]  %s6135_s10, 512, %s10200_s16, [#allocation5], %s8286_s26, %s8286_s26, %s8287_s27  }
0x365b   :  { %v6086_v49 = vrot.slane %v6083_v11, 7  ;;  %v6092_v17 = vrot.slane %v6089_v51, 7 }
0x365d   :  { %v6088_v33 = vadd.f32 %v6086_v49, %v5996_v35  ;;  %v6094_v28 = vadd.f32 %v6092_v17, %v6000_v5 }
0x365f   :  { %v6090_v21 = vsub.f32 %v6088_v33, %v6089_v51 }
0x3721   :  { %v6071_v38 = vpop.f32.mrb[48].mxu0 }
0x3722   :  { %v6075_v34 = vmul.f32 %v6071_v38, %v10137_v57  ;;  %v7151_v40 = vpop.f32.mrb[49].mxu0 }
0x3724   :  { %v6077_v56 = vmul.f32 %v6076_v10, %v6075_v34 }
0x3726   :  { %v6080_v46 = vrot.slane %v6077_v56, 7  ;;  %v6078_v13 = vsub.f32 %v5984_v59, %v6077_v56 }
0x3728   :  { %v6082_v44 = vadd.f32 %v6080_v46, %v5990_v54 }
0x372a   :  { %v6084_v24 = vsub.f32 %v6082_v44, %v6083_v11 }
0x372c   :  { %v6119_v47 = vsel %vm6106_vm1, %v6078_v13, %v6084_v24 }
0x372d   :  { %v6120_v39 = vsel %vm6108_vm2, %v6119_v47, %v6090_v21 }
0x372e   :  { %v6121_v43 = vsel %vm6110_vm3, %v6120_v39, %v6094_v28 }
0x372f   :  { %6124 = vst.msk [vmem:[%s10199_s15 + $0x8] sm:$0xf] %vm6123_vm0, %v6121_v43 }
0x3730   :  { %8275 = dma.done.wait [#allocation5], 512  }
0x3731   :  { %8276 = vsyncadd [#allocation5], 4294966784 }
0x3732   :  { %6148 = vsyncpa [#allocation5], 1 }

</bundles_post_ra>
